<compile_context>
chip_gen: v7x
topology: tpu7x:2x2x1
jax: 0.10.0
libtpu: 0.0.40
codegen_flags: <defaults>
</compile_context>

<pallas_src>
import math
import functools

import jax
import jax.numpy as jnp
from jax import lax
from jax.experimental import pallas as pl
from jax.experimental.pallas import tpu as pltpu


# ----------------------------------------------------------------------------
# In-kernel helpers (operate on VMEM-resident values)
# ----------------------------------------------------------------------------
def _ln(x, g, b, eps=1e-5):
    mu = jnp.mean(x, axis=-1, keepdims=True)
    var = jnp.mean(jnp.square(x - mu), axis=-1, keepdims=True)
    return (x - mu) * lax.rsqrt(var + eps) * g + b


def _mha(q, k, v, o_w, o_b, neg_bias, n_heads, scale):
    """Multi-head attention + fused output projection, fully in VMEM.

    q: [B, Lq, D] f32, k/v: [B, Lk, D] f32, o_w: [D, D] bf16, o_b: [1, D] f32,
    neg_bias: [B, 1, Lk] f32 additive key bias (-1e9 on padded keys) or None.
    Heads are folded into the batch dim -> one score matmul, one ctx matmul,
    one concat-heads output projection.  Returns [B*Lq, D] f32.
    """
    B, Lq, D = q.shape
    Lk = k.shape[1]
    Dh = D // n_heads

    qh = q.reshape(B, Lq, n_heads, Dh).transpose(0, 2, 1, 3)
    kh = k.reshape(B, Lk, n_heads, Dh).transpose(0, 2, 1, 3)
    vh = v.reshape(B, Lk, n_heads, Dh).transpose(0, 2, 1, 3)
    qh = qh.reshape(B * n_heads, Lq, Dh).astype(jnp.bfloat16)
    kh = kh.reshape(B * n_heads, Lk, Dh).astype(jnp.bfloat16)
    vh = vh.reshape(B * n_heads, Lk, Dh).astype(jnp.bfloat16)

    s = jnp.einsum('bqd,bkd->bqk', qh, kh,
                   preferred_element_type=jnp.float32) * scale
    if neg_bias is not None:
        s = (s.reshape(B, n_heads, Lq, Lk)
             + neg_bias[:, None, :, :]).reshape(B * n_heads, Lq, Lk)
    s = s - jnp.max(s, axis=-1, keepdims=True)
    e = jnp.exp(s)
    p = e * pl.reciprocal(jnp.sum(e, axis=-1, keepdims=True), approx=True)

    ctx = jnp.einsum('bqk,bkd->bqd', p.astype(jnp.bfloat16), vh,
                     preferred_element_type=jnp.float32)
    ctx = ctx.reshape(B, n_heads, Lq, Dh).transpose(0, 2, 1, 3).reshape(B * Lq, D)
    return jnp.dot(ctx.astype(jnp.bfloat16), o_w,
                   preferred_element_type=jnp.float32) + o_b


# ----------------------------------------------------------------------------
# BlockSpec helpers
# ----------------------------------------------------------------------------
def _const1(arr):            # constant input, 1-D grid
    zeros = (0,) * arr.ndim
    return pl.BlockSpec(arr.shape, lambda i: zeros)


def _const2(arr):            # constant input, 2-D grid
    zeros = (0,) * arr.ndim
    return pl.BlockSpec(arr.shape, lambda b, l: zeros)


def _batch_spec(arr):        # per-batch-tile input, grid=(B, nl)
    tail = (0,) * (arr.ndim - 1)
    return pl.BlockSpec((1,) + tuple(arr.shape[1:]), lambda b, l: (b,) + tail)


def _layer_spec(arr):        # per-layer stacked weight, grid=(B, nl)
    tail = (0,) * (arr.ndim - 1)
    return pl.BlockSpec((1,) + tuple(arr.shape[1:]), lambda b, l: (l,) + tail)


# ----------------------------------------------------------------------------
# Kernel 1: fused sketch-tile + concat + input projection
#   (LN(2*Din) -> Linear -> ReLU -> LN(D) -> Linear), grid over batch.
# ----------------------------------------------------------------------------
def _input_proj_kernel(sk_ref, vid_ref, g1, b1, w1s, w1v, c1, g2, b2, w2, c2,
                       o_ref):
    sk = sk_ref[0].astype(jnp.float32)        # [1, Din]   (L_sketch == 1)
    vid = vid_ref[0].astype(jnp.float32)      # [Lv, Din]
    Din = sk.shape[-1]
    Lv = vid.shape[0]
    two_d = 2.0 * Din

    # LayerNorm statistics over the conceptual concat [sketch | video] (2*Din)
    sk_sum = jnp.sum(sk, axis=-1, keepdims=True)
    sk_sq = jnp.sum(sk * sk, axis=-1, keepdims=True)
    row_sum = jnp.sum(vid, axis=-1, keepdims=True) + sk_sum     # [Lv, 1]
    row_sq = jnp.sum(vid * vid, axis=-1, keepdims=True) + sk_sq
    mu = row_sum / two_d
    var = row_sq / two_d - mu * mu
    inv = lax.rsqrt(var + 1e-5)

    g1v_ = g1[...]
    b1v_ = b1[...]
    g1s, g1vid = g1v_[:, :Din], g1v_[:, Din:]
    b1s, b1vid = b1v_[:, :Din], b1v_[:, Din:]
    sk_n = (sk - mu) * inv * g1s + b1s        # [Lv, Din] (sketch row broadcast)
    vid_n = (vid - mu) * inv * g1vid + b1vid  # [Lv, Din]

    h = (jnp.dot(sk_n.astype(jnp.bfloat16), w1s[...],
                 preferred_element_type=jnp.float32)
         + jnp.dot(vid_n.astype(jnp.bfloat16), w1v[...],
                   preferred_element_type=jnp.float32) + c1[...])
    h = jnp.maximum(h, 0.0)
    h = _ln(h, g2[...], b2[...])
    o = jnp.dot(h.astype(jnp.bfloat16), w2[...],
                preferred_element_type=jnp.float32) + c2[...]
    o_ref[...] = o.reshape(1, Lv, -1)


def input_proj(src_sketch, src_video, p):
    B, Ls, Din = src_sketch.shape
    assert Ls == 1, "concat_to_seq requires L_sketch == 1"
    Lv = src_video.shape[1]
    D = p["w2"].shape[1]
    consts = [p["g1"], p["b1"], p["w1s"], p["w1v"], p["c1"],
              p["g2"], p["b2"], p["w2"], p["c2"]]
    in_specs = ([pl.BlockSpec((1, Ls, Din), lambda b: (b, 0, 0)),
                 pl.BlockSpec((1, Lv, Din), lambda b: (b, 0, 0))]
                + [_const1(a) for a in consts])
    return pl.pallas_call(
        _input_proj_kernel,
        grid=(B,),
        in_specs=in_specs,
        out_specs=pl.BlockSpec((1, Lv, D), lambda b: (b, 0, 0)),
        out_shape=jax.ShapeDtypeStruct((B, Lv, D), jnp.float32),
        compiler_params=pltpu.CompilerParams(dimension_semantics=("parallel",)),
    )(src_sketch, src_video, *consts)


# ----------------------------------------------------------------------------
# Kernel 2: whole encoder stack, grid=(B, enc_layers), activation resident
# ----------------------------------------------------------------------------
_ENC_WEIGHT_NAMES = ("qk_w", "qk_b", "v_w", "v_b", "o_w", "o_b",
                     "n1_g", "n1_b", "f1_w", "f1_b", "f2_w", "f2_b",
                     "n2_g", "n2_b")


def _encoder_kernel(src_ref, pos_ref, pad_ref,
                    qk_w, qk_b, v_w, v_b, o_w, o_b,
                    n1_g, n1_b, f1_w, f1_b, f2_w, f2_b, n2_g, n2_b,
                    out_ref, *, n_heads):
    l = pl.program_id(1)

    @pl.when(l == 0)
    def _():
        out_ref[...] = src_ref[...]

    Bt, L, D = out_ref.shape
    scale = 1.0 / math.sqrt(D // n_heads)

    x = out_ref[...].astype(jnp.float32)      # layer input (resident in VMEM)
    pos = pos_ref[...].astype(jnp.float32)
    neg = pad_ref[...] * (-1e9)               # [Bt, 1, L] additive key bias

    # self-attention: packed Q|K projection on (x + pos), V projection on x
    xp = (x + pos).reshape(Bt * L, D).astype(jnp.bfloat16)
    qk = jnp.dot(xp, qk_w[0], preferred_element_type=jnp.float32) + qk_b[0]
    q = qk[:, :D].reshape(Bt, L, D)
    k = qk[:, D:].reshape(Bt, L, D)
    v = (jnp.dot(x.reshape(Bt * L, D).astype(jnp.bfloat16), v_w[0],
                 preferred_element_type=jnp.float32) + v_b[0]).reshape(Bt, L, D)
    sa = _mha(q, k, v, o_w[0], o_b[0], neg, n_heads, scale)        # [Bt*L, D]

    x1 = _ln(x.reshape(Bt * L, D) + sa, n1_g[0], n1_b[0])

    ff = jnp.maximum(jnp.dot(x1.astype(jnp.bfloat16), f1_w[0],
                             preferred_element_type=jnp.float32) + f1_b[0], 0.0)
    ff = jnp.dot(ff.astype(jnp.bfloat16), f2_w[0],
                 preferred_element_type=jnp.float32) + f2_b[0]
    x2 = _ln(x1 + ff, n2_g[0], n2_b[0])

    out_ref[...] = x2.reshape(Bt, L, D)


def run_encoder(src, pos, pad3, enc_p, n_heads):
    B, L, D = src.shape
    nl = enc_p["qk_w"].shape[0]
    data = [src, pos, pad3]
    weights = [enc_p[n] for n in _ENC_WEIGHT_NAMES]
    in_specs = [_batch_spec(a) for a in data] + [_layer_spec(a) for a in weights]
    return pl.pallas_call(
        functools.partial(_encoder_kernel, n_heads=n_heads),
        grid=(B, nl),
        in_specs=in_specs,
        out_specs=pl.BlockSpec((1, L, D), lambda b, l: (b, 0, 0)),
        out_shape=jax.ShapeDtypeStruct((B, L, D), jnp.float32),
        compiler_params=pltpu.CompilerParams(
            dimension_semantics=("parallel", "arbitrary"),
            vmem_limit_bytes=48 * 1024 * 1024),
    )(*(data + weights))


# ----------------------------------------------------------------------------
# Kernel 3: whole decoder stack, grid=(B, dec_layers), tgt in VMEM scratch,
#           (mem + pos) hoisted into a scratch at the first layer.
# ----------------------------------------------------------------------------
_DEC_WEIGHT_NAMES = ("sqk_w", "sqk_b", "sv_w", "sv_b", "so_w", "so_b",
                     "n1_g", "n1_b",
                     "cq_w", "cq_b", "ck_w", "ck_b", "cv_w", "cv_b",
                     "co_w", "co_b", "n2_g", "n2_b",
                     "f1_w", "f1_b", "f2_w", "f2_b", "n3_g", "n3_b")


def _decoder_kernel(mem_ref, pos_ref, qpos_ref, pad_ref, dn_g, dn_b,
                    sqk_w, sqk_b, sv_w, sv_b, so_w, so_b, n1_g, n1_b,
                    cq_w, cq_b, ck_w, ck_b, cv_w, cv_b, co_w, co_b, n2_g, n2_b,
                    f1_w, f1_b, f2_w, f2_b, n3_g, n3_b,
                    hs_ref, tgt_ref, mempos_ref, *, n_heads):
    l = pl.program_id(1)

    @pl.when(l == 0)
    def _():
        tgt_ref[...] = jnp.zeros_like(tgt_ref)
        mempos_ref[...] = mem_ref[...] + pos_ref[...]   # layer-invariant (K input)

    Bt, Q, D = tgt_ref.shape
    L = mem_ref.shape[1]
    scale = 1.0 / math.sqrt(D // n_heads)

    tgt = tgt_ref[...]
    qpos = qpos_ref[...]
    neg = pad_ref[...] * (-1e9)               # [Bt, 1, L]

    # ---- self-attention over queries (no padding mask) ----
    tq = (tgt + qpos).reshape(Bt * Q, D).astype(jnp.bfloat16)
    qk = jnp.dot(tq, sqk_w[0], preferred_element_type=jnp.float32) + sqk_b[0]
    q = qk[:, :D].reshape(Bt, Q, D)
    k = qk[:, D:].reshape(Bt, Q, D)
    v = (jnp.dot(tgt.reshape(Bt * Q, D).astype(jnp.bfloat16), sv_w[0],
                 preferred_element_type=jnp.float32) + sv_b[0]).reshape(Bt, Q, D)
    sa = _mha(q, k, v, so_w[0], so_b[0], None, n_heads, scale)
    x1 = _ln(tgt.reshape(Bt * Q, D) + sa, n1_g[0], n1_b[0])

    # ---- cross-attention: queries attend to encoder memory ----
    q = (jnp.dot((x1 + qpos.reshape(Bt * Q, D)).astype(jnp.bfloat16), cq_w[0],
                 preferred_element_type=jnp.float32) + cq_b[0]).reshape(Bt, Q, D)
    mp = mempos_ref[...].reshape(Bt * L, D).astype(jnp.bfloat16)
    k = (jnp.dot(mp, ck_w[0],
                 preferred_element_type=jnp.float32) + ck_b[0]).reshape(Bt, L, D)
    v = (jnp.dot(mem_ref[...].reshape(Bt * L, D).astype(jnp.bfloat16), cv_w[0],
                 preferred_element_type=jnp.float32) + cv_b[0]).reshape(Bt, L, D)
    ca = _mha(q, k, v, co_w[0], co_b[0], neg, n_heads, scale)
    x2 = _ln(x1 + ca, n2_g[0], n2_b[0])

    # ---- feed-forward ----
    ff = jnp.maximum(jnp.dot(x2.astype(jnp.bfloat16), f1_w[0],
                             preferred_element_type=jnp.float32) + f1_b[0], 0.0)
    ff = jnp.dot(ff.astype(jnp.bfloat16), f2_w[0],
                 preferred_element_type=jnp.float32) + f2_b[0]
    x3 = _ln(x2 + ff, n3_g[0], n3_b[0])

    tgt_ref[...] = x3.reshape(Bt, Q, D)
    # DETR return_intermediate: shared decoder LayerNorm on each layer output
    hs_ref[0] = _ln(x3, dn_g[...], dn_b[...]).reshape(Bt, Q, D)


def run_decoder(mem, pos, qpos, pad3, dec_p, dec_norm, n_heads):
    B, L, D = mem.shape
    Q = qpos.shape[1]
    nl = dec_p["sqk_w"].shape[0]
    data = [mem, pos, qpos, pad3]
    consts = [dec_norm["g"], dec_norm["b"]]
    weights = [dec_p[n] for n in _DEC_WEIGHT_NAMES]
    in_specs = ([_batch_spec(a) for a in data] + [_const2(a) for a in consts]
                + [_layer_spec(a) for a in weights])
    return pl.pallas_call(
        functools.partial(_decoder_kernel, n_heads=n_heads),
        grid=(B, nl),
        in_specs=in_specs,
        out_specs=pl.BlockSpec((1, 1, Q, D), lambda b, l: (l, b, 0, 0)),
        out_shape=jax.ShapeDtypeStruct((nl, B, Q, D), jnp.float32),
        scratch_shapes=[pltpu.VMEM((1, Q, D), jnp.float32),
                        pltpu.VMEM((1, L, D), jnp.float32)],
        compiler_params=pltpu.CompilerParams(
            dimension_semantics=("parallel", "arbitrary"),
            vmem_limit_bytes=48 * 1024 * 1024),
    )(*(data + consts + weights))


# ----------------------------------------------------------------------------
# Kernel 4: fused prediction heads (class linear folded into bbox-MLP layer 1)
# ----------------------------------------------------------------------------
def _heads_kernel(x_ref, cw1, cb1, w2, b2, w3, b3, logits_ref, boxes_ref,
                  *, num_classes):
    x = x_ref[...].astype(jnp.bfloat16)
    # one [D, C+D] MXU pass: columns [:C] = class logits, [C:] = bbox layer 1
    y = jnp.dot(x, cw1[...], preferred_element_type=jnp.float32) + cb1[...]
    logits_ref[...] = y[:, :num_classes]
    h = jnp.maximum(y[:, num_classes:], 0.0)
    h = jnp.maximum(jnp.dot(h.astype(jnp.bfloat16), w2[...],
                            preferred_element_type=jnp.float32) + b2[...], 0.0)
    boxes_ref[...] = jax.nn.sigmoid(
        jnp.dot(h.astype(jnp.bfloat16), w3[...],
                preferred_element_type=jnp.float32) + b3[...])


def run_heads(hs2, p, num_classes):
    N, D = hs2.shape
    rows = 512 if N % 512 == 0 else (256 if N % 256 == 0 else
                                     (8 if N % 8 == 0 else N))
    consts = [p["cw1"], p["cb1"], p["w2"], p["b2"], p["w3"], p["b3"]]
    return pl.pallas_call(
        functools.partial(_heads_kernel, num_classes=num_classes),
        grid=(N // rows,),
        in_specs=[pl.BlockSpec((rows, D), lambda i: (i, 0))]
                 + [_const1(a) for a in consts],
        out_specs=(pl.BlockSpec((rows, num_classes), lambda i: (i, 0)),
                   pl.BlockSpec((rows, 4), lambda i: (i, 0))),
        out_shape=(jax.ShapeDtypeStruct((N, num_classes), jnp.float32),
                   jax.ShapeDtypeStruct((N, 4), jnp.float32)),
        compiler_params=pltpu.CompilerParams(dimension_semantics=("parallel",)),
    )(hs2, *consts)
    # TODO(synk): at realistic sizes, emit one lane-padded combined output slab
    # (logits|boxes padded to a multiple of 128 lanes) for unmasked stores.


# ----------------------------------------------------------------------------
# Plain-JAX glue: sine positional embedding (cheap, not a hot path)
# ----------------------------------------------------------------------------
def sine_pos_embed(mask_valid, d_model):
    scale = 2.0 * math.pi
    x_embed = jnp.cumsum(mask_valid.astype(jnp.float32), axis=1)
    x_embed = x_embed / (x_embed[:, -1:] + 1e-6) * scale
    dim_t = jnp.arange(d_model, dtype=jnp.float32)
    dim_t = 10000.0 ** (2.0 * jnp.floor(dim_t / 2.0) / d_model)
    pos_x = x_embed[:, :, None] / dim_t
    pos = jnp.stack([jnp.sin(pos_x[:, :, 0::2]), jnp.cos(pos_x[:, :, 1::2])],
                    axis=3)
    return pos.reshape(pos.shape[0], pos.shape[1], -1)


# ----------------------------------------------------------------------------
# SVANet forward (mode == 'concat_to_seq')
# ----------------------------------------------------------------------------
def svanet_forward(params, src_sketch, src_sketch_mask, src_video,
                   src_video_mask, *, n_heads, num_classes=2, aux_loss=True):
    B, Lv, _ = src_video.shape

    # sketch tile + concat + input projection fused in kernel 1
    src = input_proj(src_sketch, src_video, params["input_proj"])  # [B, Lv, D]
    hidden = src.shape[-1]

    valid = src_video_mask.astype(jnp.float32)                # 1 = valid
    pos = sine_pos_embed(valid, hidden)                       # video_position_embed
    pad3 = (1.0 - valid)[:, None, :]                          # [B, 1, Lv], 1 = pad

    memory = run_encoder(src, pos, pad3, params["enc"], n_heads)

    Q = params["query_embed"].shape[0]
    qpos = jnp.broadcast_to(params["query_embed"][None, :, :], (B, Q, hidden))
    hs = run_decoder(memory, pos, qpos, pad3, params["dec"],
                     params["dec_norm"], n_heads)             # [nl, B, Q, D]

    # sketch_mem / video_mem / per-layer attention maps in the reference model
    # are computed but never used for the returned outputs -> dead work skipped.
    # TODO(synk): re-expose attention maps / memory slices if a consumer appears.

    nl = hs.shape[0]
    logits, boxes = run_heads(hs.reshape(nl * B * Q, hidden), params["heads"],
                              num_classes)
    outputs_class = logits.reshape(nl, B, Q, -1)
    outputs_coord = boxes.reshape(nl, B, Q, -1)

    out = {"pred_logits": outputs_class[-1], "pred_boxes": outputs_coord[-1]}
    if aux_loss:
        out["aux_outputs"] = [{"pred_logits": a, "pred_boxes": b}
                              for a, b in zip(outputs_class[:-1],
                                              outputs_coord[:-1])]
    return out


# ----------------------------------------------------------------------------
# Deterministic parameter initialization (stacked per-layer weights)
#   Large matmul weights are stored in bf16; biases / LN params in f32.
# ----------------------------------------------------------------------------
def init_params(key, input_dim, hidden, ffn_dim, enc_layers, dec_layers,
                num_queries, num_classes=2):
    keys = iter(jax.random.split(key, 1024))
    D, F = hidden, ffn_dim
    BF, FP = jnp.bfloat16, jnp.float32

    def u(shape, fan_in, dtype=FP):
        bound = 1.0 / math.sqrt(fan_in)
        return jax.random.uniform(next(keys), shape, FP, -bound, bound).astype(dtype)

    def enc_stack(nl):
        return {
            "qk_w": u((nl, D, 2 * D), D, BF), "qk_b": u((nl, 1, 2 * D), D),
            "v_w": u((nl, D, D), D, BF),      "v_b": u((nl, 1, D), D),
            "o_w": u((nl, D, D), D, BF),      "o_b": u((nl, 1, D), D),
            "n1_g": jnp.ones((nl, 1, D), FP), "n1_b": jnp.zeros((nl, 1, D), FP),
            "f1_w": u((nl, D, F), D, BF),     "f1_b": u((nl, 1, F), D),
            "f2_w": u((nl, F, D), F, BF),     "f2_b": u((nl, 1, D), F),
            "n2_g": jnp.ones((nl, 1, D), FP), "n2_b": jnp.zeros((nl, 1, D), FP),
        }

    def dec_stack(nl):
        return {
            "sqk_w": u((nl, D, 2 * D), D, BF), "sqk_b": u((nl, 1, 2 * D), D),
            "sv_w": u((nl, D, D), D, BF),      "sv_b": u((nl, 1, D), D),
            "so_w": u((nl, D, D), D, BF),      "so_b": u((nl, 1, D), D),
            "n1_g": jnp.ones((nl, 1, D), FP),  "n1_b": jnp.zeros((nl, 1, D), FP),
            "cq_w": u((nl, D, D), D, BF),      "cq_b": u((nl, 1, D), D),
            "ck_w": u((nl, D, D), D, BF),      "ck_b": u((nl, 1, D), D),
            "cv_w": u((nl, D, D), D, BF),      "cv_b": u((nl, 1, D), D),
            "co_w": u((nl, D, D), D, BF),      "co_b": u((nl, 1, D), D),
            "n2_g": jnp.ones((nl, 1, D), FP),  "n2_b": jnp.zeros((nl, 1, D), FP),
            "f1_w": u((nl, D, F), D, BF),      "f1_b": u((nl, 1, F), D),
            "f2_w": u((nl, F, D), F, BF),      "f2_b": u((nl, 1, D), F),
            "n3_g": jnp.ones((nl, 1, D), FP),  "n3_b": jnp.zeros((nl, 1, D), FP),
        }

    params = {
        "input_proj": {
            "g1": jnp.ones((1, 2 * input_dim), FP),
            "b1": jnp.zeros((1, 2 * input_dim), FP),
            "w1s": u((input_dim, D), 2 * input_dim, BF),   # sketch half of w1
            "w1v": u((input_dim, D), 2 * input_dim, BF),   # video half of w1
            "c1": u((1, D), 2 * input_dim),
            "g2": jnp.ones((1, D), FP),
            "b2": jnp.zeros((1, D), FP),
            "w2": u((D, D), D, BF),
            "c2": u((1, D), D),
        },
        "query_embed": jax.random.normal(next(keys), (num_queries, D), FP),
        "enc": enc_stack(enc_layers),
        "dec": dec_stack(dec_layers),
        "dec_norm": {"g": jnp.ones((1, D), FP), "b": jnp.zeros((1, D), FP)},
        "heads": {
            # class head fused into bbox-MLP layer 1: [D, num_classes + D]
            "cw1": u((D, num_classes + D), D, BF),
            "cb1": u((1, num_classes + D), D),
            "w2": u((D, D), D, BF), "b2": u((1, D), D),
            "w3": u((D, 4), D, BF), "b3": u((1, 4), D),
        },
    }
    return params


# ----------------------------------------------------------------------------
if __name__ == "__main__":
    B, Ls, Lv = 2, 1, 16
    input_dim, hidden, n_heads, ffn = 32, 32, 4, 64
    num_queries, enc_layers, dec_layers = 4, 2, 2
    num_classes = 2

    key = jax.random.PRNGKey(0)
    kp, k1, k2 = jax.random.split(key, 3)
    params = init_params(kp, input_dim, hidden, ffn, enc_layers, dec_layers,
                         num_queries, num_classes)

    src_sketch = jax.random.normal(k1, (B, Ls, input_dim), jnp.float32)
    src_video = jax.random.normal(k2, (B, Lv, input_dim), jnp.float32)
    src_sketch_mask = jnp.ones((B, Ls), jnp.float32)
    # mark the last 3 video positions as padding (mask == 0)
    src_video_mask = jnp.ones((B, Lv), jnp.float32).at[:, Lv - 3:].set(0.0)

    fwd = jax.jit(functools.partial(svanet_forward, n_heads=n_heads,
                                    num_classes=num_classes))
    out = fwd(params, src_sketch, src_sketch_mask, src_video, src_video_mask)
    jax.block_until_ready(out["pred_logits"])
    jax.block_until_ready(out["pred_boxes"])

    assert out["pred_logits"].shape == (B, num_queries, num_classes)
    assert out["pred_boxes"].shape == (B, num_queries, 4)
    assert len(out["aux_outputs"]) == dec_layers - 1
    assert bool(jnp.all((out["pred_boxes"] >= 0.0) & (out["pred_boxes"] <= 1.0)))
    assert bool(jnp.all(jnp.isfinite(out["pred_logits"])))
    # TODO(synk): nn.Dropout layers are identity (inference); the external
    # transformer / position-embedding submodules are DETR-style stand-ins.
    print("KERNEL_OK")
</pallas_src>

<mosaic_0001>
module attributes {stable_mosaic.version = 11 : i64} {
  func.func @_input_proj_kernel(%arg0: i32, %arg1: memref<1x1x32xf32, #tpu.memory_space<vmem>>, %arg2: memref<1x16x32xf32, #tpu.memory_space<vmem>>, %arg3: memref<1x64xf32, #tpu.memory_space<vmem>>, %arg4: memref<1x64xf32, #tpu.memory_space<vmem>>, %arg5: memref<32x32xbf16, #tpu.memory_space<vmem>>, %arg6: memref<32x32xbf16, #tpu.memory_space<vmem>>, %arg7: memref<1x32xf32, #tpu.memory_space<vmem>>, %arg8: memref<1x32xf32, #tpu.memory_space<vmem>>, %arg9: memref<1x32xf32, #tpu.memory_space<vmem>>, %arg10: memref<32x32xbf16, #tpu.memory_space<vmem>>, %arg11: memref<1x32xf32, #tpu.memory_space<vmem>>, %arg12: memref<1x16x32xf32, #tpu.memory_space<vmem>>) attributes {dimension_semantics = [#tpu.dimension_semantics<parallel>], iteration_bounds = array<i64: 2>, scalar_prefetch = 0 : i64, scratch_operands = 0 : i64, tpu.core_type = #tpu.core_type<tc>, window_params = [{transform_indices = @transform_0, window_bounds = array<i64: 1, 1, 32>}, {transform_indices = @transform_1, window_bounds = array<i64: 1, 16, 32>}, {pipeline_mode = #tpu.pipeline_mode<synchronous>, transform_indices = @transform_2, window_bounds = array<i64: 1, 64>}, {pipeline_mode = #tpu.pipeline_mode<synchronous>, transform_indices = @transform_3, window_bounds = array<i64: 1, 64>}, {pipeline_mode = #tpu.pipeline_mode<synchronous>, transform_indices = @transform_4, window_bounds = array<i64: 32, 32>}, {pipeline_mode = #tpu.pipeline_mode<synchronous>, transform_indices = @transform_5, window_bounds = array<i64: 32, 32>}, {pipeline_mode = #tpu.pipeline_mode<synchronous>, transform_indices = @transform_6, window_bounds = array<i64: 1, 32>}, {pipeline_mode = #tpu.pipeline_mode<synchronous>, transform_indices = @transform_7, window_bounds = array<i64: 1, 32>}, {pipeline_mode = #tpu.pipeline_mode<synchronous>, transform_indices = @transform_8, window_bounds = array<i64: 1, 32>}, {pipeline_mode = #tpu.pipeline_mode<synchronous>, transform_indices = @transform_9, window_bounds = array<i64: 32, 32>}, {pipeline_mode = #tpu.pipeline_mode<synchronous>, transform_indices = @transform_10, window_bounds = array<i64: 1, 32>}, {transform_indices = @transform_11, window_bounds = array<i64: 1, 16, 32>}]} {
    %c0 = arith.constant 0 : index
    %c0_0 = arith.constant 0 : index
    %c0_1 = arith.constant 0 : index
    %0 = vector.load %arg1[%c0, %c0_0, %c0_1] : memref<1x1x32xf32, #tpu.memory_space<vmem>>, vector<1x1x32xf32>
    %1 = vector.shape_cast %0 : vector<1x1x32xf32> to vector<1x32xf32>
    %c0_2 = arith.constant 0 : index
    %c0_3 = arith.constant 0 : index
    %c0_4 = arith.constant 0 : index
    %2 = vector.load %arg2[%c0_2, %c0_3, %c0_4] : memref<1x16x32xf32, #tpu.memory_space<vmem>>, vector<1x16x32xf32>
    %3 = vector.shape_cast %2 : vector<1x16x32xf32> to vector<16x32xf32>
    %cst = arith.constant dense<0.000000e+00> : vector<1xf32>
    %4 = vector.multi_reduction <add>, %1, %cst [1] : vector<1x32xf32> to vector<1xf32>
    %5 = vector.shape_cast %4 : vector<1xf32> to vector<1x1xf32>
    %6 = arith.mulf %1, %1 : vector<1x32xf32>
    %cst_5 = arith.constant dense<0.000000e+00> : vector<1xf32>
    %7 = vector.multi_reduction <add>, %6, %cst_5 [1] : vector<1x32xf32> to vector<1xf32>
    %8 = vector.shape_cast %7 : vector<1xf32> to vector<1x1xf32>
    %cst_6 = arith.constant dense<0.000000e+00> : vector<16xf32>
    %9 = vector.multi_reduction <add>, %3, %cst_6 [1] : vector<16x32xf32> to vector<16xf32>
    %10 = vector.shape_cast %9 : vector<16xf32> to vector<16x1xf32>
    %11 = vector.broadcast %5 : vector<1x1xf32> to vector<16x1xf32>
    %12 = arith.addf %10, %11 : vector<16x1xf32>
    %13 = arith.mulf %3, %3 : vector<16x32xf32>
    %cst_7 = arith.constant dense<0.000000e+00> : vector<16xf32>
    %14 = vector.multi_reduction <add>, %13, %cst_7 [1] : vector<16x32xf32> to vector<16xf32>
    %15 = vector.shape_cast %14 : vector<16xf32> to vector<16x1xf32>
    %16 = vector.broadcast %8 : vector<1x1xf32> to vector<16x1xf32>
    %17 = arith.addf %15, %16 : vector<16x1xf32>
    %cst_8 = arith.constant 6.400000e+01 : f32
    %18 = vector.broadcast %cst_8 : f32 to vector<16x1xf32>
    %19 = arith.divf %12, %18 : vector<16x1xf32>
    %cst_9 = arith.constant 6.400000e+01 : f32
    %20 = vector.broadcast %cst_9 : f32 to vector<16x1xf32>
    %21 = arith.divf %17, %20 : vector<16x1xf32>
    %22 = arith.mulf %19, %19 : vector<16x1xf32>
    %23 = arith.subf %21, %22 : vector<16x1xf32>
    %cst_10 = arith.constant 9.99999974E-6 : f32
    %24 = vector.broadcast %cst_10 : f32 to vector<16x1xf32>
    %25 = arith.addf %23, %24 : vector<16x1xf32>
    %26 = math.rsqrt %25 : vector<16x1xf32>
    %c0_11 = arith.constant 0 : index
    %c0_12 = arith.constant 0 : index
    %27 = vector.load %arg3[%c0_11, %c0_12] : memref<1x64xf32, #tpu.memory_space<vmem>>, vector<1x64xf32>
    %c0_13 = arith.constant 0 : index
    %c0_14 = arith.constant 0 : index
    %28 = vector.load %arg4[%c0_13, %c0_14] : memref<1x64xf32, #tpu.memory_space<vmem>>, vector<1x64xf32>
    %29 = vector.extract_strided_slice %27 {offsets = [0, 0], sizes = [1, 32], strides = [1, 1]} : vector<1x64xf32> to vector<1x32xf32>
    %30 = vector.extract_strided_slice %27 {offsets = [0, 32], sizes = [1, 32], strides = [1, 1]} : vector<1x64xf32> to vector<1x32xf32>
    %31 = vector.extract_strided_slice %28 {offsets = [0, 0], sizes = [1, 32], strides = [1, 1]} : vector<1x64xf32> to vector<1x32xf32>
    %32 = vector.extract_strided_slice %28 {offsets = [0, 32], sizes = [1, 32], strides = [1, 1]} : vector<1x64xf32> to vector<1x32xf32>
    %33 = vector.broadcast %1 : vector<1x32xf32> to vector<16x32xf32>
    %34 = vector.broadcast %19 : vector<16x1xf32> to vector<16x32xf32>
    %35 = arith.subf %33, %34 : vector<16x32xf32>
    %36 = vector.broadcast %26 : vector<16x1xf32> to vector<16x32xf32>
    %37 = arith.mulf %35, %36 : vector<16x32xf32>
    %38 = vector.broadcast %29 : vector<1x32xf32> to vector<16x32xf32>
    %39 = arith.mulf %37, %38 : vector<16x32xf32>
    %40 = vector.broadcast %31 : vector<1x32xf32> to vector<16x32xf32>
    %41 = arith.addf %39, %40 : vector<16x32xf32>
    %42 = vector.broadcast %19 : vector<16x1xf32> to vector<16x32xf32>
    %43 = arith.subf %3, %42 : vector<16x32xf32>
    %44 = vector.broadcast %26 : vector<16x1xf32> to vector<16x32xf32>
    %45 = arith.mulf %43, %44 : vector<16x32xf32>
    %46 = vector.broadcast %30 : vector<1x32xf32> to vector<16x32xf32>
    %47 = arith.mulf %45, %46 : vector<16x32xf32>
    %48 = vector.broadcast %32 : vector<1x32xf32> to vector<16x32xf32>
    %49 = arith.addf %47, %48 : vector<16x32xf32>
    %50 = arith.truncf %41 : vector<16x32xf32> to vector<16x32xbf16>
    %c0_15 = arith.constant 0 : index
    %c0_16 = arith.constant 0 : index
    %51 = vector.load %arg5[%c0_15, %c0_16] : memref<32x32xbf16, #tpu.memory_space<vmem>>, vector<32x32xbf16>
    %cst_17 = arith.constant dense<0.000000e+00> : vector<16x32xf32>
    %52 = tpu.matmul %50, %51, %cst_17 {dimension_numbers = #tpu.dot_dimension_numbers<[1], [0], [0], [1], [0, 0, 1, 1], [], []>} : vector<16x32xbf16>, vector<32x32xbf16>, vector<16x32xf32> -> vector<16x32xf32>
    %53 = arith.truncf %49 : vector<16x32xf32> to vector<16x32xbf16>
    %c0_18 = arith.constant 0 : index
    %c0_19 = arith.constant 0 : index
    %54 = vector.load %arg6[%c0_18, %c0_19] : memref<32x32xbf16, #tpu.memory_space<vmem>>, vector<32x32xbf16>
    %cst_20 = arith.constant dense<0.000000e+00> : vector<16x32xf32>
    %55 = tpu.matmul %53, %54, %cst_20 {dimension_numbers = #tpu.dot_dimension_numbers<[1], [0], [0], [1], [0, 0, 1, 1], [], []>} : vector<16x32xbf16>, vector<32x32xbf16>, vector<16x32xf32> -> vector<16x32xf32>
    %56 = arith.addf %52, %55 : vector<16x32xf32>
    %c0_21 = arith.constant 0 : index
    %c0_22 = arith.constant 0 : index
    %57 = vector.load %arg7[%c0_21, %c0_22] : memref<1x32xf32, #tpu.memory_space<vmem>>, vector<1x32xf32>
    %58 = vector.broadcast %57 : vector<1x32xf32> to vector<16x32xf32>
    %59 = arith.addf %56, %58 : vector<16x32xf32>
    %cst_23 = arith.constant 0.000000e+00 : f32
    %60 = vector.broadcast %cst_23 : f32 to vector<16x32xf32>
    %61 = arith.maximumf %59, %60 : vector<16x32xf32>
    %c0_24 = arith.constant 0 : index
    %c0_25 = arith.constant 0 : index
    %62 = vector.load %arg8[%c0_24, %c0_25] : memref<1x32xf32, #tpu.memory_space<vmem>>, vector<1x32xf32>
    %c0_26 = arith.constant 0 : index
    %c0_27 = arith.constant 0 : index
    %63 = vector.load %arg9[%c0_26, %c0_27] : memref<1x32xf32, #tpu.memory_space<vmem>>, vector<1x32xf32>
    %cst_28 = arith.constant dense<0.000000e+00> : vector<16xf32>
    %64 = vector.multi_reduction <add>, %61, %cst_28 [1] : vector<16x32xf32> to vector<16xf32>
    %65 = vector.shape_cast %64 : vector<16xf32> to vector<16x1xf32>
    %cst_29 = arith.constant 3.200000e+01 : f32
    %66 = vector.broadcast %cst_29 : f32 to vector<16x1xf32>
    %67 = arith.divf %65, %66 : vector<16x1xf32>
    %68 = vector.broadcast %67 : vector<16x1xf32> to vector<16x32xf32>
    %69 = arith.subf %61, %68 : vector<16x32xf32>
    %70 = arith.mulf %69, %69 : vector<16x32xf32>
    %cst_30 = arith.constant dense<0.000000e+00> : vector<16xf32>
    %71 = vector.multi_reduction <add>, %70, %cst_30 [1] : vector<16x32xf32> to vector<16xf32>
    %72 = vector.shape_cast %71 : vector<16xf32> to vector<16x1xf32>
    %cst_31 = arith.constant 3.200000e+01 : f32
    %73 = vector.broadcast %cst_31 : f32 to vector<16x1xf32>
    %74 = arith.divf %72, %73 : vector<16x1xf32>
    %75 = vector.broadcast %67 : vector<16x1xf32> to vector<16x32xf32>
    %76 = arith.subf %61, %75 : vector<16x32xf32>
    %cst_32 = arith.constant 9.99999974E-6 : f32
    %77 = vector.broadcast %cst_32 : f32 to vector<16x1xf32>
    %78 = arith.addf %74, %77 : vector<16x1xf32>
    %79 = math.rsqrt %78 : vector<16x1xf32>
    %80 = vector.broadcast %79 : vector<16x1xf32> to vector<16x32xf32>
    %81 = arith.mulf %76, %80 : vector<16x32xf32>
    %82 = vector.broadcast %62 : vector<1x32xf32> to vector<16x32xf32>
    %83 = arith.mulf %81, %82 : vector<16x32xf32>
    %84 = vector.broadcast %63 : vector<1x32xf32> to vector<16x32xf32>
    %85 = arith.addf %83, %84 : vector<16x32xf32>
    %86 = arith.truncf %85 : vector<16x32xf32> to vector<16x32xbf16>
    %c0_33 = arith.constant 0 : index
    %c0_34 = arith.constant 0 : index
    %87 = vector.load %arg10[%c0_33, %c0_34] : memref<32x32xbf16, #tpu.memory_space<vmem>>, vector<32x32xbf16>
    %cst_35 = arith.constant dense<0.000000e+00> : vector<16x32xf32>
    %88 = tpu.matmul %86, %87, %cst_35 {dimension_numbers = #tpu.dot_dimension_numbers<[1], [0], [0], [1], [0, 0, 1, 1], [], []>} : vector<16x32xbf16>, vector<32x32xbf16>, vector<16x32xf32> -> vector<16x32xf32>
    %c0_36 = arith.constant 0 : index
    %c0_37 = arith.constant 0 : index
    %89 = vector.load %arg11[%c0_36, %c0_37] : memref<1x32xf32, #tpu.memory_space<vmem>>, vector<1x32xf32>
    %90 = vector.broadcast %89 : vector<1x32xf32> to vector<16x32xf32>
    %91 = arith.addf %88, %90 : vector<16x32xf32>
    %92 = vector.shape_cast %91 : vector<16x32xf32> to vector<1x16x32xf32>
    %c0_38 = arith.constant 0 : index
    %c0_39 = arith.constant 0 : index
    %c0_40 = arith.constant 0 : index
    %93 = vector.load %arg12[%c0_38, %c0_39, %c0_40] : memref<1x16x32xf32, #tpu.memory_space<vmem>>, vector<1x16x32xf32>
    tpu.vector_store %arg12[%c0_38, %c0_39, %c0_40], %92 {strides = array<i32>} : memref<1x16x32xf32, #tpu.memory_space<vmem>>, vector<1x16x32xf32>,
    return
  }
  func.func @transform_0(%arg0: i32) -> (i32, i32, i32) {
    %c0_i32 = arith.constant 0 : i32
    %c0_i32_0 = arith.constant 0 : i32
    %c0_i32_1 = arith.constant 0 : i32
    return %arg0, %c0_i32, %c0_i32_0 : i32, i32, i32
  }
  func.func @transform_1(%arg0: i32) -> (i32, i32, i32) {
    %c0_i32 = arith.constant 0 : i32
    %c0_i32_0 = arith.constant 0 : i32
    %c0_i32_1 = arith.constant 0 : i32
    return %arg0, %c0_i32, %c0_i32_0 : i32, i32, i32
  }
  func.func @transform_2(%arg0: i32) -> (i32, i32) {
    %c0_i32 = arith.constant 0 : i32
    %c0_i32_0 = arith.constant 0 : i32
    %c0_i32_1 = arith.constant 0 : i32
    return %c0_i32, %c0_i32_0 : i32, i32
  }
  func.func @transform_3(%arg0: i32) -> (i32, i32) {
    %c0_i32 = arith.constant 0 : i32
    %c0_i32_0 = arith.constant 0 : i32
    %c0_i32_1 = arith.constant 0 : i32
    return %c0_i32, %c0_i32_0 : i32, i32
  }
  func.func @transform_4(%arg0: i32) -> (i32, i32) {
    %c0_i32 = arith.constant 0 : i32
    %c0_i32_0 = arith.constant 0 : i32
    %c0_i32_1 = arith.constant 0 : i32
    return %c0_i32, %c0_i32_0 : i32, i32
  }
  func.func @transform_5(%arg0: i32) -> (i32, i32) {
    %c0_i32 = arith.constant 0 : i32
    %c0_i32_0 = arith.constant 0 : i32
    %c0_i32_1 = arith.constant 0 : i32
    return %c0_i32, %c0_i32_0 : i32, i32
  }
  func.func @transform_6(%arg0: i32) -> (i32, i32) {
    %c0_i32 = arith.constant 0 : i32
    %c0_i32_0 = arith.constant 0 : i32
    %c0_i32_1 = arith.constant 0 : i32
    return %c0_i32, %c0_i32_0 : i32, i32
  }
  func.func @transform_7(%arg0: i32) -> (i32, i32) {
    %c0_i32 = arith.constant 0 : i32
    %c0_i32_0 = arith.constant 0 : i32
    %c0_i32_1 = arith.constant 0 : i32
    return %c0_i32, %c0_i32_0 : i32, i32
  }
  func.func @transform_8(%arg0: i32) -> (i32, i32) {
    %c0_i32 = arith.constant 0 : i32
    %c0_i32_0 = arith.constant 0 : i32
    %c0_i32_1 = arith.constant 0 : i32
    return %c0_i32, %c0_i32_0 : i32, i32
  }
  func.func @transform_9(%arg0: i32) -> (i32, i32) {
    %c0_i32 = arith.constant 0 : i32
    %c0_i32_0 = arith.constant 0 : i32
    %c0_i32_1 = arith.constant 0 : i32
    return %c0_i32, %c0_i32_0 : i32, i32
  }
  func.func @transform_10(%arg0: i32) -> (i32, i32) {
    %c0_i32 = arith.constant 0 : i32
    %c0_i32_0 = arith.constant 0 : i32
    %c0_i32_1 = arith.constant 0 : i32
    return %c0_i32, %c0_i32_0 : i32, i32
  }
  func.func @transform_11(%arg0: i32) -> (i32, i32, i32) {
    %c0_i32 = arith.constant 0 : i32
    %c0_i32_0 = arith.constant 0 : i32
    %c0_i32_1 = arith.constant 0 : i32
    return %arg0, %c0_i32, %c0_i32_0 : i32, i32, i32
  }
}

module attributes {stable_mosaic.version = 11 : i64} {
  func.func @_encoder_kernel(%arg0: i32, %arg1: i32, %arg2: memref<1x16x32xf32, #tpu.memory_space<vmem>>, %arg3: memref<1x16x32xf32, #tpu.memory_space<vmem>>, %arg4: memref<1x1x16xf32, #tpu.memory_space<vmem>>, %arg5: memref<1x32x64xbf16, #tpu.memory_space<vmem>>, %arg6: memref<1x1x64xf32, #tpu.memory_space<vmem>>, %arg7: memref<1x32x32xbf16, #tpu.memory_space<vmem>>, %arg8: memref<1x1x32xf32, #tpu.memory_space<vmem>>, %arg9: memref<1x32x32xbf16, #tpu.memory_space<vmem>>, %arg10: memref<1x1x32xf32, #tpu.memory_space<vmem>>, %arg11: memref<1x1x32xf32, #tpu.memory_space<vmem>>, %arg12: memref<1x1x32xf32, #tpu.memory_space<vmem>>, %arg13: memref<1x32x64xbf16, #tpu.memory_space<vmem>>, %arg14: memref<1x1x64xf32, #tpu.memory_space<vmem>>, %arg15: memref<1x64x32xbf16, #tpu.memory_space<vmem>>, %arg16: memref<1x1x32xf32, #tpu.memory_space<vmem>>, %arg17: memref<1x1x32xf32, #tpu.memory_space<vmem>>, %arg18: memref<1x1x32xf32, #tpu.memory_space<vmem>>, %arg19: memref<1x16x32xf32, #tpu.memory_space<vmem>>) attributes {dimension_semantics = [#tpu.dimension_semantics<parallel>, #tpu.dimension_semantics<arbitrary>], iteration_bounds = array<i64: 2, 2>, scalar_prefetch = 0 : i64, scratch_operands = 0 : i64, tpu.core_type = #tpu.core_type<tc>, window_params = [{transform_indices = @transform_0, window_bounds = array<i64: 1, 16, 32>}, {transform_indices = @transform_1, window_bounds = array<i64: 1, 16, 32>}, {transform_indices = @transform_2, window_bounds = array<i64: 1, 1, 16>}, {transform_indices = @transform_3, window_bounds = array<i64: 1, 32, 64>}, {transform_indices = @transform_4, window_bounds = array<i64: 1, 1, 64>}, {transform_indices = @transform_5, window_bounds = array<i64: 1, 32, 32>}, {transform_indices = @transform_6, window_bounds = array<i64: 1, 1, 32>}, {transform_indices = @transform_7, window_bounds = array<i64: 1, 32, 32>}, {transform_indices = @transform_8, window_bounds = array<i64: 1, 1, 32>}, {transform_indices = @transform_9, window_bounds = array<i64: 1, 1, 32>}, {transform_indices = @transform_10, window_bounds = array<i64: 1, 1, 32>}, {transform_indices = @transform_11, window_bounds = array<i64: 1, 32, 64>}, {transform_indices = @transform_12, window_bounds = array<i64: 1, 1, 64>}, {transform_indices = @transform_13, window_bounds = array<i64: 1, 64, 32>}, {transform_indices = @transform_14, window_bounds = array<i64: 1, 1, 32>}, {transform_indices = @transform_15, window_bounds = array<i64: 1, 1, 32>}, {transform_indices = @transform_16, window_bounds = array<i64: 1, 1, 32>}, {transform_indices = @transform_17, window_bounds = array<i64: 1, 16, 32>}]} {
    %c0_i32 = arith.constant 0 : i32
    %0 = arith.cmpi eq, %arg1, %c0_i32 : i32
    %1 = arith.extui %0 : i1 to i32
    %c0_i32_0 = arith.constant 0 : i32
    %2 = arith.cmpi ne, %1, %c0_i32_0 : i32
    scf.if %2 {
      %c0_75 = arith.constant 0 : index
      %c0_76 = arith.constant 0 : index
      %c0_77 = arith.constant 0 : index
      %150 = vector.load %arg2[%c0_75, %c0_76, %c0_77] : memref<1x16x32xf32, #tpu.memory_space<vmem>>, vector<1x16x32xf32>
      %c0_78 = arith.constant 0 : index
      %c0_79 = arith.constant 0 : index
      %c0_80 = arith.constant 0 : index
      %151 = vector.load %arg19[%c0_78, %c0_79, %c0_80] : memref<1x16x32xf32, #tpu.memory_space<vmem>>, vector<1x16x32xf32>
      tpu.vector_store %arg19[%c0_78, %c0_79, %c0_80], %150 {strides = array<i32>} : memref<1x16x32xf32, #tpu.memory_space<vmem>>, vector<1x16x32xf32>,
    } else {
    }
    %c0 = arith.constant 0 : index
    %c0_1 = arith.constant 0 : index
    %c0_2 = arith.constant 0 : index
    %3 = vector.load %arg19[%c0, %c0_1, %c0_2] : memref<1x16x32xf32, #tpu.memory_space<vmem>>, vector<1x16x32xf32>
    %c0_3 = arith.constant 0 : index
    %c0_4 = arith.constant 0 : index
    %c0_5 = arith.constant 0 : index
    %4 = vector.load %arg3[%c0_3, %c0_4, %c0_5] : memref<1x16x32xf32, #tpu.memory_space<vmem>>, vector<1x16x32xf32>
    %c0_6 = arith.constant 0 : index
    %c0_7 = arith.constant 0 : index
    %c0_8 = arith.constant 0 : index
    %5 = vector.load %arg4[%c0_6, %c0_7, %c0_8] : memref<1x1x16xf32, #tpu.memory_space<vmem>>, vector<1x1x16xf32>
    %cst = arith.constant -1.000000e+09 : f32
    %6 = vector.broadcast %cst : f32 to vector<1x1x16xf32>
    %7 = arith.mulf %5, %6 : vector<1x1x16xf32>
    %8 = arith.addf %3, %4 : vector<1x16x32xf32>
    %9 = vector.shape_cast %8 : vector<1x16x32xf32> to vector<16x32xf32>
    %10 = arith.truncf %9 : vector<16x32xf32> to vector<16x32xbf16>
    %c0_9 = arith.constant 0 : index
    %c0_10 = arith.constant 0 : index
    %c0_11 = arith.constant 0 : index
    %11 = vector.load %arg5[%c0_9, %c0_10, %c0_11] : memref<1x32x64xbf16, #tpu.memory_space<vmem>>, vector<1x32x64xbf16>
    %12 = vector.shape_cast %11 : vector<1x32x64xbf16> to vector<32x64xbf16>
    %cst_12 = arith.constant dense<0.000000e+00> : vector<16x64xf32>
    %13 = tpu.matmul %10, %12, %cst_12 {dimension_numbers = #tpu.dot_dimension_numbers<[1], [0], [0], [1], [0, 0, 1, 1], [], []>} : vector<16x32xbf16>, vector<32x64xbf16>, vector<16x64xf32> -> vector<16x64xf32>
    %c0_13 = arith.constant 0 : index
    %c0_14 = arith.constant 0 : index
    %c0_15 = arith.constant 0 : index
    %14 = vector.load %arg6[%c0_13, %c0_14, %c0_15] : memref<1x1x64xf32, #tpu.memory_space<vmem>>, vector<1x1x64xf32>
    %15 = vector.shape_cast %14 : vector<1x1x64xf32> to vector<1x64xf32>
    %16 = vector.broadcast %15 : vector<1x64xf32> to vector<16x64xf32>
    %17 = arith.addf %13, %16 : vector<16x64xf32>
    %18 = vector.extract_strided_slice %17 {offsets = [0, 0], sizes = [16, 32], strides = [1, 1]} : vector<16x64xf32> to vector<16x32xf32>
    %19 = vector.shape_cast %18 : vector<16x32xf32> to vector<1x16x32xf32>
    %20 = vector.extract_strided_slice %17 {offsets = [0, 32], sizes = [16, 32], strides = [1, 1]} : vector<16x64xf32> to vector<16x32xf32>
    %21 = vector.shape_cast %20 : vector<16x32xf32> to vector<1x16x32xf32>
    %22 = vector.shape_cast %3 : vector<1x16x32xf32> to vector<16x32xf32>
    %23 = arith.truncf %22 : vector<16x32xf32> to vector<16x32xbf16>
    %c0_16 = arith.constant 0 : index
    %c0_17 = arith.constant 0 : index
    %c0_18 = arith.constant 0 : index
    %24 = vector.load %arg7[%c0_16, %c0_17, %c0_18] : memref<1x32x32xbf16, #tpu.memory_space<vmem>>, vector<1x32x32xbf16>
    %25 = vector.shape_cast %24 : vector<1x32x32xbf16> to vector<32x32xbf16>
    %cst_19 = arith.constant dense<0.000000e+00> : vector<16x32xf32>
    %26 = tpu.matmul %23, %25, %cst_19 {dimension_numbers = #tpu.dot_dimension_numbers<[1], [0], [0], [1], [0, 0, 1, 1], [], []>} : vector<16x32xbf16>, vector<32x32xbf16>, vector<16x32xf32> -> vector<16x32xf32>
    %c0_20 = arith.constant 0 : index
    %c0_21 = arith.constant 0 : index
    %c0_22 = arith.constant 0 : index
    %27 = vector.load %arg8[%c0_20, %c0_21, %c0_22] : memref<1x1x32xf32, #tpu.memory_space<vmem>>, vector<1x1x32xf32>
    %28 = vector.shape_cast %27 : vector<1x1x32xf32> to vector<1x32xf32>
    %29 = vector.broadcast %28 : vector<1x32xf32> to vector<16x32xf32>
    %30 = arith.addf %26, %29 : vector<16x32xf32>
    %31 = vector.shape_cast %30 : vector<16x32xf32> to vector<1x16x32xf32>
    %c0_23 = arith.constant 0 : index
    %c0_24 = arith.constant 0 : index
    %c0_25 = arith.constant 0 : index
    %32 = vector.load %arg9[%c0_23, %c0_24, %c0_25] : memref<1x32x32xbf16, #tpu.memory_space<vmem>>, vector<1x32x32xbf16>
    %33 = vector.shape_cast %32 : vector<1x32x32xbf16> to vector<32x32xbf16>
    %c0_26 = arith.constant 0 : index
    %c0_27 = arith.constant 0 : index
    %c0_28 = arith.constant 0 : index
    %34 = vector.load %arg10[%c0_26, %c0_27, %c0_28] : memref<1x1x32xf32, #tpu.memory_space<vmem>>, vector<1x1x32xf32>
    %35 = vector.shape_cast %34 : vector<1x1x32xf32> to vector<1x32xf32>
    %36 = vector.shape_cast %19 : vector<1x16x32xf32> to vector<1x16x4x8xf32>
    %37 = tpu.transpose %36, [0, 2, 1, 3] : vector<1x16x4x8xf32> -> vector<1x4x16x8xf32>
    %38 = vector.shape_cast %21 : vector<1x16x32xf32> to vector<1x16x4x8xf32>
    %39 = tpu.transpose %38, [0, 2, 1, 3] : vector<1x16x4x8xf32> -> vector<1x4x16x8xf32>
    %40 = vector.shape_cast %31 : vector<1x16x32xf32> to vector<1x16x4x8xf32>
    %41 = tpu.transpose %40, [0, 2, 1, 3] : vector<1x16x4x8xf32> -> vector<1x4x16x8xf32>
    %42 = vector.shape_cast %37 : vector<1x4x16x8xf32> to vector<4x16x8xf32>
    %43 = arith.truncf %42 : vector<4x16x8xf32> to vector<4x16x8xbf16>
    %44 = vector.shape_cast %39 : vector<1x4x16x8xf32> to vector<4x16x8xf32>
    %45 = arith.truncf %44 : vector<4x16x8xf32> to vector<4x16x8xbf16>
    %46 = vector.shape_cast %41 : vector<1x4x16x8xf32> to vector<4x16x8xf32>
    %47 = arith.truncf %46 : vector<4x16x8xf32> to vector<4x16x8xbf16>
    "tpu.trace_start"() <{level = 10 : i32, message = "bqd,bkd->bqk"}> : () -> ()
    %cst_29 = arith.constant dense<0.000000e+00> : vector<4x16x16xf32>
    %48 = tpu.matmul %43, %45, %cst_29 {dimension_numbers = #tpu.dot_dimension_numbers<[2], [2], [1], [1], [0, 0, 0, 1, 1, 1], [0], [0]>} : vector<4x16x8xbf16>, vector<4x16x8xbf16>, vector<4x16x16xf32> -> vector<4x16x16xf32>
    "tpu.trace_stop"() : () -> ()
    %cst_30 = arith.constant 0.353553385 : f32
    %49 = vector.broadcast %cst_30 : f32 to vector<4x16x16xf32>
    %50 = arith.mulf %48, %49 : vector<4x16x16xf32>
    %51 = vector.shape_cast %50 : vector<4x16x16xf32> to vector<1x4x16x16xf32>
    %52 = vector.shape_cast %7 : vector<1x1x16xf32> to vector<1x1x1x16xf32>
    %53 = vector.broadcast %52 : vector<1x1x1x16xf32> to vector<1x4x16x16xf32>
    %54 = arith.addf %51, %53 : vector<1x4x16x16xf32>
    %55 = vector.shape_cast %54 : vector<1x4x16x16xf32> to vector<4x16x16xf32>
    %cst_31 = arith.constant dense<0xFF800000> : vector<4x16xf32>
    %56 = vector.multi_reduction <maximumf>, %55, %cst_31 [2] : vector<4x16x16xf32> to vector<4x16xf32>
    %57 = vector.shape_cast %56 : vector<4x16xf32> to vector<4x16x1xf32>
    %58 = vector.broadcast %57 : vector<4x16x1xf32> to vector<4x16x16xf32>
    %59 = arith.subf %55, %58 : vector<4x16x16xf32>
    %60 = math.exp %59 : vector<4x16x16xf32>
    %cst_32 = arith.constant dense<0.000000e+00> : vector<4x16xf32>
    %61 = vector.multi_reduction <add>, %60, %cst_32 [2] : vector<4x16x16xf32> to vector<4x16xf32>
    %62 = vector.shape_cast %61 : vector<4x16xf32> to vector<4x16x1xf32>
    %63 = tpu.reciprocal %62 {approx = true} : vector<4x16x1xf32> -> vector<4x16x1xf32>
    %64 = vector.broadcast %63 : vector<4x16x1xf32> to vector<4x16x16xf32>
    %65 = arith.mulf %60, %64 : vector<4x16x16xf32>
    %66 = arith.truncf %65 : vector<4x16x16xf32> to vector<4x16x16xbf16>
    "tpu.trace_start"() <{level = 10 : i32, message = "bqk,bkd->bqd"}> : () -> ()
    %cst_33 = arith.constant dense<0.000000e+00> : vector<4x16x8xf32>
    %67 = tpu.matmul %66, %47, %cst_33 {dimension_numbers = #tpu.dot_dimension_numbers<[2], [1], [1], [2], [0, 0, 0, 1, 1, 2], [0], [0]>} : vector<4x16x16xbf16>, vector<4x16x8xbf16>, vector<4x16x8xf32> -> vector<4x16x8xf32>
    "tpu.trace_stop"() : () -> ()
    %68 = vector.shape_cast %67 : vector<4x16x8xf32> to vector<1x4x16x8xf32>
    %69 = tpu.transpose %68, [0, 2, 1, 3] : vector<1x4x16x8xf32> -> vector<1x16x4x8xf32>
    %70 = vector.shape_cast %69 : vector<1x16x4x8xf32> to vector<16x32xf32>
    %71 = arith.truncf %70 : vector<16x32xf32> to vector<16x32xbf16>
    %cst_34 = arith.constant dense<0.000000e+00> : vector<16x32xf32>
    %72 = tpu.matmul %71, %33, %cst_34 {dimension_numbers = #tpu.dot_dimension_numbers<[1], [0], [0], [1], [0, 0, 1, 1], [], []>} : vector<16x32xbf16>, vector<32x32xbf16>, vector<16x32xf32> -> vector<16x32xf32>
    %73 = vector.broadcast %35 : vector<1x32xf32> to vector<16x32xf32>
    %74 = arith.addf %72, %73 : vector<16x32xf32>
    %75 = vector.shape_cast %3 : vector<1x16x32xf32> to vector<16x32xf32>
    %76 = arith.addf %75, %74 : vector<16x32xf32>
    %c0_35 = arith.constant 0 : index
    %c0_36 = arith.constant 0 : index
    %c0_37 = arith.constant 0 : index
    %77 = vector.load %arg11[%c0_35, %c0_36, %c0_37] : memref<1x1x32xf32, #tpu.memory_space<vmem>>, vector<1x1x32xf32>
    %78 = vector.shape_cast %77 : vector<1x1x32xf32> to vector<1x32xf32>
    %c0_38 = arith.constant 0 : index
    %c0_39 = arith.constant 0 : index
    %c0_40 = arith.constant 0 : index
    %79 = vector.load %arg12[%c0_38, %c0_39, %c0_40] : memref<1x1x32xf32, #tpu.memory_space<vmem>>, vector<1x1x32xf32>
    %80 = vector.shape_cast %79 : vector<1x1x32xf32> to vector<1x32xf32>
    %cst_41 = arith.constant dense<0.000000e+00> : vector<16xf32>
    %81 = vector.multi_reduction <add>, %76, %cst_41 [1] : vector<16x32xf32> to vector<16xf32>
    %82 = vector.shape_cast %81 : vector<16xf32> to vector<16x1xf32>
    %cst_42 = arith.constant 3.200000e+01 : f32
    %83 = vector.broadcast %cst_42 : f32 to vector<16x1xf32>
    %84 = arith.divf %82, %83 : vector<16x1xf32>
    %85 = vector.broadcast %84 : vector<16x1xf32> to vector<16x32xf32>
    %86 = arith.subf %76, %85 : vector<16x32xf32>
    %87 = arith.mulf %86, %86 : vector<16x32xf32>
    %cst_43 = arith.constant dense<0.000000e+00> : vector<16xf32>
    %88 = vector.multi_reduction <add>, %87, %cst_43 [1] : vector<16x32xf32> to vector<16xf32>
    %89 = vector.shape_cast %88 : vector<16xf32> to vector<16x1xf32>
    %cst_44 = arith.constant 3.200000e+01 : f32
    %90 = vector.broadcast %cst_44 : f32 to vector<16x1xf32>
    %91 = arith.divf %89, %90 : vector<16x1xf32>
    %92 = vector.broadcast %84 : vector<16x1xf32> to vector<16x32xf32>
    %93 = arith.subf %76, %92 : vector<16x32xf32>
    %cst_45 = arith.constant 9.99999974E-6 : f32
    %94 = vector.broadcast %cst_45 : f32 to vector<16x1xf32>
    %95 = arith.addf %91, %94 : vector<16x1xf32>
    %96 = math.rsqrt %95 : vector<16x1xf32>
    %97 = vector.broadcast %96 : vector<16x1xf32> to vector<16x32xf32>
    %98 = arith.mulf %93, %97 : vector<16x32xf32>
    %99 = vector.broadcast %78 : vector<1x32xf32> to vector<16x32xf32>
    %100 = arith.mulf %98, %99 : vector<16x32xf32>
    %101 = vector.broadcast %80 : vector<1x32xf32> to vector<16x32xf32>
    %102 = arith.addf %100, %101 : vector<16x32xf32>
    %103 = arith.truncf %102 : vector<16x32xf32> to vector<16x32xbf16>
    %c0_46 = arith.constant 0 : index
    %c0_47 = arith.constant 0 : index
    %c0_48 = arith.constant 0 : index
    %104 = vector.load %arg13[%c0_46, %c0_47, %c0_48] : memref<1x32x64xbf16, #tpu.memory_space<vmem>>, vector<1x32x64xbf16>
    %105 = vector.shape_cast %104 : vector<1x32x64xbf16> to vector<32x64xbf16>
    %cst_49 = arith.constant dense<0.000000e+00> : vector<16x64xf32>
    %106 = tpu.matmul %103, %105, %cst_49 {dimension_numbers = #tpu.dot_dimension_numbers<[1], [0], [0], [1], [0, 0, 1, 1], [], []>} : vector<16x32xbf16>, vector<32x64xbf16>, vector<16x64xf32> -> vector<16x64xf32>
    %c0_50 = arith.constant 0 : index
    %c0_51 = arith.constant 0 : index
    %c0_52 = arith.constant 0 : index
    %107 = vector.load %arg14[%c0_50, %c0_51, %c0_52] : memref<1x1x64xf32, #tpu.memory_space<vmem>>, vector<1x1x64xf32>
    %108 = vector.shape_cast %107 : vector<1x1x64xf32> to vector<1x64xf32>
    %109 = vector.broadcast %108 : vector<1x64xf32> to vector<16x64xf32>
    %110 = arith.addf %106, %109 : vector<16x64xf32>
    %cst_53 = arith.constant 0.000000e+00 : f32
    %111 = vector.broadcast %cst_53 : f32 to vector<16x64xf32>
    %112 = arith.maximumf %110, %111 : vector<16x64xf32>
    %113 = arith.truncf %112 : vector<16x64xf32> to vector<16x64xbf16>
    %c0_54 = arith.constant 0 : index
    %c0_55 = arith.constant 0 : index
    %c0_56 = arith.constant 0 : index
    %114 = vector.load %arg15[%c0_54, %c0_55, %c0_56] : memref<1x64x32xbf16, #tpu.memory_space<vmem>>, vector<1x64x32xbf16>
    %115 = vector.shape_cast %114 : vector<1x64x32xbf16> to vector<64x32xbf16>
    %cst_57 = arith.constant dense<0.000000e+00> : vector<16x32xf32>
    %116 = tpu.matmul %113, %115, %cst_57 {dimension_numbers = #tpu.dot_dimension_numbers<[1], [0], [0], [1], [0, 0, 1, 1], [], []>} : vector<16x64xbf16>, vector<64x32xbf16>, vector<16x32xf32> -> vector<16x32xf32>
    %c0_58 = arith.constant 0 : index
    %c0_59 = arith.constant 0 : index
    %c0_60 = arith.constant 0 : index
    %117 = vector.load %arg16[%c0_58, %c0_59, %c0_60] : memref<1x1x32xf32, #tpu.memory_space<vmem>>, vector<1x1x32xf32>
    %118 = vector.shape_cast %117 : vector<1x1x32xf32> to vector<1x32xf32>
    %119 = vector.broadcast %118 : vector<1x32xf32> to vector<16x32xf32>
    %120 = arith.addf %116, %119 : vector<16x32xf32>
    %121 = arith.addf %102, %120 : vector<16x32xf32>
    %c0_61 = arith.constant 0 : index
    %c0_62 = arith.constant 0 : index
    %c0_63 = arith.constant 0 : index
    %122 = vector.load %arg17[%c0_61, %c0_62, %c0_63] : memref<1x1x32xf32, #tpu.memory_space<vmem>>, vector<1x1x32xf32>
    %123 = vector.shape_cast %122 : vector<1x1x32xf32> to vector<1x32xf32>
    %c0_64 = arith.constant 0 : index
    %c0_65 = arith.constant 0 : index
    %c0_66 = arith.constant 0 : index
    %124 = vector.load %arg18[%c0_64, %c0_65, %c0_66] : memref<1x1x32xf32, #tpu.memory_space<vmem>>, vector<1x1x32xf32>
    %125 = vector.shape_cast %124 : vector<1x1x32xf32> to vector<1x32xf32>
    %cst_67 = arith.constant dense<0.000000e+00> : vector<16xf32>
    %126 = vector.multi_reduction <add>, %121, %cst_67 [1] : vector<16x32xf32> to vector<16xf32>
    %127 = vector.shape_cast %126 : vector<16xf32> to vector<16x1xf32>
    %cst_68 = arith.constant 3.200000e+01 : f32
    %128 = vector.broadcast %cst_68 : f32 to vector<16x1xf32>
    %129 = arith.divf %127, %128 : vector<16x1xf32>
    %130 = vector.broadcast %129 : vector<16x1xf32> to vector<16x32xf32>
    %131 = arith.subf %121, %130 : vector<16x32xf32>
    %132 = arith.mulf %131, %131 : vector<16x32xf32>
    %cst_69 = arith.constant dense<0.000000e+00> : vector<16xf32>
    %133 = vector.multi_reduction <add>, %132, %cst_69 [1] : vector<16x32xf32> to vector<16xf32>
    %134 = vector.shape_cast %133 : vector<16xf32> to vector<16x1xf32>
    %cst_70 = arith.constant 3.200000e+01 : f32
    %135 = vector.broadcast %cst_70 : f32 to vector<16x1xf32>
    %136 = arith.divf %134, %135 : vector<16x1xf32>
    %137 = vector.broadcast %129 : vector<16x1xf32> to vector<16x32xf32>
    %138 = arith.subf %121, %137 : vector<16x32xf32>
    %cst_71 = arith.constant 9.99999974E-6 : f32
    %139 = vector.broadcast %cst_71 : f32 to vector<16x1xf32>
    %140 = arith.addf %136, %139 : vector<16x1xf32>
    %141 = math.rsqrt %140 : vector<16x1xf32>
    %142 = vector.broadcast %141 : vector<16x1xf32> to vector<16x32xf32>
    %143 = arith.mulf %138, %142 : vector<16x32xf32>
    %144 = vector.broadcast %123 : vector<1x32xf32> to vector<16x32xf32>
    %145 = arith.mulf %143, %144 : vector<16x32xf32>
    %146 = vector.broadcast %125 : vector<1x32xf32> to vector<16x32xf32>
    %147 = arith.addf %145, %146 : vector<16x32xf32>
    %148 = vector.shape_cast %147 : vector<16x32xf32> to vector<1x16x32xf32>
    %c0_72 = arith.constant 0 : index
    %c0_73 = arith.constant 0 : index
    %c0_74 = arith.constant 0 : index
    %149 = vector.load %arg19[%c0_72, %c0_73, %c0_74] : memref<1x16x32xf32, #tpu.memory_space<vmem>>, vector<1x16x32xf32>
    tpu.vector_store %arg19[%c0_72, %c0_73, %c0_74], %148 {strides = array<i32>} : memref<1x16x32xf32, #tpu.memory_space<vmem>>, vector<1x16x32xf32>,
    return
  }
  func.func @transform_0(%arg0: i32, %arg1: i32) -> (i32, i32, i32) {
    %c0_i32 = arith.constant 0 : i32
    %c0_i32_0 = arith.constant 0 : i32
    %c0_i32_1 = arith.constant 0 : i32
    return %arg0, %c0_i32, %c0_i32_0 : i32, i32, i32
  }
  func.func @transform_1(%arg0: i32, %arg1: i32) -> (i32, i32, i32) {
    %c0_i32 = arith.constant 0 : i32
    %c0_i32_0 = arith.constant 0 : i32
    %c0_i32_1 = arith.constant 0 : i32
    return %arg0, %c0_i32, %c0_i32_0 : i32, i32, i32
  }
  func.func @transform_2(%arg0: i32, %arg1: i32) -> (i32, i32, i32) {
    %c0_i32 = arith.constant 0 : i32
    %c0_i32_0 = arith.constant 0 : i32
    %c0_i32_1 = arith.constant 0 : i32
    return %arg0, %c0_i32, %c0_i32_0 : i32, i32, i32
  }
  func.func @transform_3(%arg0: i32, %arg1: i32) -> (i32, i32, i32) {
    %c0_i32 = arith.constant 0 : i32
    %c0_i32_0 = arith.constant 0 : i32
    %c0_i32_1 = arith.constant 0 : i32
    return %arg1, %c0_i32, %c0_i32_0 : i32, i32, i32
  }
  func.func @transform_4(%arg0: i32, %arg1: i32) -> (i32, i32, i32) {
    %c0_i32 = arith.constant 0 : i32
    %c0_i32_0 = arith.constant 0 : i32
    %c0_i32_1 = arith.constant 0 : i32
    return %arg1, %c0_i32, %c0_i32_0 : i32, i32, i32
  }
  func.func @transform_5(%arg0: i32, %arg1: i32) -> (i32, i32, i32) {
    %c0_i32 = arith.constant 0 : i32
    %c0_i32_0 = arith.constant 0 : i32
    %c0_i32_1 = arith.constant 0 : i32
    return %arg1, %c0_i32, %c0_i32_0 : i32, i32, i32
  }
  func.func @transform_6(%arg0: i32, %arg1: i32) -> (i32, i32, i32) {
    %c0_i32 = arith.constant 0 : i32
    %c0_i32_0 = arith.constant 0 : i32
    %c0_i32_1 = arith.constant 0 : i32
    return %arg1, %c0_i32, %c0_i32_0 : i32, i32, i32
  }
  func.func @transform_7(%arg0: i32, %arg1: i32) -> (i32, i32, i32) {
    %c0_i32 = arith.constant 0 : i32
    %c0_i32_0 = arith.constant 0 : i32
    %c0_i32_1 = arith.constant 0 : i32
    return %arg1, %c0_i32, %c0_i32_0 : i32, i32, i32
  }
  func.func @transform_8(%arg0: i32, %arg1: i32) -> (i32, i32, i32) {
    %c0_i32 = arith.constant 0 : i32
    %c0_i32_0 = arith.constant 0 : i32
    %c0_i32_1 = arith.constant 0 : i32
    return %arg1, %c0_i32, %c0_i32_0 : i32, i32, i32
  }
  func.func @transform_9(%arg0: i32, %arg1: i32) -> (i32, i32, i32) {
    %c0_i32 = arith.constant 0 : i32
    %c0_i32_0 = arith.constant 0 : i32
    %c0_i32_1 = arith.constant 0 : i32
    return %arg1, %c0_i32, %c0_i32_0 : i32, i32, i32
  }
  func.func @transform_10(%arg0: i32, %arg1: i32) -> (i32, i32, i32) {
    %c0_i32 = arith.constant 0 : i32
    %c0_i32_0 = arith.constant 0 : i32
    %c0_i32_1 = arith.constant 0 : i32
    return %arg1, %c0_i32, %c0_i32_0 : i32, i32, i32
  }
  func.func @transform_11(%arg0: i32, %arg1: i32) -> (i32, i32, i32) {
    %c0_i32 = arith.constant 0 : i32
    %c0_i32_0 = arith.constant 0 : i32
    %c0_i32_1 = arith.constant 0 : i32
    return %arg1, %c0_i32, %c0_i32_0 : i32, i32, i32
  }
  func.func @transform_12(%arg0: i32, %arg1: i32) -> (i32, i32, i32) {
    %c0_i32 = arith.constant 0 : i32
    %c0_i32_0 = arith.constant 0 : i32
    %c0_i32_1 = arith.constant 0 : i32
    return %arg1, %c0_i32, %c0_i32_0 : i32, i32, i32
  }
  func.func @transform_13(%arg0: i32, %arg1: i32) -> (i32, i32, i32) {
    %c0_i32 = arith.constant 0 : i32
    %c0_i32_0 = arith.constant 0 : i32
    %c0_i32_1 = arith.constant 0 : i32
    return %arg1, %c0_i32, %c0_i32_0 : i32, i32, i32
  }
  func.func @transform_14(%arg0: i32, %arg1: i32) -> (i32, i32, i32) {
    %c0_i32 = arith.constant 0 : i32
    %c0_i32_0 = arith.constant 0 : i32
    %c0_i32_1 = arith.constant 0 : i32
    return %arg1, %c0_i32, %c0_i32_0 : i32, i32, i32
  }
  func.func @transform_15(%arg0: i32, %arg1: i32) -> (i32, i32, i32) {
    %c0_i32 = arith.constant 0 : i32
    %c0_i32_0 = arith.constant 0 : i32
    %c0_i32_1 = arith.constant 0 : i32
    return %arg1, %c0_i32, %c0_i32_0 : i32, i32, i32
  }
  func.func @transform_16(%arg0: i32, %arg1: i32) -> (i32, i32, i32) {
    %c0_i32 = arith.constant 0 : i32
    %c0_i32_0 = arith.constant 0 : i32
    %c0_i32_1 = arith.constant 0 : i32
    return %arg1, %c0_i32, %c0_i32_0 : i32, i32, i32
  }
  func.func @transform_17(%arg0: i32, %arg1: i32) -> (i32, i32, i32) {
    %c0_i32 = arith.constant 0 : i32
    %c0_i32_0 = arith.constant 0 : i32
    %c0_i32_1 = arith.constant 0 : i32
    return %arg0, %c0_i32, %c0_i32_0 : i32, i32, i32
  }
}

module attributes {stable_mosaic.version = 11 : i64} {
  func.func @_heads_kernel(%arg0: i32, %arg1: memref<8x32xf32, #tpu.memory_space<vmem>>, %arg2: memref<32x34xbf16, #tpu.memory_space<vmem>>, %arg3: memref<1x34xf32, #tpu.memory_space<vmem>>, %arg4: memref<32x32xbf16, #tpu.memory_space<vmem>>, %arg5: memref<1x32xf32, #tpu.memory_space<vmem>>, %arg6: memref<32x4xbf16, #tpu.memory_space<vmem>>, %arg7: memref<1x4xf32, #tpu.memory_space<vmem>>, %arg8: memref<8x2xf32, #tpu.memory_space<vmem>>, %arg9: memref<8x4xf32, #tpu.memory_space<vmem>>) attributes {dimension_semantics = [#tpu.dimension_semantics<parallel>], iteration_bounds = array<i64: 2>, scalar_prefetch = 0 : i64, scratch_operands = 0 : i64, tpu.core_type = #tpu.core_type<tc>, window_params = [{transform_indices = @transform_0, window_bounds = array<i64: 8, 32>}, {pipeline_mode = #tpu.pipeline_mode<synchronous>, transform_indices = @transform_1, window_bounds = array<i64: 32, 34>}, {pipeline_mode = #tpu.pipeline_mode<synchronous>, transform_indices = @transform_2, window_bounds = array<i64: 1, 34>}, {pipeline_mode = #tpu.pipeline_mode<synchronous>, transform_indices = @transform_3, window_bounds = array<i64: 32, 32>}, {pipeline_mode = #tpu.pipeline_mode<synchronous>, transform_indices = @transform_4, window_bounds = array<i64: 1, 32>}, {pipeline_mode = #tpu.pipeline_mode<synchronous>, transform_indices = @transform_5, window_bounds = array<i64: 32, 4>}, {pipeline_mode = #tpu.pipeline_mode<synchronous>, transform_indices = @transform_6, window_bounds = array<i64: 1, 4>}, {transform_indices = @transform_7, window_bounds = array<i64: 8, 2>}, {transform_indices = @transform_8, window_bounds = array<i64: 8, 4>}]} {
    %c0 = arith.constant 0 : index
    %c0_0 = arith.constant 0 : index
    %0 = vector.load %arg1[%c0, %c0_0] : memref<8x32xf32, #tpu.memory_space<vmem>>, vector<8x32xf32>
    %1 = arith.truncf %0 : vector<8x32xf32> to vector<8x32xbf16>
    %c0_1 = arith.constant 0 : index
    %c0_2 = arith.constant 0 : index
    %2 = vector.load %arg2[%c0_1, %c0_2] : memref<32x34xbf16, #tpu.memory_space<vmem>>, vector<32x34xbf16>
    %cst = arith.constant dense<0.000000e+00> : vector<8x34xf32>
    %3 = tpu.matmul %1, %2, %cst {dimension_numbers = #tpu.dot_dimension_numbers<[1], [0], [0], [1], [0, 0, 1, 1], [], []>} : vector<8x32xbf16>, vector<32x34xbf16>, vector<8x34xf32> -> vector<8x34xf32>
    %c0_3 = arith.constant 0 : index
    %c0_4 = arith.constant 0 : index
    %4 = vector.load %arg3[%c0_3, %c0_4] : memref<1x34xf32, #tpu.memory_space<vmem>>, vector<1x34xf32>
    %5 = vector.broadcast %4 : vector<1x34xf32> to vector<8x34xf32>
    %6 = arith.addf %3, %5 : vector<8x34xf32>
    %7 = vector.extract_strided_slice %6 {offsets = [0, 0], sizes = [8, 2], strides = [1, 1]} : vector<8x34xf32> to vector<8x2xf32>
    %c0_5 = arith.constant 0 : index
    %c0_6 = arith.constant 0 : index
    %8 = vector.load %arg8[%c0_5, %c0_6] : memref<8x2xf32, #tpu.memory_space<vmem>>, vector<8x2xf32>
    tpu.vector_store %arg8[%c0_5, %c0_6], %7 {strides = array<i32>} : memref<8x2xf32, #tpu.memory_space<vmem>>, vector<8x2xf32>,
    %9 = vector.extract_strided_slice %6 {offsets = [0, 2], sizes = [8, 32], strides = [1, 1]} : vector<8x34xf32> to vector<8x32xf32>
    %cst_7 = arith.constant 0.000000e+00 : f32
    %10 = vector.broadcast %cst_7 : f32 to vector<8x32xf32>
    %11 = arith.maximumf %9, %10 : vector<8x32xf32>
    %12 = arith.truncf %11 : vector<8x32xf32> to vector<8x32xbf16>
    %c0_8 = arith.constant 0 : index
    %c0_9 = arith.constant 0 : index
    %13 = vector.load %arg4[%c0_8, %c0_9] : memref<32x32xbf16, #tpu.memory_space<vmem>>, vector<32x32xbf16>
    %cst_10 = arith.constant dense<0.000000e+00> : vector<8x32xf32>
    %14 = tpu.matmul %12, %13, %cst_10 {dimension_numbers = #tpu.dot_dimension_numbers<[1], [0], [0], [1], [0, 0, 1, 1], [], []>} : vector<8x32xbf16>, vector<32x32xbf16>, vector<8x32xf32> -> vector<8x32xf32>
    %c0_11 = arith.constant 0 : index
    %c0_12 = arith.constant 0 : index
    %15 = vector.load %arg5[%c0_11, %c0_12] : memref<1x32xf32, #tpu.memory_space<vmem>>, vector<1x32xf32>
    %16 = vector.broadcast %15 : vector<1x32xf32> to vector<8x32xf32>
    %17 = arith.addf %14, %16 : vector<8x32xf32>
    %cst_13 = arith.constant 0.000000e+00 : f32
    %18 = vector.broadcast %cst_13 : f32 to vector<8x32xf32>
    %19 = arith.maximumf %17, %18 : vector<8x32xf32>
    %20 = arith.truncf %19 : vector<8x32xf32> to vector<8x32xbf16>
    %c0_14 = arith.constant 0 : index
    %c0_15 = arith.constant 0 : index
    %21 = vector.load %arg6[%c0_14, %c0_15] : memref<32x4xbf16, #tpu.memory_space<vmem>>, vector<32x4xbf16>
    %cst_16 = arith.constant dense<0.000000e+00> : vector<8x4xf32>
    %22 = tpu.matmul %20, %21, %cst_16 {dimension_numbers = #tpu.dot_dimension_numbers<[1], [0], [0], [1], [0, 0, 1, 1], [], []>} : vector<8x32xbf16>, vector<32x4xbf16>, vector<8x4xf32> -> vector<8x4xf32>
    %c0_17 = arith.constant 0 : index
    %c0_18 = arith.constant 0 : index
    %23 = vector.load %arg7[%c0_17, %c0_18] : memref<1x4xf32, #tpu.memory_space<vmem>>, vector<1x4xf32>
    %24 = vector.broadcast %23 : vector<1x4xf32> to vector<8x4xf32>
    %25 = arith.addf %22, %24 : vector<8x4xf32>
    %26 = arith.negf %25 : vector<8x4xf32>
    %27 = math.exp %26 : vector<8x4xf32>
    %cst_19 = arith.constant 1.000000e+00 : f32
    %28 = vector.broadcast %cst_19 : f32 to vector<8x4xf32>
    %29 = arith.addf %28, %27 : vector<8x4xf32>
    %30 = arith.divf %28, %29 : vector<8x4xf32>
    %c0_20 = arith.constant 0 : index
    %c0_21 = arith.constant 0 : index
    %31 = vector.load %arg9[%c0_20, %c0_21] : memref<8x4xf32, #tpu.memory_space<vmem>>, vector<8x4xf32>
    tpu.vector_store %arg9[%c0_20, %c0_21], %30 {strides = array<i32>} : memref<8x4xf32, #tpu.memory_space<vmem>>, vector<8x4xf32>,
    return
  }
  func.func @transform_0(%arg0: i32) -> (i32, i32) {
    %c0_i32 = arith.constant 0 : i32
    %c0_i32_0 = arith.constant 0 : i32
    return %arg0, %c0_i32 : i32, i32
  }
  func.func @transform_1(%arg0: i32) -> (i32, i32) {
    %c0_i32 = arith.constant 0 : i32
    %c0_i32_0 = arith.constant 0 : i32
    %c0_i32_1 = arith.constant 0 : i32
    return %c0_i32, %c0_i32_0 : i32, i32
  }
  func.func @transform_2(%arg0: i32) -> (i32, i32) {
    %c0_i32 = arith.constant 0 : i32
    %c0_i32_0 = arith.constant 0 : i32
    %c0_i32_1 = arith.constant 0 : i32
    return %c0_i32, %c0_i32_0 : i32, i32
  }
  func.func @transform_3(%arg0: i32) -> (i32, i32) {
    %c0_i32 = arith.constant 0 : i32
    %c0_i32_0 = arith.constant 0 : i32
    %c0_i32_1 = arith.constant 0 : i32
    return %c0_i32, %c0_i32_0 : i32, i32
  }
  func.func @transform_4(%arg0: i32) -> (i32, i32) {
    %c0_i32 = arith.constant 0 : i32
    %c0_i32_0 = arith.constant 0 : i32
    %c0_i32_1 = arith.constant 0 : i32
    return %c0_i32, %c0_i32_0 : i32, i32
  }
  func.func @transform_5(%arg0: i32) -> (i32, i32) {
    %c0_i32 = arith.constant 0 : i32
    %c0_i32_0 = arith.constant 0 : i32
    %c0_i32_1 = arith.constant 0 : i32
    return %c0_i32, %c0_i32_0 : i32, i32
  }
  func.func @transform_6(%arg0: i32) -> (i32, i32) {
    %c0_i32 = arith.constant 0 : i32
    %c0_i32_0 = arith.constant 0 : i32
    %c0_i32_1 = arith.constant 0 : i32
    return %c0_i32, %c0_i32_0 : i32, i32
  }
  func.func @transform_7(%arg0: i32) -> (i32, i32) {
    %c0_i32 = arith.constant 0 : i32
    %c0_i32_0 = arith.constant 0 : i32
    return %arg0, %c0_i32 : i32, i32
  }
  func.func @transform_8(%arg0: i32) -> (i32, i32) {
    %c0_i32 = arith.constant 0 : i32
    %c0_i32_0 = arith.constant 0 : i32
    return %arg0, %c0_i32 : i32, i32
  }
}

module attributes {stable_mosaic.version = 11 : i64} {
  func.func @_decoder_kernel(%arg0: i32, %arg1: i32, %arg2: memref<1x16x32xf32, #tpu.memory_space<vmem>>, %arg3: memref<1x16x32xf32, #tpu.memory_space<vmem>>, %arg4: memref<1x4x32xf32, #tpu.memory_space<vmem>>, %arg5: memref<1x1x16xf32, #tpu.memory_space<vmem>>, %arg6: memref<1x32xf32, #tpu.memory_space<vmem>>, %arg7: memref<1x32xf32, #tpu.memory_space<vmem>>, %arg8: memref<1x32x64xbf16, #tpu.memory_space<vmem>>, %arg9: memref<1x1x64xf32, #tpu.memory_space<vmem>>, %arg10: memref<1x32x32xbf16, #tpu.memory_space<vmem>>, %arg11: memref<1x1x32xf32, #tpu.memory_space<vmem>>, %arg12: memref<1x32x32xbf16, #tpu.memory_space<vmem>>, %arg13: memref<1x1x32xf32, #tpu.memory_space<vmem>>, %arg14: memref<1x1x32xf32, #tpu.memory_space<vmem>>, %arg15: memref<1x1x32xf32, #tpu.memory_space<vmem>>, %arg16: memref<1x32x32xbf16, #tpu.memory_space<vmem>>, %arg17: memref<1x1x32xf32, #tpu.memory_space<vmem>>, %arg18: memref<1x32x32xbf16, #tpu.memory_space<vmem>>, %arg19: memref<1x1x32xf32, #tpu.memory_space<vmem>>, %arg20: memref<1x32x32xbf16, #tpu.memory_space<vmem>>, %arg21: memref<1x1x32xf32, #tpu.memory_space<vmem>>, %arg22: memref<1x32x32xbf16, #tpu.memory_space<vmem>>, %arg23: memref<1x1x32xf32, #tpu.memory_space<vmem>>, %arg24: memref<1x1x32xf32, #tpu.memory_space<vmem>>, %arg25: memref<1x1x32xf32, #tpu.memory_space<vmem>>, %arg26: memref<1x32x64xbf16, #tpu.memory_space<vmem>>, %arg27: memref<1x1x64xf32, #tpu.memory_space<vmem>>, %arg28: memref<1x64x32xbf16, #tpu.memory_space<vmem>>, %arg29: memref<1x1x32xf32, #tpu.memory_space<vmem>>, %arg30: memref<1x1x32xf32, #tpu.memory_space<vmem>>, %arg31: memref<1x1x32xf32, #tpu.memory_space<vmem>>, %arg32: memref<1x1x4x32xf32, #tpu.memory_space<vmem>>, %arg33: memref<1x4x32xf32, #tpu.memory_space<vmem>>, %arg34: memref<1x16x32xf32, #tpu.memory_space<vmem>>) attributes {dimension_semantics = [#tpu.dimension_semantics<parallel>, #tpu.dimension_semantics<arbitrary>], iteration_bounds = array<i64: 2, 2>, scalar_prefetch = 0 : i64, scratch_operands = 2 : i64, tpu.core_type = #tpu.core_type<tc>, window_params = [{transform_indices = @transform_0, window_bounds = array<i64: 1, 16, 32>}, {transform_indices = @transform_1, window_bounds = array<i64: 1, 16, 32>}, {transform_indices = @transform_2, window_bounds = array<i64: 1, 4, 32>}, {transform_indices = @transform_3, window_bounds = array<i64: 1, 1, 16>}, {pipeline_mode = #tpu.pipeline_mode<synchronous>, transform_indices = @transform_4, window_bounds = array<i64: 1, 32>}, {pipeline_mode = #tpu.pipeline_mode<synchronous>, transform_indices = @transform_5, window_bounds = array<i64: 1, 32>}, {transform_indices = @transform_6, window_bounds = array<i64: 1, 32, 64>}, {transform_indices = @transform_7, window_bounds = array<i64: 1, 1, 64>}, {transform_indices = @transform_8, window_bounds = array<i64: 1, 32, 32>}, {transform_indices = @transform_9, window_bounds = array<i64: 1, 1, 32>}, {transform_indices = @transform_10, window_bounds = array<i64: 1, 32, 32>}, {transform_indices = @transform_11, window_bounds = array<i64: 1, 1, 32>}, {transform_indices = @transform_12, window_bounds = array<i64: 1, 1, 32>}, {transform_indices = @transform_13, window_bounds = array<i64: 1, 1, 32>}, {transform_indices = @transform_14, window_bounds = array<i64: 1, 32, 32>}, {transform_indices = @transform_15, window_bounds = array<i64: 1, 1, 32>}, {transform_indices = @transform_16, window_bounds = array<i64: 1, 32, 32>}, {transform_indices = @transform_17, window_bounds = array<i64: 1, 1, 32>}, {transform_indices = @transform_18, window_bounds = array<i64: 1, 32, 32>}, {transform_indices = @transform_19, window_bounds = array<i64: 1, 1, 32>}, {transform_indices = @transform_20, window_bounds = array<i64: 1, 32, 32>}, {transform_indices = @transform_21, window_bounds = array<i64: 1, 1, 32>}, {transform_indices = @transform_22, window_bounds = array<i64: 1, 1, 32>}, {transform_indices = @transform_23, window_bounds = array<i64: 1, 1, 32>}, {transform_indices = @transform_24, window_bounds = array<i64: 1, 32, 64>}, {transform_indices = @transform_25, window_bounds = array<i64: 1, 1, 64>}, {transform_indices = @transform_26, window_bounds = array<i64: 1, 64, 32>}, {transform_indices = @transform_27, window_bounds = array<i64: 1, 1, 32>}, {transform_indices = @transform_28, window_bounds = array<i64: 1, 1, 32>}, {transform_indices = @transform_29, window_bounds = array<i64: 1, 1, 32>}, {transform_indices = @transform_30, window_bounds = array<i64: 1, 1, 4, 32>}]} {
    %c0_i32 = arith.constant 0 : i32
    %0 = arith.cmpi eq, %arg1, %c0_i32 : i32
    %1 = arith.extui %0 : i1 to i32
    %c0_i32_0 = arith.constant 0 : i32
    %2 = arith.cmpi ne, %1, %c0_i32_0 : i32
    scf.if %2 {
      %cst_138 = arith.constant 0.000000e+00 : f32
      %276 = vector.broadcast %cst_138 : f32 to vector<1x4x32xf32>
      %c0_139 = arith.constant 0 : index
      %c0_140 = arith.constant 0 : index
      %c0_141 = arith.constant 0 : index
      %277 = vector.load %arg33[%c0_139, %c0_140, %c0_141] : memref<1x4x32xf32, #tpu.memory_space<vmem>>, vector<1x4x32xf32>
      tpu.vector_store %arg33[%c0_139, %c0_140, %c0_141], %276 {strides = array<i32>} : memref<1x4x32xf32, #tpu.memory_space<vmem>>, vector<1x4x32xf32>,
      %c0_142 = arith.constant 0 : index
      %c0_143 = arith.constant 0 : index
      %c0_144 = arith.constant 0 : index
      %278 = vector.load %arg2[%c0_142, %c0_143, %c0_144] : memref<1x16x32xf32, #tpu.memory_space<vmem>>, vector<1x16x32xf32>
      %c0_145 = arith.constant 0 : index
      %c0_146 = arith.constant 0 : index
      %c0_147 = arith.constant 0 : index
      %279 = vector.load %arg3[%c0_145, %c0_146, %c0_147] : memref<1x16x32xf32, #tpu.memory_space<vmem>>, vector<1x16x32xf32>
      %280 = arith.addf %278, %279 : vector<1x16x32xf32>
      %c0_148 = arith.constant 0 : index
      %c0_149 = arith.constant 0 : index
      %c0_150 = arith.constant 0 : index
      %281 = vector.load %arg34[%c0_148, %c0_149, %c0_150] : memref<1x16x32xf32, #tpu.memory_space<vmem>>, vector<1x16x32xf32>
      tpu.vector_store %arg34[%c0_148, %c0_149, %c0_150], %280 {strides = array<i32>} : memref<1x16x32xf32, #tpu.memory_space<vmem>>, vector<1x16x32xf32>,
    } else {
    }
    %c0 = arith.constant 0 : index
    %c0_1 = arith.constant 0 : index
    %c0_2 = arith.constant 0 : index
    %3 = vector.load %arg33[%c0, %c0_1, %c0_2] : memref<1x4x32xf32, #tpu.memory_space<vmem>>, vector<1x4x32xf32>
    %c0_3 = arith.constant 0 : index
    %c0_4 = arith.constant 0 : index
    %c0_5 = arith.constant 0 : index
    %4 = vector.load %arg4[%c0_3, %c0_4, %c0_5] : memref<1x4x32xf32, #tpu.memory_space<vmem>>, vector<1x4x32xf32>
    %c0_6 = arith.constant 0 : index
    %c0_7 = arith.constant 0 : index
    %c0_8 = arith.constant 0 : index
    %5 = vector.load %arg5[%c0_6, %c0_7, %c0_8] : memref<1x1x16xf32, #tpu.memory_space<vmem>>, vector<1x1x16xf32>
    %cst = arith.constant -1.000000e+09 : f32
    %6 = vector.broadcast %cst : f32 to vector<1x1x16xf32>
    %7 = arith.mulf %5, %6 : vector<1x1x16xf32>
    %8 = arith.addf %3, %4 : vector<1x4x32xf32>
    %9 = vector.shape_cast %8 : vector<1x4x32xf32> to vector<4x32xf32>
    %10 = arith.truncf %9 : vector<4x32xf32> to vector<4x32xbf16>
    %c0_9 = arith.constant 0 : index
    %c0_10 = arith.constant 0 : index
    %c0_11 = arith.constant 0 : index
    %11 = vector.load %arg8[%c0_9, %c0_10, %c0_11] : memref<1x32x64xbf16, #tpu.memory_space<vmem>>, vector<1x32x64xbf16>
    %12 = vector.shape_cast %11 : vector<1x32x64xbf16> to vector<32x64xbf16>
    %cst_12 = arith.constant dense<0.000000e+00> : vector<4x64xf32>
    %13 = tpu.matmul %10, %12, %cst_12 {dimension_numbers = #tpu.dot_dimension_numbers<[1], [0], [0], [1], [0, 0, 1, 1], [], []>} : vector<4x32xbf16>, vector<32x64xbf16>, vector<4x64xf32> -> vector<4x64xf32>
    %c0_13 = arith.constant 0 : index
    %c0_14 = arith.constant 0 : index
    %c0_15 = arith.constant 0 : index
    %14 = vector.load %arg9[%c0_13, %c0_14, %c0_15] : memref<1x1x64xf32, #tpu.memory_space<vmem>>, vector<1x1x64xf32>
    %15 = vector.shape_cast %14 : vector<1x1x64xf32> to vector<1x64xf32>
    %16 = vector.broadcast %15 : vector<1x64xf32> to vector<4x64xf32>
    %17 = arith.addf %13, %16 : vector<4x64xf32>
    %18 = vector.extract_strided_slice %17 {offsets = [0, 0], sizes = [4, 32], strides = [1, 1]} : vector<4x64xf32> to vector<4x32xf32>
    %19 = vector.shape_cast %18 : vector<4x32xf32> to vector<1x4x32xf32>
    %20 = vector.extract_strided_slice %17 {offsets = [0, 32], sizes = [4, 32], strides = [1, 1]} : vector<4x64xf32> to vector<4x32xf32>
    %21 = vector.shape_cast %20 : vector<4x32xf32> to vector<1x4x32xf32>
    %22 = vector.shape_cast %3 : vector<1x4x32xf32> to vector<4x32xf32>
    %23 = arith.truncf %22 : vector<4x32xf32> to vector<4x32xbf16>
    %c0_16 = arith.constant 0 : index
    %c0_17 = arith.constant 0 : index
    %c0_18 = arith.constant 0 : index
    %24 = vector.load %arg10[%c0_16, %c0_17, %c0_18] : memref<1x32x32xbf16, #tpu.memory_space<vmem>>, vector<1x32x32xbf16>
    %25 = vector.shape_cast %24 : vector<1x32x32xbf16> to vector<32x32xbf16>
    %cst_19 = arith.constant dense<0.000000e+00> : vector<4x32xf32>
    %26 = tpu.matmul %23, %25, %cst_19 {dimension_numbers = #tpu.dot_dimension_numbers<[1], [0], [0], [1], [0, 0, 1, 1], [], []>} : vector<4x32xbf16>, vector<32x32xbf16>, vector<4x32xf32> -> vector<4x32xf32>
    %c0_20 = arith.constant 0 : index
    %c0_21 = arith.constant 0 : index
    %c0_22 = arith.constant 0 : index
    %27 = vector.load %arg11[%c0_20, %c0_21, %c0_22] : memref<1x1x32xf32, #tpu.memory_space<vmem>>, vector<1x1x32xf32>
    %28 = vector.shape_cast %27 : vector<1x1x32xf32> to vector<1x32xf32>
    %29 = vector.broadcast %28 : vector<1x32xf32> to vector<4x32xf32>
    %30 = arith.addf %26, %29 : vector<4x32xf32>
    %31 = vector.shape_cast %30 : vector<4x32xf32> to vector<1x4x32xf32>
    %c0_23 = arith.constant 0 : index
    %c0_24 = arith.constant 0 : index
    %c0_25 = arith.constant 0 : index
    %32 = vector.load %arg12[%c0_23, %c0_24, %c0_25] : memref<1x32x32xbf16, #tpu.memory_space<vmem>>, vector<1x32x32xbf16>
    %33 = vector.shape_cast %32 : vector<1x32x32xbf16> to vector<32x32xbf16>
    %c0_26 = arith.constant 0 : index
    %c0_27 = arith.constant 0 : index
    %c0_28 = arith.constant 0 : index
    %34 = vector.load %arg13[%c0_26, %c0_27, %c0_28] : memref<1x1x32xf32, #tpu.memory_space<vmem>>, vector<1x1x32xf32>
    %35 = vector.shape_cast %34 : vector<1x1x32xf32> to vector<1x32xf32>
    %36 = vector.shape_cast %19 : vector<1x4x32xf32> to vector<1x4x4x8xf32>
    %37 = tpu.transpose %36, [0, 2, 1, 3] : vector<1x4x4x8xf32> -> vector<1x4x4x8xf32>
    %38 = vector.shape_cast %21 : vector<1x4x32xf32> to vector<1x4x4x8xf32>
    %39 = tpu.transpose %38, [0, 2, 1, 3] : vector<1x4x4x8xf32> -> vector<1x4x4x8xf32>
    %40 = vector.shape_cast %31 : vector<1x4x32xf32> to vector<1x4x4x8xf32>
    %41 = tpu.transpose %40, [0, 2, 1, 3] : vector<1x4x4x8xf32> -> vector<1x4x4x8xf32>
    %42 = vector.shape_cast %37 : vector<1x4x4x8xf32> to vector<4x4x8xf32>
    %43 = arith.truncf %42 : vector<4x4x8xf32> to vector<4x4x8xbf16>
    %44 = vector.shape_cast %39 : vector<1x4x4x8xf32> to vector<4x4x8xf32>
    %45 = arith.truncf %44 : vector<4x4x8xf32> to vector<4x4x8xbf16>
    %46 = vector.shape_cast %41 : vector<1x4x4x8xf32> to vector<4x4x8xf32>
    %47 = arith.truncf %46 : vector<4x4x8xf32> to vector<4x4x8xbf16>
    "tpu.trace_start"() <{level = 10 : i32, message = "bqd,bkd->bqk"}> : () -> ()
    %cst_29 = arith.constant dense<0.000000e+00> : vector<4x4x4xf32>
    %48 = tpu.matmul %43, %45, %cst_29 {dimension_numbers = #tpu.dot_dimension_numbers<[2], [2], [1], [1], [0, 0, 0, 1, 1, 1], [0], [0]>} : vector<4x4x8xbf16>, vector<4x4x8xbf16>, vector<4x4x4xf32> -> vector<4x4x4xf32>
    "tpu.trace_stop"() : () -> ()
    %cst_30 = arith.constant 0.353553385 : f32
    %49 = vector.broadcast %cst_30 : f32 to vector<4x4x4xf32>
    %50 = arith.mulf %48, %49 : vector<4x4x4xf32>
    %cst_31 = arith.constant dense<0xFF800000> : vector<4x4xf32>
    %51 = vector.multi_reduction <maximumf>, %50, %cst_31 [2] : vector<4x4x4xf32> to vector<4x4xf32>
    %52 = vector.shape_cast %51 : vector<4x4xf32> to vector<4x4x1xf32>
    %53 = vector.broadcast %52 : vector<4x4x1xf32> to vector<4x4x4xf32>
    %54 = arith.subf %50, %53 : vector<4x4x4xf32>
    %55 = math.exp %54 : vector<4x4x4xf32>
    %cst_32 = arith.constant dense<0.000000e+00> : vector<4x4xf32>
    %56 = vector.multi_reduction <add>, %55, %cst_32 [2] : vector<4x4x4xf32> to vector<4x4xf32>
    %57 = vector.shape_cast %56 : vector<4x4xf32> to vector<4x4x1xf32>
    %58 = tpu.reciprocal %57 {approx = true} : vector<4x4x1xf32> -> vector<4x4x1xf32>
    %59 = vector.broadcast %58 : vector<4x4x1xf32> to vector<4x4x4xf32>
    %60 = arith.mulf %55, %59 : vector<4x4x4xf32>
    %61 = arith.truncf %60 : vector<4x4x4xf32> to vector<4x4x4xbf16>
    "tpu.trace_start"() <{level = 10 : i32, message = "bqk,bkd->bqd"}> : () -> ()
    %cst_33 = arith.constant dense<0.000000e+00> : vector<4x4x8xf32>
    %62 = tpu.matmul %61, %47, %cst_33 {dimension_numbers = #tpu.dot_dimension_numbers<[2], [1], [1], [2], [0, 0, 0, 1, 1, 2], [0], [0]>} : vector<4x4x4xbf16>, vector<4x4x8xbf16>, vector<4x4x8xf32> -> vector<4x4x8xf32>
    "tpu.trace_stop"() : () -> ()
    %63 = vector.shape_cast %62 : vector<4x4x8xf32> to vector<1x4x4x8xf32>
    %64 = tpu.transpose %63, [0, 2, 1, 3] : vector<1x4x4x8xf32> -> vector<1x4x4x8xf32>
    %65 = vector.shape_cast %64 : vector<1x4x4x8xf32> to vector<4x32xf32>
    %66 = arith.truncf %65 : vector<4x32xf32> to vector<4x32xbf16>
    %cst_34 = arith.constant dense<0.000000e+00> : vector<4x32xf32>
    %67 = tpu.matmul %66, %33, %cst_34 {dimension_numbers = #tpu.dot_dimension_numbers<[1], [0], [0], [1], [0, 0, 1, 1], [], []>} : vector<4x32xbf16>, vector<32x32xbf16>, vector<4x32xf32> -> vector<4x32xf32>
    %68 = vector.broadcast %35 : vector<1x32xf32> to vector<4x32xf32>
    %69 = arith.addf %67, %68 : vector<4x32xf32>
    %70 = vector.shape_cast %3 : vector<1x4x32xf32> to vector<4x32xf32>
    %71 = arith.addf %70, %69 : vector<4x32xf32>
    %c0_35 = arith.constant 0 : index
    %c0_36 = arith.constant 0 : index
    %c0_37 = arith.constant 0 : index
    %72 = vector.load %arg14[%c0_35, %c0_36, %c0_37] : memref<1x1x32xf32, #tpu.memory_space<vmem>>, vector<1x1x32xf32>
    %73 = vector.shape_cast %72 : vector<1x1x32xf32> to vector<1x32xf32>
    %c0_38 = arith.constant 0 : index
    %c0_39 = arith.constant 0 : index
    %c0_40 = arith.constant 0 : index
    %74 = vector.load %arg15[%c0_38, %c0_39, %c0_40] : memref<1x1x32xf32, #tpu.memory_space<vmem>>, vector<1x1x32xf32>
    %75 = vector.shape_cast %74 : vector<1x1x32xf32> to vector<1x32xf32>
    %cst_41 = arith.constant dense<0.000000e+00> : vector<4xf32>
    %76 = vector.multi_reduction <add>, %71, %cst_41 [1] : vector<4x32xf32> to vector<4xf32>
    %77 = vector.shape_cast %76 : vector<4xf32> to vector<4x1xf32>
    %cst_42 = arith.constant 3.200000e+01 : f32
    %78 = vector.broadcast %cst_42 : f32 to vector<4x1xf32>
    %79 = arith.divf %77, %78 : vector<4x1xf32>
    %80 = vector.broadcast %79 : vector<4x1xf32> to vector<4x32xf32>
    %81 = arith.subf %71, %80 : vector<4x32xf32>
    %82 = arith.mulf %81, %81 : vector<4x32xf32>
    %cst_43 = arith.constant dense<0.000000e+00> : vector<4xf32>
    %83 = vector.multi_reduction <add>, %82, %cst_43 [1] : vector<4x32xf32> to vector<4xf32>
    %84 = vector.shape_cast %83 : vector<4xf32> to vector<4x1xf32>
    %cst_44 = arith.constant 3.200000e+01 : f32
    %85 = vector.broadcast %cst_44 : f32 to vector<4x1xf32>
    %86 = arith.divf %84, %85 : vector<4x1xf32>
    %87 = vector.broadcast %79 : vector<4x1xf32> to vector<4x32xf32>
    %88 = arith.subf %71, %87 : vector<4x32xf32>
    %cst_45 = arith.constant 9.99999974E-6 : f32
    %89 = vector.broadcast %cst_45 : f32 to vector<4x1xf32>
    %90 = arith.addf %86, %89 : vector<4x1xf32>
    %91 = math.rsqrt %90 : vector<4x1xf32>
    %92 = vector.broadcast %91 : vector<4x1xf32> to vector<4x32xf32>
    %93 = arith.mulf %88, %92 : vector<4x32xf32>
    %94 = vector.broadcast %73 : vector<1x32xf32> to vector<4x32xf32>
    %95 = arith.mulf %93, %94 : vector<4x32xf32>
    %96 = vector.broadcast %75 : vector<1x32xf32> to vector<4x32xf32>
    %97 = arith.addf %95, %96 : vector<4x32xf32>
    %98 = vector.shape_cast %4 : vector<1x4x32xf32> to vector<4x32xf32>
    %99 = arith.addf %97, %98 : vector<4x32xf32>
    %100 = arith.truncf %99 : vector<4x32xf32> to vector<4x32xbf16>
    %c0_46 = arith.constant 0 : index
    %c0_47 = arith.constant 0 : index
    %c0_48 = arith.constant 0 : index
    %101 = vector.load %arg16[%c0_46, %c0_47, %c0_48] : memref<1x32x32xbf16, #tpu.memory_space<vmem>>, vector<1x32x32xbf16>
    %102 = vector.shape_cast %101 : vector<1x32x32xbf16> to vector<32x32xbf16>
    %cst_49 = arith.constant dense<0.000000e+00> : vector<4x32xf32>
    %103 = tpu.matmul %100, %102, %cst_49 {dimension_numbers = #tpu.dot_dimension_numbers<[1], [0], [0], [1], [0, 0, 1, 1], [], []>} : vector<4x32xbf16>, vector<32x32xbf16>, vector<4x32xf32> -> vector<4x32xf32>
    %c0_50 = arith.constant 0 : index
    %c0_51 = arith.constant 0 : index
    %c0_52 = arith.constant 0 : index
    %104 = vector.load %arg17[%c0_50, %c0_51, %c0_52] : memref<1x1x32xf32, #tpu.memory_space<vmem>>, vector<1x1x32xf32>
    %105 = vector.shape_cast %104 : vector<1x1x32xf32> to vector<1x32xf32>
    %106 = vector.broadcast %105 : vector<1x32xf32> to vector<4x32xf32>
    %107 = arith.addf %103, %106 : vector<4x32xf32>
    %108 = vector.shape_cast %107 : vector<4x32xf32> to vector<1x4x32xf32>
    %c0_53 = arith.constant 0 : index
    %c0_54 = arith.constant 0 : index
    %c0_55 = arith.constant 0 : index
    %109 = vector.load %arg34[%c0_53, %c0_54, %c0_55] : memref<1x16x32xf32, #tpu.memory_space<vmem>>, vector<1x16x32xf32>
    %110 = vector.shape_cast %109 : vector<1x16x32xf32> to vector<16x32xf32>
    %111 = arith.truncf %110 : vector<16x32xf32> to vector<16x32xbf16>
    %c0_56 = arith.constant 0 : index
    %c0_57 = arith.constant 0 : index
    %c0_58 = arith.constant 0 : index
    %112 = vector.load %arg18[%c0_56, %c0_57, %c0_58] : memref<1x32x32xbf16, #tpu.memory_space<vmem>>, vector<1x32x32xbf16>
    %113 = vector.shape_cast %112 : vector<1x32x32xbf16> to vector<32x32xbf16>
    %cst_59 = arith.constant dense<0.000000e+00> : vector<16x32xf32>
    %114 = tpu.matmul %111, %113, %cst_59 {dimension_numbers = #tpu.dot_dimension_numbers<[1], [0], [0], [1], [0, 0, 1, 1], [], []>} : vector<16x32xbf16>, vector<32x32xbf16>, vector<16x32xf32> -> vector<16x32xf32>
    %c0_60 = arith.constant 0 : index
    %c0_61 = arith.constant 0 : index
    %c0_62 = arith.constant 0 : index
    %115 = vector.load %arg19[%c0_60, %c0_61, %c0_62] : memref<1x1x32xf32, #tpu.memory_space<vmem>>, vector<1x1x32xf32>
    %116 = vector.shape_cast %115 : vector<1x1x32xf32> to vector<1x32xf32>
    %117 = vector.broadcast %116 : vector<1x32xf32> to vector<16x32xf32>
    %118 = arith.addf %114, %117 : vector<16x32xf32>
    %119 = vector.shape_cast %118 : vector<16x32xf32> to vector<1x16x32xf32>
    %c0_63 = arith.constant 0 : index
    %c0_64 = arith.constant 0 : index
    %c0_65 = arith.constant 0 : index
    %120 = vector.load %arg2[%c0_63, %c0_64, %c0_65] : memref<1x16x32xf32, #tpu.memory_space<vmem>>, vector<1x16x32xf32>
    %121 = vector.shape_cast %120 : vector<1x16x32xf32> to vector<16x32xf32>
    %122 = arith.truncf %121 : vector<16x32xf32> to vector<16x32xbf16>
    %c0_66 = arith.constant 0 : index
    %c0_67 = arith.constant 0 : index
    %c0_68 = arith.constant 0 : index
    %123 = vector.load %arg20[%c0_66, %c0_67, %c0_68] : memref<1x32x32xbf16, #tpu.memory_space<vmem>>, vector<1x32x32xbf16>
    %124 = vector.shape_cast %123 : vector<1x32x32xbf16> to vector<32x32xbf16>
    %cst_69 = arith.constant dense<0.000000e+00> : vector<16x32xf32>
    %125 = tpu.matmul %122, %124, %cst_69 {dimension_numbers = #tpu.dot_dimension_numbers<[1], [0], [0], [1], [0, 0, 1, 1], [], []>} : vector<16x32xbf16>, vector<32x32xbf16>, vector<16x32xf32> -> vector<16x32xf32>
    %c0_70 = arith.constant 0 : index
    %c0_71 = arith.constant 0 : index
    %c0_72 = arith.constant 0 : index
    %126 = vector.load %arg21[%c0_70, %c0_71, %c0_72] : memref<1x1x32xf32, #tpu.memory_space<vmem>>, vector<1x1x32xf32>
    %127 = vector.shape_cast %126 : vector<1x1x32xf32> to vector<1x32xf32>
    %128 = vector.broadcast %127 : vector<1x32xf32> to vector<16x32xf32>
    %129 = arith.addf %125, %128 : vector<16x32xf32>
    %130 = vector.shape_cast %129 : vector<16x32xf32> to vector<1x16x32xf32>
    %c0_73 = arith.constant 0 : index
    %c0_74 = arith.constant 0 : index
    %c0_75 = arith.constant 0 : index
    %131 = vector.load %arg22[%c0_73, %c0_74, %c0_75] : memref<1x32x32xbf16, #tpu.memory_space<vmem>>, vector<1x32x32xbf16>
    %132 = vector.shape_cast %131 : vector<1x32x32xbf16> to vector<32x32xbf16>
    %c0_76 = arith.constant 0 : index
    %c0_77 = arith.constant 0 : index
    %c0_78 = arith.constant 0 : index
    %133 = vector.load %arg23[%c0_76, %c0_77, %c0_78] : memref<1x1x32xf32, #tpu.memory_space<vmem>>, vector<1x1x32xf32>
    %134 = vector.shape_cast %133 : vector<1x1x32xf32> to vector<1x32xf32>
    %135 = vector.shape_cast %108 : vector<1x4x32xf32> to vector<1x4x4x8xf32>
    %136 = tpu.transpose %135, [0, 2, 1, 3] : vector<1x4x4x8xf32> -> vector<1x4x4x8xf32>
    %137 = vector.shape_cast %119 : vector<1x16x32xf32> to vector<1x16x4x8xf32>
    %138 = tpu.transpose %137, [0, 2, 1, 3] : vector<1x16x4x8xf32> -> vector<1x4x16x8xf32>
    %139 = vector.shape_cast %130 : vector<1x16x32xf32> to vector<1x16x4x8xf32>
    %140 = tpu.transpose %139, [0, 2, 1, 3] : vector<1x16x4x8xf32> -> vector<1x4x16x8xf32>
    %141 = vector.shape_cast %136 : vector<1x4x4x8xf32> to vector<4x4x8xf32>
    %142 = arith.truncf %141 : vector<4x4x8xf32> to vector<4x4x8xbf16>
    %143 = vector.shape_cast %138 : vector<1x4x16x8xf32> to vector<4x16x8xf32>
    %144 = arith.truncf %143 : vector<4x16x8xf32> to vector<4x16x8xbf16>
    %145 = vector.shape_cast %140 : vector<1x4x16x8xf32> to vector<4x16x8xf32>
    %146 = arith.truncf %145 : vector<4x16x8xf32> to vector<4x16x8xbf16>
    "tpu.trace_start"() <{level = 10 : i32, message = "bqd,bkd->bqk"}> : () -> ()
    %cst_79 = arith.constant dense<0.000000e+00> : vector<4x4x16xf32>
    %147 = tpu.matmul %142, %144, %cst_79 {dimension_numbers = #tpu.dot_dimension_numbers<[2], [2], [1], [1], [0, 0, 0, 1, 1, 1], [0], [0]>} : vector<4x4x8xbf16>, vector<4x16x8xbf16>, vector<4x4x16xf32> -> vector<4x4x16xf32>
    "tpu.trace_stop"() : () -> ()
    %cst_80 = arith.constant 0.353553385 : f32
    %148 = vector.broadcast %cst_80 : f32 to vector<4x4x16xf32>
    %149 = arith.mulf %147, %148 : vector<4x4x16xf32>
    %150 = vector.shape_cast %149 : vector<4x4x16xf32> to vector<1x4x4x16xf32>
    %151 = vector.shape_cast %7 : vector<1x1x16xf32> to vector<1x1x1x16xf32>
    %152 = vector.broadcast %151 : vector<1x1x1x16xf32> to vector<1x4x4x16xf32>
    %153 = arith.addf %150, %152 : vector<1x4x4x16xf32>
    %154 = vector.shape_cast %153 : vector<1x4x4x16xf32> to vector<4x4x16xf32>
    %cst_81 = arith.constant dense<0xFF800000> : vector<4x4xf32>
    %155 = vector.multi_reduction <maximumf>, %154, %cst_81 [2] : vector<4x4x16xf32> to vector<4x4xf32>
    %156 = vector.shape_cast %155 : vector<4x4xf32> to vector<4x4x1xf32>
    %157 = vector.broadcast %156 : vector<4x4x1xf32> to vector<4x4x16xf32>
    %158 = arith.subf %154, %157 : vector<4x4x16xf32>
    %159 = math.exp %158 : vector<4x4x16xf32>
    %cst_82 = arith.constant dense<0.000000e+00> : vector<4x4xf32>
    %160 = vector.multi_reduction <add>, %159, %cst_82 [2] : vector<4x4x16xf32> to vector<4x4xf32>
    %161 = vector.shape_cast %160 : vector<4x4xf32> to vector<4x4x1xf32>
    %162 = tpu.reciprocal %161 {approx = true} : vector<4x4x1xf32> -> vector<4x4x1xf32>
    %163 = vector.broadcast %162 : vector<4x4x1xf32> to vector<4x4x16xf32>
    %164 = arith.mulf %159, %163 : vector<4x4x16xf32>
    %165 = arith.truncf %164 : vector<4x4x16xf32> to vector<4x4x16xbf16>
    "tpu.trace_start"() <{level = 10 : i32, message = "bqk,bkd->bqd"}> : () -> ()
    %cst_83 = arith.constant dense<0.000000e+00> : vector<4x4x8xf32>
    %166 = tpu.matmul %165, %146, %cst_83 {dimension_numbers = #tpu.dot_dimension_numbers<[2], [1], [1], [2], [0, 0, 0, 1, 1, 2], [0], [0]>} : vector<4x4x16xbf16>, vector<4x16x8xbf16>, vector<4x4x8xf32> -> vector<4x4x8xf32>
    "tpu.trace_stop"() : () -> ()
    %167 = vector.shape_cast %166 : vector<4x4x8xf32> to vector<1x4x4x8xf32>
    %168 = tpu.transpose %167, [0, 2, 1, 3] : vector<1x4x4x8xf32> -> vector<1x4x4x8xf32>
    %169 = vector.shape_cast %168 : vector<1x4x4x8xf32> to vector<4x32xf32>
    %170 = arith.truncf %169 : vector<4x32xf32> to vector<4x32xbf16>
    %cst_84 = arith.constant dense<0.000000e+00> : vector<4x32xf32>
    %171 = tpu.matmul %170, %132, %cst_84 {dimension_numbers = #tpu.dot_dimension_numbers<[1], [0], [0], [1], [0, 0, 1, 1], [], []>} : vector<4x32xbf16>, vector<32x32xbf16>, vector<4x32xf32> -> vector<4x32xf32>
    %172 = vector.broadcast %134 : vector<1x32xf32> to vector<4x32xf32>
    %173 = arith.addf %171, %172 : vector<4x32xf32>
    %174 = arith.addf %97, %173 : vector<4x32xf32>
    %c0_85 = arith.constant 0 : index
    %c0_86 = arith.constant 0 : index
    %c0_87 = arith.constant 0 : index
    %175 = vector.load %arg24[%c0_85, %c0_86, %c0_87] : memref<1x1x32xf32, #tpu.memory_space<vmem>>, vector<1x1x32xf32>
    %176 = vector.shape_cast %175 : vector<1x1x32xf32> to vector<1x32xf32>
    %c0_88 = arith.constant 0 : index
    %c0_89 = arith.constant 0 : index
    %c0_90 = arith.constant 0 : index
    %177 = vector.load %arg25[%c0_88, %c0_89, %c0_90] : memref<1x1x32xf32, #tpu.memory_space<vmem>>, vector<1x1x32xf32>
    %178 = vector.shape_cast %177 : vector<1x1x32xf32> to vector<1x32xf32>
    %cst_91 = arith.constant dense<0.000000e+00> : vector<4xf32>
    %179 = vector.multi_reduction <add>, %174, %cst_91 [1] : vector<4x32xf32> to vector<4xf32>
    %180 = vector.shape_cast %179 : vector<4xf32> to vector<4x1xf32>
    %cst_92 = arith.constant 3.200000e+01 : f32
    %181 = vector.broadcast %cst_92 : f32 to vector<4x1xf32>
    %182 = arith.divf %180, %181 : vector<4x1xf32>
    %183 = vector.broadcast %182 : vector<4x1xf32> to vector<4x32xf32>
    %184 = arith.subf %174, %183 : vector<4x32xf32>
    %185 = arith.mulf %184, %184 : vector<4x32xf32>
    %cst_93 = arith.constant dense<0.000000e+00> : vector<4xf32>
    %186 = vector.multi_reduction <add>, %185, %cst_93 [1] : vector<4x32xf32> to vector<4xf32>
    %187 = vector.shape_cast %186 : vector<4xf32> to vector<4x1xf32>
    %cst_94 = arith.constant 3.200000e+01 : f32
    %188 = vector.broadcast %cst_94 : f32 to vector<4x1xf32>
    %189 = arith.divf %187, %188 : vector<4x1xf32>
    %190 = vector.broadcast %182 : vector<4x1xf32> to vector<4x32xf32>
    %191 = arith.subf %174, %190 : vector<4x32xf32>
    %cst_95 = arith.constant 9.99999974E-6 : f32
    %192 = vector.broadcast %cst_95 : f32 to vector<4x1xf32>
    %193 = arith.addf %189, %192 : vector<4x1xf32>
    %194 = math.rsqrt %193 : vector<4x1xf32>
    %195 = vector.broadcast %194 : vector<4x1xf32> to vector<4x32xf32>
    %196 = arith.mulf %191, %195 : vector<4x32xf32>
    %197 = vector.broadcast %176 : vector<1x32xf32> to vector<4x32xf32>
    %198 = arith.mulf %196, %197 : vector<4x32xf32>
    %199 = vector.broadcast %178 : vector<1x32xf32> to vector<4x32xf32>
    %200 = arith.addf %198, %199 : vector<4x32xf32>
    %201 = arith.truncf %200 : vector<4x32xf32> to vector<4x32xbf16>
    %c0_96 = arith.constant 0 : index
    %c0_97 = arith.constant 0 : index
    %c0_98 = arith.constant 0 : index
    %202 = vector.load %arg26[%c0_96, %c0_97, %c0_98] : memref<1x32x64xbf16, #tpu.memory_space<vmem>>, vector<1x32x64xbf16>
    %203 = vector.shape_cast %202 : vector<1x32x64xbf16> to vector<32x64xbf16>
    %cst_99 = arith.constant dense<0.000000e+00> : vector<4x64xf32>
    %204 = tpu.matmul %201, %203, %cst_99 {dimension_numbers = #tpu.dot_dimension_numbers<[1], [0], [0], [1], [0, 0, 1, 1], [], []>} : vector<4x32xbf16>, vector<32x64xbf16>, vector<4x64xf32> -> vector<4x64xf32>
    %c0_100 = arith.constant 0 : index
    %c0_101 = arith.constant 0 : index
    %c0_102 = arith.constant 0 : index
    %205 = vector.load %arg27[%c0_100, %c0_101, %c0_102] : memref<1x1x64xf32, #tpu.memory_space<vmem>>, vector<1x1x64xf32>
    %206 = vector.shape_cast %205 : vector<1x1x64xf32> to vector<1x64xf32>
    %207 = vector.broadcast %206 : vector<1x64xf32> to vector<4x64xf32>
    %208 = arith.addf %204, %207 : vector<4x64xf32>
    %cst_103 = arith.constant 0.000000e+00 : f32
    %209 = vector.broadcast %cst_103 : f32 to vector<4x64xf32>
    %210 = arith.maximumf %208, %209 : vector<4x64xf32>
    %211 = arith.truncf %210 : vector<4x64xf32> to vector<4x64xbf16>
    %c0_104 = arith.constant 0 : index
    %c0_105 = arith.constant 0 : index
    %c0_106 = arith.constant 0 : index
    %212 = vector.load %arg28[%c0_104, %c0_105, %c0_106] : memref<1x64x32xbf16, #tpu.memory_space<vmem>>, vector<1x64x32xbf16>
    %213 = vector.shape_cast %212 : vector<1x64x32xbf16> to vector<64x32xbf16>
    %cst_107 = arith.constant dense<0.000000e+00> : vector<4x32xf32>
    %214 = tpu.matmul %211, %213, %cst_107 {dimension_numbers = #tpu.dot_dimension_numbers<[1], [0], [0], [1], [0, 0, 1, 1], [], []>} : vector<4x64xbf16>, vector<64x32xbf16>, vector<4x32xf32> -> vector<4x32xf32>
    %c0_108 = arith.constant 0 : index
    %c0_109 = arith.constant 0 : index
    %c0_110 = arith.constant 0 : index
    %215 = vector.load %arg29[%c0_108, %c0_109, %c0_110] : memref<1x1x32xf32, #tpu.memory_space<vmem>>, vector<1x1x32xf32>
    %216 = vector.shape_cast %215 : vector<1x1x32xf32> to vector<1x32xf32>
    %217 = vector.broadcast %216 : vector<1x32xf32> to vector<4x32xf32>
    %218 = arith.addf %214, %217 : vector<4x32xf32>
    %219 = arith.addf %200, %218 : vector<4x32xf32>
    %c0_111 = arith.constant 0 : index
    %c0_112 = arith.constant 0 : index
    %c0_113 = arith.constant 0 : index
    %220 = vector.load %arg30[%c0_111, %c0_112, %c0_113] : memref<1x1x32xf32, #tpu.memory_space<vmem>>, vector<1x1x32xf32>
    %221 = vector.shape_cast %220 : vector<1x1x32xf32> to vector<1x32xf32>
    %c0_114 = arith.constant 0 : index
    %c0_115 = arith.constant 0 : index
    %c0_116 = arith.constant 0 : index
    %222 = vector.load %arg31[%c0_114, %c0_115, %c0_116] : memref<1x1x32xf32, #tpu.memory_space<vmem>>, vector<1x1x32xf32>
    %223 = vector.shape_cast %222 : vector<1x1x32xf32> to vector<1x32xf32>
    %cst_117 = arith.constant dense<0.000000e+00> : vector<4xf32>
    %224 = vector.multi_reduction <add>, %219, %cst_117 [1] : vector<4x32xf32> to vector<4xf32>
    %225 = vector.shape_cast %224 : vector<4xf32> to vector<4x1xf32>
    %cst_118 = arith.constant 3.200000e+01 : f32
    %226 = vector.broadcast %cst_118 : f32 to vector<4x1xf32>
    %227 = arith.divf %225, %226 : vector<4x1xf32>
    %228 = vector.broadcast %227 : vector<4x1xf32> to vector<4x32xf32>
    %229 = arith.subf %219, %228 : vector<4x32xf32>
    %230 = arith.mulf %229, %229 : vector<4x32xf32>
    %cst_119 = arith.constant dense<0.000000e+00> : vector<4xf32>
    %231 = vector.multi_reduction <add>, %230, %cst_119 [1] : vector<4x32xf32> to vector<4xf32>
    %232 = vector.shape_cast %231 : vector<4xf32> to vector<4x1xf32>
    %cst_120 = arith.constant 3.200000e+01 : f32
    %233 = vector.broadcast %cst_120 : f32 to vector<4x1xf32>
    %234 = arith.divf %232, %233 : vector<4x1xf32>
    %235 = vector.broadcast %227 : vector<4x1xf32> to vector<4x32xf32>
    %236 = arith.subf %219, %235 : vector<4x32xf32>
    %cst_121 = arith.constant 9.99999974E-6 : f32
    %237 = vector.broadcast %cst_121 : f32 to vector<4x1xf32>
    %238 = arith.addf %234, %237 : vector<4x1xf32>
    %239 = math.rsqrt %238 : vector<4x1xf32>
    %240 = vector.broadcast %239 : vector<4x1xf32> to vector<4x32xf32>
    %241 = arith.mulf %236, %240 : vector<4x32xf32>
    %242 = vector.broadcast %221 : vector<1x32xf32> to vector<4x32xf32>
    %243 = arith.mulf %241, %242 : vector<4x32xf32>
    %244 = vector.broadcast %223 : vector<1x32xf32> to vector<4x32xf32>
    %245 = arith.addf %243, %244 : vector<4x32xf32>
    %246 = vector.shape_cast %245 : vector<4x32xf32> to vector<1x4x32xf32>
    %c0_122 = arith.constant 0 : index
    %c0_123 = arith.constant 0 : index
    %c0_124 = arith.constant 0 : index
    %247 = vector.load %arg33[%c0_122, %c0_123, %c0_124] : memref<1x4x32xf32, #tpu.memory_space<vmem>>, vector<1x4x32xf32>
    tpu.vector_store %arg33[%c0_122, %c0_123, %c0_124], %246 {strides = array<i32>} : memref<1x4x32xf32, #tpu.memory_space<vmem>>, vector<1x4x32xf32>,
    %c0_125 = arith.constant 0 : index
    %c0_126 = arith.constant 0 : index
    %248 = vector.load %arg6[%c0_125, %c0_126] : memref<1x32xf32, #tpu.memory_space<vmem>>, vector<1x32xf32>
    %c0_127 = arith.constant 0 : index
    %c0_128 = arith.constant 0 : index
    %249 = vector.load %arg7[%c0_127, %c0_128] : memref<1x32xf32, #tpu.memory_space<vmem>>, vector<1x32xf32>
    %cst_129 = arith.constant dense<0.000000e+00> : vector<4xf32>
    %250 = vector.multi_reduction <add>, %245, %cst_129 [1] : vector<4x32xf32> to vector<4xf32>
    %251 = vector.shape_cast %250 : vector<4xf32> to vector<4x1xf32>
    %cst_130 = arith.constant 3.200000e+01 : f32
    %252 = vector.broadcast %cst_130 : f32 to vector<4x1xf32>
    %253 = arith.divf %251, %252 : vector<4x1xf32>
    %254 = vector.broadcast %253 : vector<4x1xf32> to vector<4x32xf32>
    %255 = arith.subf %245, %254 : vector<4x32xf32>
    %256 = arith.mulf %255, %255 : vector<4x32xf32>
    %cst_131 = arith.constant dense<0.000000e+00> : vector<4xf32>
    %257 = vector.multi_reduction <add>, %256, %cst_131 [1] : vector<4x32xf32> to vector<4xf32>
    %258 = vector.shape_cast %257 : vector<4xf32> to vector<4x1xf32>
    %cst_132 = arith.constant 3.200000e+01 : f32
    %259 = vector.broadcast %cst_132 : f32 to vector<4x1xf32>
    %260 = arith.divf %258, %259 : vector<4x1xf32>
    %261 = vector.broadcast %253 : vector<4x1xf32> to vector<4x32xf32>
    %262 = arith.subf %245, %261 : vector<4x32xf32>
    %cst_133 = arith.constant 9.99999974E-6 : f32
    %263 = vector.broadcast %cst_133 : f32 to vector<4x1xf32>
    %264 = arith.addf %260, %263 : vector<4x1xf32>
    %265 = math.rsqrt %264 : vector<4x1xf32>
    %266 = vector.broadcast %265 : vector<4x1xf32> to vector<4x32xf32>
    %267 = arith.mulf %262, %266 : vector<4x32xf32>
    %268 = vector.broadcast %248 : vector<1x32xf32> to vector<4x32xf32>
    %269 = arith.mulf %267, %268 : vector<4x32xf32>
    %270 = vector.broadcast %249 : vector<1x32xf32> to vector<4x32xf32>
    %271 = arith.addf %269, %270 : vector<4x32xf32>
    %272 = vector.shape_cast %271 : vector<4x32xf32> to vector<1x4x32xf32>
    %c0_134 = arith.constant 0 : index
    %c0_135 = arith.constant 0 : index
    %c0_136 = arith.constant 0 : index
    %c0_137 = arith.constant 0 : index
    %273 = vector.load %arg32[%c0_134, %c0_135, %c0_136, %c0_137] : memref<1x1x4x32xf32, #tpu.memory_space<vmem>>, vector<1x1x4x32xf32>
    %274 = vector.shape_cast %273 : vector<1x1x4x32xf32> to vector<1x4x32xf32>
    %275 = vector.shape_cast %272 : vector<1x4x32xf32> to vector<1x1x4x32xf32>
    tpu.vector_store %arg32[%c0_134, %c0_135, %c0_136, %c0_137], %275 {strides = array<i32>} : memref<1x1x4x32xf32, #tpu.memory_space<vmem>>, vector<1x1x4x32xf32>,
    return
  }
  func.func @transform_0(%arg0: i32, %arg1: i32) -> (i32, i32, i32) {
    %c0_i32 = arith.constant 0 : i32
    %c0_i32_0 = arith.constant 0 : i32
    %c0_i32_1 = arith.constant 0 : i32
    return %arg0, %c0_i32, %c0_i32_0 : i32, i32, i32
  }
  func.func @transform_1(%arg0: i32, %arg1: i32) -> (i32, i32, i32) {
    %c0_i32 = arith.constant 0 : i32
    %c0_i32_0 = arith.constant 0 : i32
    %c0_i32_1 = arith.constant 0 : i32
    return %arg0, %c0_i32, %c0_i32_0 : i32, i32, i32
  }
  func.func @transform_2(%arg0: i32, %arg1: i32) -> (i32, i32, i32) {
    %c0_i32 = arith.constant 0 : i32
    %c0_i32_0 = arith.constant 0 : i32
    %c0_i32_1 = arith.constant 0 : i32
    return %arg0, %c0_i32, %c0_i32_0 : i32, i32, i32
  }
  func.func @transform_3(%arg0: i32, %arg1: i32) -> (i32, i32, i32) {
    %c0_i32 = arith.constant 0 : i32
    %c0_i32_0 = arith.constant 0 : i32
    %c0_i32_1 = arith.constant 0 : i32
    return %arg0, %c0_i32, %c0_i32_0 : i32, i32, i32
  }
  func.func @transform_4(%arg0: i32, %arg1: i32) -> (i32, i32) {
    %c0_i32 = arith.constant 0 : i32
    %c0_i32_0 = arith.constant 0 : i32
    %c0_i32_1 = arith.constant 0 : i32
    return %c0_i32, %c0_i32_0 : i32, i32
  }
  func.func @transform_5(%arg0: i32, %arg1: i32) -> (i32, i32) {
    %c0_i32 = arith.constant 0 : i32
    %c0_i32_0 = arith.constant 0 : i32
    %c0_i32_1 = arith.constant 0 : i32
    return %c0_i32, %c0_i32_0 : i32, i32
  }
  func.func @transform_6(%arg0: i32, %arg1: i32) -> (i32, i32, i32) {
    %c0_i32 = arith.constant 0 : i32
    %c0_i32_0 = arith.constant 0 : i32
    %c0_i32_1 = arith.constant 0 : i32
    return %arg1, %c0_i32, %c0_i32_0 : i32, i32, i32
  }
  func.func @transform_7(%arg0: i32, %arg1: i32) -> (i32, i32, i32) {
    %c0_i32 = arith.constant 0 : i32
    %c0_i32_0 = arith.constant 0 : i32
    %c0_i32_1 = arith.constant 0 : i32
    return %arg1, %c0_i32, %c0_i32_0 : i32, i32, i32
  }
  func.func @transform_8(%arg0: i32, %arg1: i32) -> (i32, i32, i32) {
    %c0_i32 = arith.constant 0 : i32
    %c0_i32_0 = arith.constant 0 : i32
    %c0_i32_1 = arith.constant 0 : i32
    return %arg1, %c0_i32, %c0_i32_0 : i32, i32, i32
  }
  func.func @transform_9(%arg0: i32, %arg1: i32) -> (i32, i32, i32) {
    %c0_i32 = arith.constant 0 : i32
    %c0_i32_0 = arith.constant 0 : i32
    %c0_i32_1 = arith.constant 0 : i32
    return %arg1, %c0_i32, %c0_i32_0 : i32, i32, i32
  }
  func.func @transform_10(%arg0: i32, %arg1: i32) -> (i32, i32, i32) {
    %c0_i32 = arith.constant 0 : i32
    %c0_i32_0 = arith.constant 0 : i32
    %c0_i32_1 = arith.constant 0 : i32
    return %arg1, %c0_i32, %c0_i32_0 : i32, i32, i32
  }
  func.func @transform_11(%arg0: i32, %arg1: i32) -> (i32, i32, i32) {
    %c0_i32 = arith.constant 0 : i32
    %c0_i32_0 = arith.constant 0 : i32
    %c0_i32_1 = arith.constant 0 : i32
    return %arg1, %c0_i32, %c0_i32_0 : i32, i32, i32
  }
  func.func @transform_12(%arg0: i32, %arg1: i32) -> (i32, i32, i32) {
    %c0_i32 = arith.constant 0 : i32
    %c0_i32_0 = arith.constant 0 : i32
    %c0_i32_1 = arith.constant 0 : i32
    return %arg1, %c0_i32, %c0_i32_0 : i32, i32, i32
  }
  func.func @transform_13(%arg0: i32, %arg1: i32) -> (i32, i32, i32) {
    %c0_i32 = arith.constant 0 : i32
    %c0_i32_0 = arith.constant 0 : i32
    %c0_i32_1 = arith.constant 0 : i32
    return %arg1, %c0_i32, %c0_i32_0 : i32, i32, i32
  }
  func.func @transform_14(%arg0: i32, %arg1: i32) -> (i32, i32, i32) {
    %c0_i32 = arith.constant 0 : i32
    %c0_i32_0 = arith.constant 0 : i32
    %c0_i32_1 = arith.constant 0 : i32
    return %arg1, %c0_i32, %c0_i32_0 : i32, i32, i32
  }
  func.func @transform_15(%arg0: i32, %arg1: i32) -> (i32, i32, i32) {
    %c0_i32 = arith.constant 0 : i32
    %c0_i32_0 = arith.constant 0 : i32
    %c0_i32_1 = arith.constant 0 : i32
    return %arg1, %c0_i32, %c0_i32_0 : i32, i32, i32
  }
  func.func @transform_16(%arg0: i32, %arg1: i32) -> (i32, i32, i32) {
    %c0_i32 = arith.constant 0 : i32
    %c0_i32_0 = arith.constant 0 : i32
    %c0_i32_1 = arith.constant 0 : i32
    return %arg1, %c0_i32, %c0_i32_0 : i32, i32, i32
  }
  func.func @transform_17(%arg0: i32, %arg1: i32) -> (i32, i32, i32) {
    %c0_i32 = arith.constant 0 : i32
    %c0_i32_0 = arith.constant 0 : i32
    %c0_i32_1 = arith.constant 0 : i32
    return %arg1, %c0_i32, %c0_i32_0 : i32, i32, i32
  }
  func.func @transform_18(%arg0: i32, %arg1: i32) -> (i32, i32, i32) {
    %c0_i32 = arith.constant 0 : i32
    %c0_i32_0 = arith.constant 0 : i32
    %c0_i32_1 = arith.constant 0 : i32
    return %arg1, %c0_i32, %c0_i32_0 : i32, i32, i32
  }
  func.func @transform_19(%arg0: i32, %arg1: i32) -> (i32, i32, i32) {
    %c0_i32 = arith.constant 0 : i32
    %c0_i32_0 = arith.constant 0 : i32
    %c0_i32_1 = arith.constant 0 : i32
    return %arg1, %c0_i32, %c0_i32_0 : i32, i32, i32
  }
  func.func @transform_20(%arg0: i32, %arg1: i32) -> (i32, i32, i32) {
    %c0_i32 = arith.constant 0 : i32
    %c0_i32_0 = arith.constant 0 : i32
    %c0_i32_1 = arith.constant 0 : i32
    return %arg1, %c0_i32, %c0_i32_0 : i32, i32, i32
  }
  func.func @transform_21(%arg0: i32, %arg1: i32) -> (i32, i32, i32) {
    %c0_i32 = arith.constant 0 : i32
    %c0_i32_0 = arith.constant 0 : i32
    %c0_i32_1 = arith.constant 0 : i32
    return %arg1, %c0_i32, %c0_i32_0 : i32, i32, i32
  }
  func.func @transform_22(%arg0: i32, %arg1: i32) -> (i32, i32, i32) {
    %c0_i32 = arith.constant 0 : i32
    %c0_i32_0 = arith.constant 0 : i32
    %c0_i32_1 = arith.constant 0 : i32
    return %arg1, %c0_i32, %c0_i32_0 : i32, i32, i32
  }
  func.func @transform_23(%arg0: i32, %arg1: i32) -> (i32, i32, i32) {
    %c0_i32 = arith.constant 0 : i32
    %c0_i32_0 = arith.constant 0 : i32
    %c0_i32_1 = arith.constant 0 : i32
    return %arg1, %c0_i32, %c0_i32_0 : i32, i32, i32
  }
  func.func @transform_24(%arg0: i32, %arg1: i32) -> (i32, i32, i32) {
    %c0_i32 = arith.constant 0 : i32
    %c0_i32_0 = arith.constant 0 : i32
    %c0_i32_1 = arith.constant 0 : i32
    return %arg1, %c0_i32, %c0_i32_0 : i32, i32, i32
  }
  func.func @transform_25(%arg0: i32, %arg1: i32) -> (i32, i32, i32) {
    %c0_i32 = arith.constant 0 : i32
    %c0_i32_0 = arith.constant 0 : i32
    %c0_i32_1 = arith.constant 0 : i32
    return %arg1, %c0_i32, %c0_i32_0 : i32, i32, i32
  }
  func.func @transform_26(%arg0: i32, %arg1: i32) -> (i32, i32, i32) {
    %c0_i32 = arith.constant 0 : i32
    %c0_i32_0 = arith.constant 0 : i32
    %c0_i32_1 = arith.constant 0 : i32
    return %arg1, %c0_i32, %c0_i32_0 : i32, i32, i32
  }
  func.func @transform_27(%arg0: i32, %arg1: i32) -> (i32, i32, i32) {
    %c0_i32 = arith.constant 0 : i32
    %c0_i32_0 = arith.constant 0 : i32
    %c0_i32_1 = arith.constant 0 : i32
    return %arg1, %c0_i32, %c0_i32_0 : i32, i32, i32
  }
  func.func @transform_28(%arg0: i32, %arg1: i32) -> (i32, i32, i32) {
    %c0_i32 = arith.constant 0 : i32
    %c0_i32_0 = arith.constant 0 : i32
    %c0_i32_1 = arith.constant 0 : i32
    return %arg1, %c0_i32, %c0_i32_0 : i32, i32, i32
  }
  func.func @transform_29(%arg0: i32, %arg1: i32) -> (i32, i32, i32) {
    %c0_i32 = arith.constant 0 : i32
    %c0_i32_0 = arith.constant 0 : i32
    %c0_i32_1 = arith.constant 0 : i32
    return %arg1, %c0_i32, %c0_i32_0 : i32, i32, i32
  }
  func.func @transform_30(%arg0: i32, %arg1: i32) -> (i32, i32, i32, i32) {
    %c0_i32 = arith.constant 0 : i32
    %c0_i32_0 = arith.constant 0 : i32
    %c0_i32_1 = arith.constant 0 : i32
    return %arg1, %arg0, %c0_i32, %c0_i32_0 : i32, i32, i32, i32
  }
}

</mosaic_0001>

<bundles_post_ra>
// kernel: svanet_forward.7
= control target key start
LH: loop header
LB: loop body
LE: loop exit
PB: predicated region body
PF: predicated region fallthrough
CT: control target
= control target key end

     0   :  { %s748_s27 = smov 0   ;;  %s803_s0 = inlined_call_operand.vmem [shape: f32[16,32], index: 0, kind: input, shape index: {}]   ;;  %s804_s1 = inlined_call_operand.vmem [shape: bf16[32,34], index: 1, kind: input, shape index: {}]   ;;  %s805_s2 = inlined_call_operand.vmem [shape: f32[1,34], index: 2, kind: input, shape index: {}]   ;;  %s806_s3 = inlined_call_operand.vmem [shape: bf16[32,32], index: 3, kind: input, shape index: {}]   ;;  %s807_s4 = inlined_call_operand.vmem [shape: f32[1,32], index: 4, kind: input, shape index: {}]   ;;  %s808_s5 = inlined_call_operand.vmem [shape: bf16[32,4], index: 5, kind: input, shape index: {}]   ;;  %s809_s6 = inlined_call_operand.vmem [shape: f32[1,4], index: 6, kind: input, shape index: {}]   ;;  %s810_s7 = inlined_call_operand.vmem [shape: f32[16,2], index: 7, kind: output, shape index: {0}]   ;;  %s811_s8 = inlined_call_operand.vmem [shape: f32[16,4], index: 8, kind: output, shape index: {1}]  }
   0x1 LB: > { %s615_s28 = sadd.s32 4294967295, %s698_s27   ;;  %p619_p0 = scmp.ge.s32.totalorder %s698_s27, 1  ;;  %s698_s27 = sphi %s748_s27, %s19_s27  }
   0x2   : > { %p264_p1 = scmp.lt.s32.totalorder %s698_s27, 3 }
   0x4   : > { %p265_p2 = pnand %p619_p0, %p264_p1 }
   0x5   : > { %v682_v0 = vld [vmem:[%s804_s1] sm:$0xff] (!%p265_p2)   ;;  %v700_v1 = vmov (!%p265_p2), 0.0   ;;  %v683_v2 = vld [vmem:[%s804_s1 + $0x8] sm:$0xff] (!%p265_p2)   ;;  %vm701_vm0 = vmmov (!%p265_p2), 0   ;;  %p300_p3 = scmp.lt.s32.totalorder (!%p265_p2), %s615_s28, 1  ;;  %vm338_vm1 = vcmask (!%p265_p2), 261120  }
   0x6   : > { %268 = sbr.rel (%p265_p2) target bundleno = 811 (0x32b), region = 48  ;;  %647 = vmatprep.subr.bf16.mxu0 (!%p265_p2), %v700_v1  ;;  %655 = vmatprep.subr.bf16.mxu1 (!%p265_p2), %v700_v1  ;;  %v684_v5 = vld [vmem:[%s806_s3] sm:$0xff] (!%p265_p2)   ;;  %v685_v6 = vld [vmem:[%s806_s3 + $0x8] sm:$0xff] (!%p265_p2)   ;;  %vm382_vm2 = vcmask (!%p265_p2), 15360   ;;  %s702_s26 = smov (!%p265_p2), 126   ;;  %vm529_vm3 = vcmask (!%p265_p2), 31744  }
   0x7   : > { %648 = vmatpush3.bf16.msra.mxu0 (!%p265_p2), %v682_v0  ;;  %651 = vmatprep.mubr.msk.bf16.mxu0 (!%p265_p2), %vm701_vm0, %v700_v1  ;;  %v686_v7 = vld [vmem:[%s808_s5] sm:$0xff] (!%p265_p2)   ;;  %v687_v17 = vld [vmem:[%s808_s5 + $0x8] sm:$0xff] (!%p265_p2)  }
   0x8   : > { %649 = vmatprep.subr.bf16.mxu0 (!%p265_p2), %v700_v1  ;;  %659 = vmatprep.mubr.msk.bf16.mxu1 (!%p265_p2), %vm701_vm0, %v700_v1  ;;  %v623_v8 = vld [vmem:[%s805_s2] ss:$0 sm:$0xff] (!%p265_p2) }
   0x9   : > { %656 = vmatpush3.bf16.msra.mxu1 (!%p265_p2), %v684_v5  ;;  %v627_v18 = vld [vmem:[%s807_s4] ss:$0 sm:$0xff] (!%p265_p2) }
   0xa   : > { %657 = vmatprep.subr.bf16.mxu1 (!%p265_p2), %v700_v1  ;;  %v631_v26 = vld [vmem:[%s809_s6] ss:$0 sm:$0xff] (!%p265_p2) }
   0xb   : > { %650 = vmatpush3.bf16.msra.mxu0 (!%p265_p2), %v683_v2 }
   0xc   : > { %663 = vmatprep.subr.bf16.mxu0 (!%p265_p2), %v700_v1 }
   0xd   : > { %s813_s28 = smov (!%p300_p3, %s615_s28), 1  ;;  %658 = vmatpush3.bf16.msra.mxu1 %v685_v6 }
   0xe   : > { %s762_s11 = sshll.u32 %s813_s28, 3 }
   0xf   : > { %s303_s14 = scalar_lea.vmem %s803_s0, %s762_s11  ;;  %s307_s25 = scalar_lea.vmem %s810_s7, %s762_s11 }
  0x10   : > { %v313_v3 = vld [vmem:[%s303_s14] sm:$0xff]  ;;  %s311_s15 = scalar_lea.vmem %s811_s8, %s762_s11 }
  0x11   : > { %v314_v4 = vpack.c.bf16 %v313_v3, %v313_v3 }
  0x13   : > { %652 = vmatmul.mubr.msk.bf16.vlgmr.msra.gmra.mrb[0].mxu0 %vm338_vm1, %v314_v4 }
  0x14   : > { %667 = vmatprep.mubr.msk.bf16.mxu0 %vm701_vm0, %v700_v1  ;;  %664 = vmatpush3.bf16.msra.mxu0 %v686_v7 }
  0x15   : > { %665 = vmatprep.subr.bf16.mxu0 %v700_v1 }
  0x18   : > { %666 = vmatpush3.bf16.msra.mxu0 %v687_v17 }
  0xe6   : > { %v376_v9 = vpop.f32.mrb[0].mxu0 }
  0xe7   : > { %v377_v10 = vadd.f32 %v623_v8, %v376_v9  ;;  %v653_v11 = vpop.f32.mrb[1].mxu0 }
  0xe8   : > { %v379_v12 = vpop.f32.mrb[2].mxu0 }
  0xe9   : > { %383 = vst.msk [vmem:[%s307_s25] sm:$0xff] %vm382_vm2, %v377_v10  ;;  %v654_v13 = vpop.f32.mrb[3].mxu0  ;;  %v384_v14 = vmax.f32 %v377_v10, 0.0 }
  0xeb   : > { %v385_v15 = vpack.c.bf16 %v384_v14, %v384_v14 }
  0xed   : > { %398 = vrot.lane.b32.xlu0 %v385_v15, %s702_s26 }
 0x15f   : > { %v399_v16 = vpop.permute.xlu0 %398 }
 0x160   : > { %660 = vmatmul.mubr.msk.bf16.vlgmr.msra.gmra.mrb[0].mxu1 %vm338_vm1, %v399_v16 }
 0x233   : > { %v449_v19 = vpop.f32.mrb[0].mxu1 }
 0x234   : > { %v450_v20 = vadd.f32 %v627_v18, %v449_v19  ;;  %v661_v21 = vpop.f32.mrb[1].mxu1 }
 0x235   : > { %v452_v22 = vpop.f32.mrb[2].mxu1 }
 0x236   : > { %v455_v23 = vmax.f32 %v450_v20, 0.0  ;;  %v662_v24 = vpop.f32.mrb[3].mxu1 }
 0x238   : > { %v456_v25 = vpack.c.bf16 %v455_v23, %v455_v23 }
 0x23a   : > { %668 = vmatmul.mubr.msk.bf16.vlgmr.msra.gmra.mrb[4].mxu0 %vm338_vm1, %v456_v25 }
 0x30d   : > { %v517_v27 = vpop.f32.mrb[4].mxu0 }
 0x30e   : > { %v518_v28 = vadd.f32 %v631_v26, %v517_v27  ;;  %v669_v29 = vpop.f32.mrb[5].mxu0 }
 0x30f   : > { %v520_v30 = vpop.f32.mrb[6].mxu0 }
 0x310   : > { %v635_v31 = vmul.f32 -1.442695, %v518_v28  ;;  %v670_v32 = vpop.f32.mrb[7].mxu0 }
 0x312   : > { %688 = vpow2.f32 %v635_v31 }
 0x31c   : > { %v689_v33 = vpop.eup %688 }
 0x31d   : > { %v526_v34 = vadd.f32 1.0, %v689_v33 }
 0x31f   : > { %690 = vrcp.f32 %v526_v34 }
 0x329   : > { %v691_v35 = vpop.eup %690 }
 0x32a   : > { %530 = vst.msk [vmem:[%s311_s15] sm:$0xff] %vm529_vm3, %v691_v35 }
 0x32b PF: > { %s19_s27 = sadd.s32 1, %s698_s27  }
 0x32c   : > { %p16_p4 = scmp.ge.s32.totalorder %s19_s27, 4  }
 0x32e   :  { %18 = sbr.rel (!%p16_p4) target bundleno = 1 (0x1), region = 90 }

// kernel: svanet_forward.4
= control target key start
LH: loop header
LB: loop body
LE: loop exit
PB: predicated region body
PF: predicated region fallthrough
CT: control target
= control target key end

     0   :  { %s964_s17 = smov 0   ;;  %s1076_s0 = inlined_call_operand.vmem [shape: f32[2,1,32], index: 0, kind: input, shape index: {}]   ;;  %s1077_s1 = inlined_call_operand.vmem [shape: f32[2,16,32], index: 1, kind: input, shape index: {}]   ;;  %s1078_s2 = inlined_call_operand.vmem [shape: f32[1,64], index: 2, kind: input, shape index: {}]   ;;  %s1079_s3 = inlined_call_operand.vmem [shape: f32[1,64], index: 3, kind: input, shape index: {}]   ;;  %s1080_s4 = inlined_call_operand.vmem [shape: bf16[32,32], index: 4, kind: input, shape index: {}]   ;;  %s1081_s5 = inlined_call_operand.vmem [shape: bf16[32,32], index: 5, kind: input, shape index: {}]   ;;  %s1082_s6 = inlined_call_operand.vmem [shape: f32[1,32], index: 6, kind: input, shape index: {}]   ;;  %s1083_s7 = inlined_call_operand.vmem [shape: f32[1,32], index: 7, kind: input, shape index: {}]   ;;  %s1084_s8 = inlined_call_operand.vmem [shape: f32[1,32], index: 8, kind: input, shape index: {}]   ;;  %s1085_s9 = inlined_call_operand.vmem [shape: bf16[32,32], index: 9, kind: input, shape index: {}]   ;;  %s1086_s10 = inlined_call_operand.vmem [shape: f32[1,32], index: 10, kind: input, shape index: {}]   ;;  %s1087_s11 = inlined_call_operand.vmem [shape: f32[2,16,32], index: 11, kind: output, shape index: {}]  }
   0x1 LB: > { %s807_s18 = sadd.s32 4294967295, %s899_s17   ;;  %p811_p0 = scmp.ge.s32.totalorder %s899_s17, 1  ;;  %s899_s17 = sphi %s964_s17, %s21_s17  }
   0x2   : > { %p345_p1 = scmp.lt.s32.totalorder %s899_s17, 3 }
   0x4   : > { %p346_p2 = pnand %p811_p0, %p345_p1 }
   0x5   : > { %p388_p3 = scmp.lt.s32.totalorder (!%p346_p2), %s807_s18, 1  ;;  %vm405_vm0 = vcmask (!%p346_p2), 253952   ;;  %vm413_vm1 = vcmask (!%p346_p2), 261120   ;;  %v1006_v12 = vld [vmem:[%s1079_s3] ss:$0 sm:$0xff] (!%p346_p2)  ;;  %s901_s28 = smov (!%p346_p2), 96   ;;  %v420_v19 = vlaneseq (!%p346_p2) }
   0x6   : > { %349 = sbr.rel (%p346_p2) target bundleno = 947 (0x3b3), region = 64  ;;  %v816_v13 = vld [vmem:[%s1078_s2] ss:$0 sm:$0xff] (!%p346_p2)  ;;  %v902_v14 = vmov (!%p346_p2), 0.0   ;;  %v881_v17 = vld [vmem:[%s1081_s5 + $0x8] sm:$0xff] (!%p346_p2)   ;;  %vm903_vm2 = vmmov (!%p346_p2), 0  }
   0x7   : > { %844 = vmatprep.subr.bf16.mxu0 (!%p346_p2), %v902_v14  ;;  %852 = vmatprep.subr.bf16.mxu1 (!%p346_p2), %v902_v14  ;;  %v879_v15 = vld [vmem:[%s1081_s5] sm:$0xff] (!%p346_p2)   ;;  %v882_v18 = vld [vmem:[%s1080_s4 + $0x8] sm:$0xff] (!%p346_p2)   ;;  %v421_v20 = vshrl.u32 (!%p346_p2), %v420_v19, 7 }
   0x8   : > { %v880_v16 = vld [vmem:[%s1080_s4] sm:$0xff] (!%p346_p2)   ;;  %845 = vmatpush3.bf16.msra.mxu0 (!%p346_p2), %v879_v15  ;;  %848 = vmatprep.mubr.msk.bf16.mxu0 (!%p346_p2), %vm903_vm2, %v902_v14 }
   0x9   : > { %853 = vmatpush3.bf16.msra.mxu1 (!%p346_p2), %v880_v16  ;;  %846 = vmatprep.subr.bf16.mxu0 (!%p346_p2), %v902_v14  ;;  %v422_v21 = vsub.s32 (!%p346_p2), 0, %v421_v20 }
   0xa   : > { %854 = vmatprep.subr.bf16.mxu1 (!%p346_p2), %v902_v14  ;;  %856 = vmatprep.mubr.msk.bf16.mxu1 (!%p346_p2), %vm903_vm2, %v902_v14 }
   0xc   : > { %847 = vmatpush3.bf16.msra.mxu0 (!%p346_p2), %v881_v17 }
   0xd   : > { %s1089_s18 = smov (!%p388_p3, %s807_s18), 1  ;;  %855 = vmatpush3.bf16.msra.mxu1 %v882_v18  ;;  %860 = vmatprep.subr.bf16.mxu0 %v902_v14 }
   0xe   : > { %s390_s21 = scalar_lea.vmem %s1076_s0, %s1089_s18  ;;  %s833_s22 = sshll.u32 %s1089_s18, 4 }
   0xf   : > { %v979_v0 = vld [vmem:[%s390_s21] sm:$0x1]  ;;  %s395_s25 = scalar_lea.vmem %s1077_s1, %s833_s22  ;;  %s400_s20 = scalar_lea.vmem %s1087_s11, %s833_s22 }
  0x10   : > { %v406_v1 = vsel %vm405_vm0, %v979_v0, 0.0  ;;  %v987_v2 = vld [vmem:[%s395_s25] sm:$0xff]  ;;  %v409_v3 = vmul.f32 %v979_v0, %v979_v0  ;;  %v991_v4 = vld [vmem:[%s395_s25 + $0x8] sm:$0xff]  ;;  %v459_v44 = vrot.slane %v979_v0, %v422_v21 }
  0x11   : > { %407 = vadd.xlane.f32.xlu0 %v406_v1  ;;  %v414_v5 = vsel %vm413_vm1, %v987_v2, 0.0  ;;  %v426_v7 = vmul.f32 %v987_v2, %v987_v2  ;;  %v417_v8 = vsel %vm413_vm1, %v991_v4, 0.0  ;;  %v427_v9 = vmul.f32 %v991_v4, %v991_v4 }
  0x12   : > { %415 = vadd.xlane.f32.xlu1 %v414_v5  ;;  %v410_v6 = vsel %vm405_vm0, %v409_v3, 0.0  ;;  %v824_v5 = vld [vmem:[%s1082_s6] ss:$0 sm:$0xff] }
  0x13   : > { %v428_v10 = vsel %vm413_vm1, %v426_v7, 0.0  ;;  %v431_v11 = vsel %vm413_vm1, %v427_v9, 0.0 }
  0x15   : > { %411 = vadd.xlane.f32.xlu0 %v410_v6 }
  0x16   : > { %418 = vadd.xlane.f32.xlu1 %v417_v8 }
  0x19   : > { %429 = vadd.xlane.f32.xlu0 %v428_v10 }
  0x1a   : > { %432 = vadd.xlane.f32.xlu1 %v431_v11 }
  0x2b   : > { %490 = vrot.lane.b32.xlu1 %v1006_v12, %s901_s28 }
  0x2f   : > { %485 = vrot.lane.b32.xlu0 %v816_v13, %s901_s28 }
  0x9e   : > { %v408_v22 = vpop.xlane.xlu0 %407 }
  0x9f   : > { %v423_v23 = vrot.slane %v408_v22, %v422_v21  ;;  %v416_v24 = vpop.xlane.xlu1 %415 }
  0xa1   : > { %v424_v25 = vadd.f32 %v423_v23, %v416_v24 }
  0xa2   : > { %v412_v26 = vpop.xlane.xlu0 %411 }
  0xa3   : > { %v437_v27 = vrot.slane %v412_v26, %v422_v21  ;;  %v419_v28 = vpop.xlane.xlu1 %418  ;;  %v441_v30 = vmul.f32 0.015625, %v424_v25 }
  0xa4   : > { %v425_v29 = vadd.f32 %v423_v23, %v419_v28 }
  0xa5   : > { %v445_v36 = vmul.f32 %v441_v30, %v441_v30  ;;  %v461_v45 = vsub.f32 %v459_v44, %v441_v30  ;;  %v481_v46 = vsub.f32 %v987_v2, %v441_v30 }
  0xa6   : > { %v442_v31 = vmul.f32 0.015625, %v425_v29  ;;  %v430_v32 = vpop.xlane.xlu0 %429 }
  0xa7   : > { %v438_v33 = vadd.f32 %v437_v27, %v430_v32  ;;  %v433_v34 = vpop.xlane.xlu1 %432  ;;  %v884_v32 = vld [vmem:[%s1085_s9 + $0x8] sm:$0xff]  }
  0xa8   : > { %v439_v35 = vadd.f32 %v437_v27, %v433_v34  ;;  %v446_v39 = vmul.f32 %v442_v31, %v442_v31  ;;  %v462_v48 = vsub.f32 %v459_v44, %v442_v31  ;;  %v482_v49 = vsub.f32 %v991_v4, %v442_v31  ;;  %v883_v31 = vld [vmem:[%s1085_s9] sm:$0xff]  }
  0xa9   : > { %v443_v37 = vmul.f32 0.015625, %v438_v33  ;;  %v826_v44 = vld [vmem:[%s1084_s8] ss:$0 sm:$0xff] }
  0xaa   : > { %v444_v38 = vmul.f32 0.015625, %v439_v35  ;;  %v486_v50 = vpop.permute.xlu0 %485 }
  0xab   : > { %v447_v40 = vsub.f32 %v443_v37, %v445_v36  ;;  %v491_v55 = vpop.permute.xlu1 %490 }
  0xac   : > { %v448_v41 = vsub.f32 %v444_v38, %v446_v39 }
  0xad   : > { %v449_v42 = vadd.f32 1e-05, %v447_v40  ;;  %v825_v40 = vld [vmem:[%s1083_s7] ss:$0 sm:$0xff] }
  0xae   : > { %v450_v43 = vadd.f32 1e-05, %v448_v41 }
  0xaf   : > { %885 = vrsqrt.f32 %v449_v42 }
  0xb0   : > { %887 = vrsqrt.f32 %v450_v43 }
  0xb9   : > { %v886_v47 = vpop.eup %885 }
  0xba   : > { %v888_v51 = vpop.eup %887  ;;  %v483_v52 = vmul.f32 %v886_v47, %v481_v46  ;;  %v463_v53 = vmul.f32 %v886_v47, %v461_v45 }
  0xbb   : > { %v484_v54 = vmul.f32 %v888_v51, %v482_v49  ;;  %v464_v56 = vmul.f32 %v888_v51, %v462_v48  ;;  %v827_v49 = vld [vmem:[%s1086_s10] ss:$0 sm:$0xff] }
  0xbc   : > { %v488_v57 = vmul.f32 %v486_v50, %v483_v52  ;;  %v471_v58 = vmul.f32 %v816_v13, %v463_v53 }
  0xbd   : > { %v489_v59 = vmul.f32 %v486_v50, %v484_v54  ;;  %v472_v60 = vmul.f32 %v816_v13, %v464_v56 }
  0xbe   : > { %v493_v61 = vadd.f32 %v491_v55, %v488_v57  ;;  %v479_v62 = vadd.f32 %v1006_v12, %v471_v58 }
  0xbf   : > { %v494_v63 = vadd.f32 %v491_v55, %v489_v59  ;;  %v480_v0 = vadd.f32 %v1006_v12, %v472_v60 }
  0xc1   : > { %v500_v1 = vpack.c.bf16 %v494_v63, %v493_v61  ;;  %v495_v2 = vpack.c.bf16 %v480_v0, %v479_v62 }
  0xc3   : > { %849 = vmatmul.mubr.msk.bf16.vlgmr.msra.gmra.mrb[0].mxu0 %vm413_vm1, %v500_v1  ;;  %857 = vmatmul.mubr.msk.bf16.vlgmr.msra.gmra.mrb[0].mxu1 %vm413_vm1, %v495_v2 }
  0xc4   : > { %864 = vmatprep.mubr.msk.bf16.mxu0 %vm903_vm2, %v902_v14  ;;  %861 = vmatpush3.bf16.msra.mxu0 %v883_v31 }
  0xc5   : > { %862 = vmatprep.subr.bf16.mxu0 %v902_v14 }
  0xc8   : > { %863 = vmatpush3.bf16.msra.mxu0 %v884_v32 }
 0x196   : > { %v554_v3 = vpop.f32.mrb[0].mxu0  ;;  %v610_v4 = vpop.f32.mrb[0].mxu1 }
 0x197   : > { %v611_v6 = vadd.f32 %v610_v4, %v554_v3  ;;  %v850_v7 = vpop.f32.mrb[1].mxu0  ;;  %v858_v8 = vpop.f32.mrb[1].mxu1 }
 0x198   : > { %v557_v9 = vpop.f32.mrb[2].mxu0  ;;  %v613_v10 = vpop.f32.mrb[2].mxu1 }
 0x199   : > { %v624_v11 = vadd.f32 %v824_v5, %v611_v6  ;;  %v614_v12 = vadd.f32 %v613_v10, %v557_v9  ;;  %v851_v13 = vpop.f32.mrb[3].mxu0  ;;  %v859_v15 = vpop.f32.mrb[3].mxu1 }
 0x19b   : > { %v625_v16 = vadd.f32 %v824_v5, %v614_v12  ;;  %v626_v17 = vmax.f32 %v624_v11, 0.0 }
 0x19d   : > { %v630_v18 = vsel %vm413_vm1, %v626_v17, 0.0  ;;  %v627_v19 = vmax.f32 %v625_v16, 0.0 }
 0x19e   : > { %631 = vadd.xlane.f32.xlu1 %v630_v18 }
 0x19f   : > { %v633_v20 = vsel %vm413_vm1, %v627_v19, 0.0 }
 0x1a0   : > { %634 = vadd.xlane.f32.xlu0 %v633_v20 }
 0x22b   : > { %v632_v21 = vpop.xlane.xlu1 %631 }
 0x22c   : > { %v637_v22 = vmul.f32 0.03125, %v632_v21 }
 0x22d   : > { %v635_v23 = vpop.xlane.xlu0 %634 }
 0x22e   : > { %v639_v24 = vsub.f32 %v626_v17, %v637_v22  ;;  %v638_v25 = vmul.f32 0.03125, %v635_v23 }
 0x230   : > { %v640_v26 = vsub.f32 %v627_v19, %v638_v25  ;;  %v641_v27 = vmul.f32 %v639_v24, %v639_v24 }
 0x232   : > { %v643_v28 = vsel %vm413_vm1, %v641_v27, 0.0  ;;  %v642_v29 = vmul.f32 %v640_v26, %v640_v26 }
 0x233   : > { %644 = vadd.xlane.f32.xlu0 %v643_v28 }
 0x234   : > { %v646_v30 = vsel %vm413_vm1, %v642_v29, 0.0 }
 0x235   : > { %647 = vadd.xlane.f32.xlu1 %v646_v30 }
 0x2c0   : > { %v645_v33 = vpop.xlane.xlu0 %644 }
 0x2c1   : > { %v649_v34 = vmul.f32 0.03125, %v645_v33 }
 0x2c2   : > { %v648_v35 = vpop.xlane.xlu1 %647 }
 0x2c3   : > { %v651_v36 = vadd.f32 1e-05, %v649_v34  ;;  %v650_v37 = vmul.f32 0.03125, %v648_v35 }
 0x2c5   : > { %889 = vrsqrt.f32 %v651_v36  ;;  %v652_v38 = vadd.f32 1e-05, %v650_v37 }
 0x2c7   : > { %891 = vrsqrt.f32 %v652_v38 }
 0x2cf   : > { %v890_v39 = vpop.eup %889 }
 0x2d0   : > { %v655_v14 = vmul.f32 %v890_v39, %v639_v24 }
 0x2d1   : > { %v892_v41 = vpop.eup %891 }
 0x2d2   : > { %v663_v42 = vmul.f32 %v825_v40, %v655_v14  ;;  %v656_v43 = vmul.f32 %v892_v41, %v640_v26 }
 0x2d4   : > { %v664_v45 = vmul.f32 %v825_v40, %v656_v43  ;;  %v671_v46 = vadd.f32 %v826_v44, %v663_v42 }
 0x2d6   : > { %v672_v47 = vadd.f32 %v826_v44, %v664_v45 }
 0x2d8   : > { %v673_v48 = vpack.c.bf16 %v672_v47, %v671_v46 }
 0x2da   : > { %865 = vmatmul.mubr.msk.bf16.vlgmr.msra.gmra.mrb[4].mxu0 %vm413_vm1, %v673_v48 }
 0x3ad   : > { %v734_v50 = vpop.f32.mrb[4].mxu0 }
 0x3ae   : > { %v735_v51 = vadd.f32 %v827_v49, %v734_v50  ;;  %v866_v52 = vpop.f32.mrb[5].mxu0 }
 0x3af   : > { %v737_v53 = vpop.f32.mrb[6].mxu0 }
 0x3b0   : > { %741 = vst.msk [vmem:[%s400_s20] sm:$0xff] %vm413_vm1, %v735_v51  ;;  %v738_v54 = vadd.f32 %v827_v49, %v737_v53  ;;  %v867_v55 = vpop.f32.mrb[7].mxu0 }
 0x3b2   : > { %742 = vst.msk [vmem:[%s400_s20 + $0x8] sm:$0xff] %vm413_vm1, %v738_v54 }
 0x3b3 PF: > { %s21_s17 = sadd.s32 1, %s899_s17  }
 0x3b4   : > { %p18_p4 = scmp.ge.s32.totalorder %s21_s17, 4  }
 0x3b6   :  { %20 = sbr.rel (!%p18_p4) target bundleno = 1 (0x1), region = 97 }

// kernel: svanet_forward.5
= control target key start
LH: loop header
LB: loop body
LE: loop exit
PB: predicated region body
PF: predicated region fallthrough
CT: control target
= control target key end

     0   :  { %s3665_s24 = smov 0   ;;  %s3667_s25 = smov 0   ;;  %s4190_s0 = inlined_call_operand.vmem [shape: f32[2,16,32], index: 0, kind: input, shape index: {}]   ;;  %s4191_s1 = inlined_call_operand.vmem [shape: f32[2,16,32], index: 1, kind: input, shape index: {}]   ;;  %s4192_s2 = inlined_call_operand.vmem [shape: f32[2,1,16], index: 2, kind: input, shape index: {}]   ;;  %s4193_s3 = inlined_call_operand.vmem [shape: bf16[2,32,64], index: 3, kind: input, shape index: {}]   ;;  %s4194_s4 = inlined_call_operand.vmem [shape: f32[2,1,64], index: 4, kind: input, shape index: {}]   ;;  %s4195_s5 = inlined_call_operand.vmem [shape: bf16[2,32,32], index: 5, kind: input, shape index: {}]   ;;  %s4196_s6 = inlined_call_operand.vmem [shape: f32[2,1,32], index: 6, kind: input, shape index: {}]   ;;  %s4197_s7 = inlined_call_operand.vmem [shape: bf16[2,32,32], index: 7, kind: input, shape index: {}]   ;;  %s4198_s8 = inlined_call_operand.vmem [shape: f32[2,1,32], index: 8, kind: input, shape index: {}]   ;;  %s4199_s9 = inlined_call_operand.vmem [shape: f32[2,1,32], index: 9, kind: input, shape index: {}]   ;;  %s4200_s10 = inlined_call_operand.vmem [shape: f32[2,1,32], index: 10, kind: input, shape index: {}]   ;;  %s4201_s11 = inlined_call_operand.vmem [shape: bf16[2,32,64], index: 11, kind: input, shape index: {}]   ;;  %s4202_s12 = inlined_call_operand.vmem [shape: f32[2,1,64], index: 12, kind: input, shape index: {}]   ;;  %s4203_s13 = inlined_call_operand.vmem [shape: bf16[2,64,32], index: 13, kind: input, shape index: {}]   ;;  %s4204_s14 = inlined_call_operand.vmem [shape: f32[2,1,32], index: 14, kind: input, shape index: {}]   ;;  %s4205_s15 = inlined_call_operand.vmem [shape: f32[2,1,32], index: 15, kind: input, shape index: {}]   ;;  %s4206_s16 = inlined_call_operand.vmem [shape: f32[2,1,32], index: 16, kind: input, shape index: {}]   ;;  %s4207_s17 = inlined_call_operand.vmem [shape: f32[2,16,32], index: 17, kind: output, shape index: {}]  }
   0x1   :  { %4214 = sst [smem:[#allocation10_spill]] %s4190_s0  ;;  %s3669_s26 = smov 0  }
   0x2   :  { %4215 = sst [smem:[#allocation11_spill]] %s4191_s1  ;;  %s3671_s27 = smov 0  }
   0x3   :  { %4216 = sst [smem:[#allocation12_spill]] %s4192_s2  ;;  %s3673_s28 = smov 0  }
   0x4   :  { %4217 = sst [smem:[#allocation13_spill]] %s4193_s3 }
   0x5   :  { %4218 = sst [smem:[#allocation14_spill]] %s4195_s5 }
   0x6   :  { %4219 = sst [smem:[#allocation15_spill]] %s4197_s7 }
   0x7   :  { %4220 = sst [smem:[#allocation16_spill]] %s4199_s9 }
   0x8   :  { %4221 = sst [smem:[#allocation17_spill]] %s4200_s10 }
   0x9   :  { %4222 = sst [smem:[#allocation18_spill]] %s4201_s11 }
   0xa   :  { %4223 = sst [smem:[#allocation19_spill]] %s4202_s12 }
   0xb   :  { %4224 = sst [smem:[#allocation20_spill]] %s4204_s14 }
   0xc   :  { %4225 = sst [smem:[#allocation21_spill]] %s4205_s15 }
   0xd   :  { %4226 = sst [smem:[#allocation22_spill]] %s4206_s16 }
   0xe   :  { %4227 = sst [smem:[#allocation23_spill]] %s4207_s17 }
   0xf LB: > { %4228 = sst [smem:[#allocation2_spill]] %s3546_s24  ;;  %s36_s29 = sadd.s32 1, %s3554_s26  ;;  %s3562_s28 = sphi %s3673_s28, %s27_s28   ;;  %s3558_s27 = sphi %s3671_s27, %s4271_s27   ;;  %s3554_s26 = sphi %s3669_s26, %s4270_s26   ;;  %s3550_s25 = sphi %s3667_s25, %s4269_s25   ;;  %s3546_s24 = sphi %s3665_s24, %s4268_s24  }
  0x10   : > { %4229 = sst [smem:[#allocation3_spill]] %s3554_s26  ;;  %s39_s0 = sadd.s32 1, %s3558_s27 }
  0x11   : > { %4230 = sst [smem:[#allocation4_spill]] %s3558_s27  ;;  %p37_p0 = scmp.ge.s32.totalorder %s36_s29, 2 }
  0x12   : > { %4231 = sst [smem:[#allocation5_spill]] %s3562_s28  ;;  %p3201_p1 = scmp.ge.s32.totalorder %s3562_s28, 1 }
  0x13   : > { %p639_p2 = scmp.lt.s32.totalorder %s3562_s28, 5  ;;  %s4273_s29 = smov (%p37_p0, %s36_s29), 0 }
  0x14   : > { %4232 = sst [smem:[#allocation6_spill]] %s4273_s29  ;;  %s4275_s0 = smov (!%p37_p0, %s39_s0), %s3558_s27 }
  0x15   : > { %p640_p3 = pnand %p3201_p1, %p639_p2  ;;  %p41_p4 = scmp.ge.s32.totalorder %s4275_s0, 2 }
  0x17   : > { %s4277_s0 = smov (%p41_p4, %s4275_s0), 0  ;;  %643 = sbr.rel (%p640_p3) target bundleno = 2781 (0xadd), region = 88 }
  0x18   : > { %4233 = sst [smem:[#allocation7_spill]] %s4277_s0 }
  0x1e   : > { %p751_p5 = scmp.lt.s32.totalorder %s3550_s25, 1  ;;  %p764_p6 = scmp.lt.s32.totalorder %s3546_s24, 1 }
  0x1f   : > { %s4236_s23 = sld [smem:[#allocation10_spill]]  ;;  %s4237_s26 = sld [smem:[#allocation11_spill]] }
  0x20   : > { %s4279_s25 = smov (!%p751_p5, %s3550_s25), 1  ;;  %s4238_s3 = sld [smem:[#allocation13_spill]] }
  0x21   : > { %4234 = sst [smem:[#allocation8_spill]] %s4279_s25  ;;  %s3271_s18 = sshll.u32 %s4279_s25, 4 }
  0x22   : > { %s3701_s30 = scalar_select %p764_p6, %s3546_s24, 1 }
  0x23   : > { %s4239_s5 = sld [smem:[#allocation14_spill]]  ;;  %s4241_s7 = sld [smem:[#allocation15_spill]] }
  0x24   : > { %s3273_s24 = sshll.u32 %s3701_s30, 4  ;;  %s4244_s11 = sld [smem:[#allocation18_spill]] }
  0x25   : > { %s755_s0 = scalar_lea.vmem %s4236_s23, %s3271_s18  ;;  %s3714_s28 = scalar_lea.vmem %s4237_s26, %s3271_s18 }
  0x26   : > { %s768_s1 = scalar_lea.vmem %s4238_s3, %s3273_s24  ;;  %s4246_s3 = sld [smem:[#allocation20_spill]] }
  0x27   : > { %s4247_s10 = sld [smem:[#allocation21_spill]]  ;;  %s4249_s26 = sld [smem:[#allocation23_spill]] }
  0x28   : > { %s4250_s16 = sld [smem:[#allocation2_spill]] }
  0x29   : > { %s3727_s22 = scalar_lea.vmem %s4239_s5, %s3273_s24  ;;  %s3736_s25 = scalar_lea.vmem %s4241_s7, %s3273_s24 }
  0x2a   : > { %4240 = sst [smem:[#allocation9_spill]] %s3727_s22  ;;  %s3753_s27 = scalar_lea.vmem %s4244_s11, %s3273_s24 }
  0x2b   : > { %s3277_s7 = sshll.u32 %s3701_s30, 5  ;;  %s4248_s11 = sld [smem:[#allocation22_spill]] }
  0x2c   : > { %s3763_s15 = scalar_lea.vmem %s4203_s13, %s3277_s7  ;;  %s809_s20 = scalar_lea.vmem %s4246_s3, %s3701_s30 }
  0x2d   : > { %s812_s22 = scalar_lea.vmem %s4247_s10, %s3701_s30  ;;  %s3780_s12 = scalar_lea.vmem %s4249_s26, %s3271_s18 }
  0x2e   : > { %p3218_p7 = scmp.ne.s32.totalorder %s4250_s16, 0 }
  0x2f   : > { %v826_v0 = vld [vmem:[%s755_s0] sm:$0xff] (!%p3218_p7)  ;;  %vm828_vm0 = vcmask (!%p3218_p7), 261120   ;;  %v827_v1 = vld [vmem:[%s755_s0 + $0x8] sm:$0xff] (!%p3218_p7) }
  0x30   : > { %825 = sbr.rel (%p3218_p7) target bundleno = 55 (0x37), region = 92  ;;  %829 = vst.msk [vmem:[%s3780_s12] sm:$0xff] (!%p3218_p7), %vm828_vm0, %v826_v0  ;;  %830 = vst.msk [vmem:[%s3780_s12 + $0x8] sm:$0xff] (!%p3218_p7), %vm828_vm0, %v827_v1 }
  0x31   : > { %s815_s9 = scalar_lea.vmem %s4248_s11, %s3701_s30 }
  0x37 PF: > { %v3470_v2 = vld [vmem:[%s768_s1] sm:$0xff]   ;;  %v3564_v3 = vmov 0.0   ;;  %v3471_v4 = vld [vmem:[%s768_s1 + $0x8] sm:$0xff]   ;;  %vm3565_vm1 = vmmov 0   ;;  %vm863_vm2 = vcmask 261120   ;;  %s4251_s7 = scalar_lea.vmem %s4194_s4, %s3701_s30  ;;  %s3566_s10 = smov 112   ;;  %v1006_v21 = vlaneseq }
  0x38   : > { %3312 = vmatprep.subr.bf16.mxu1 %v3564_v3  ;;  %3328 = vmatprep.subr.bf16.mxu0 %v3564_v3  ;;  %v3790_v5 = vld [vmem:[%s3780_s12] sm:$0xff]  ;;  %v3793_v6 = vld [vmem:[%s3780_s12 + $0x8] sm:$0xff]  ;;  %s3567_s11 = smov 120   ;;  %s3569_s0 = smov 96   ;;  %v3570_v19 = vmov 1983009808  }
  0x39   : > { %3313 = vmatpush3.bf16.msra.mxu1 %v3470_v2  ;;  %3316 = vmatprep.mubr.msk.bf16.mxu1 %vm3565_vm1, %v3564_v3  ;;  %v833_v7 = vld [vmem:[%s3714_s28] sm:$0xff]  ;;  %v834_v8 = vld [vmem:[%s3714_s28 + $0x8] sm:$0xff]  ;;  %s3568_s28 = smov 104   ;;  %v1004_v20 = vunpack.c.l.s4 %v3570_v19  ;;  %s4252_s18 = sld [smem:[#allocation9_spill]]  ;;  %v3571_v24 = vmov 1934713408   ;;  %v908_v53 = vpack.c.bf16 %v3793_v6, %v3790_v5 }
  0x3a   : > { %3314 = vmatprep.subr.bf16.mxu1 %v3564_v3  ;;  %v837_v9 = vadd.f32 %v833_v7, %v3790_v5  ;;  %3330 = vmatprep.mubr.msk.bf16.mxu0 %vm3565_vm1, %v3564_v3  ;;  %v838_v10 = vadd.f32 %v834_v8, %v3793_v6  ;;  %v3219_v12 = vld [vmem:[%s4251_s7] ss:$0 sm:$0xff]  ;;  %v1036_v25 = vunpack.c.l.s4 %v3571_v24  ;;  %v3820_v27 = vshrl.u32 %v1006_v21, 7  ;;  %s4253_s1 = sld [smem:[#allocation8_spill]]  ;;  %s4254_s14 = sld [smem:[#allocation12_spill]] }
  0x3b   : > { %v1005_v26 = vunpack.c.0.s8 %v1004_v20  ;;  %vm1873_vm3 = vcmask 64512   ;;  %vm2084_vm4 = vcmask 130048   ;;  %s4256_s23 = scalar_lea.vmem %s4196_s6, %s3701_s30  ;;  %s3572_s2 = smov 16   ;;  %vm2653_vm5 = vcmask 195584  }
  0x3c   : > { %v839_v11 = vpack.c.bf16 %v838_v10, %v837_v9  ;;  %v1037_v32 = vunpack.c.0.s8 %v1036_v25  ;;  %s3574_s29 = smov 24   ;;  %s4257_s5 = scalar_lea.vmem %s4198_s8, %s3701_s30  ;;  %vm2876_vm6 = vcmask 523264  }
  0x3d   : > { %3315 = vmatpush3.bf16.msra.mxu1 %v3471_v4  ;;  %v3826_v34 = vsub.s32 %v1005_v26, %v3820_v27 }
  0x3e   : > { %3320 = vmatprep.subr.bf16.mxu1 %v3564_v3  ;;  %v3832_v45 = vsub.s32 %v1037_v32, %v3820_v27 }
  0x3f   : > { %v3472_v33 = vld [vmem:[%s4252_s18] sm:$0xff]   ;;  %v3473_v46 = vld [vmem:[%s4252_s18 + $0x8] sm:$0xff]   ;;  %s4260_s18 = sld [smem:[#allocation17_spill]] }
  0x40   : > { %3317 = vmatmul.mubr.msk.bf16.vlgmr.msra.gmra.mrb[0].mxu1 %vm863_vm2, %v839_v11  ;;  %s4255_s19 = scalar_lea.vmem %s4254_s14, %s4253_s1  ;;  %s4262_s14 = sld [smem:[#allocation19_spill]] }
  0x41   : > { %3324 = vmatprep.mubr.msk.bf16.mxu1 %vm3565_vm1, %v3564_v3  ;;  %3321 = vmatpush3.bf16.msra.mxu1 %v3472_v33 }
  0x42   : > { %3322 = vmatprep.subr.bf16.mxu1 %v3564_v3 }
  0x45   : > { %3323 = vmatpush3.bf16.msra.mxu1 %v3473_v46  ;;  %s4261_s1 = scalar_lea.vmem %s4260_s18, %s3701_s30 }
  0x46   : > { %3334 = vmatprep.subr.bf16.mxu1 %v3564_v3 }
  0x48   : > { %3325 = vmatmul.mubr.msk.bf16.vlgmr.msra.gmra.mrb[4].mxu1 %vm863_vm2, %v908_v53 }
  0x49   : > { %3336 = vmatprep.mubr.msk.bf16.mxu1 %vm3565_vm1, %v3564_v3 }
 0x113   : > { %v901_v13 = vpop.f32.mrb[0].mxu1 }
 0x114   : > { %v902_v14 = vadd.f32 %v3219_v12, %v901_v13  ;;  %v3318_v15 = vpop.f32.mrb[1].mxu1 }
 0x115   : > { %v904_v16 = vpop.f32.mrb[2].mxu1 }
 0x116   : > { %989 = vrot.lane.b32.xlu1 %v902_v14, %s3566_s10  ;;  %983 = vrot.lane.b32.xlu0 %v902_v14, %s3567_s11  ;;  %v3319_v17 = vpop.f32.mrb[3].mxu1  ;;  %v905_v18 = vadd.f32 %v3219_v12, %v904_v16 }
 0x11a   : > { %991 = vrot.lane.b32.xlu1 %v905_v18, %s3566_s10  ;;  %985 = vrot.lane.b32.xlu0 %v905_v18, %s3567_s11 }
 0x11e   : > { %997 = vrot.lane.b32.xlu1 %v905_v18, %s3568_s28  ;;  %995 = vrot.lane.b32.xlu0 %v902_v14, %s3568_s28 }
 0x122   : > { %1275 = vrot.lane.b32.xlu1 %v905_v18, %s3569_s0  ;;  %1273 = vrot.lane.b32.xlu0 %v902_v14, %s3569_s0 }
 0x188   : > { %v990_v22 = vpop.permute.xlu1 %989  ;;  %v984_v23 = vpop.permute.xlu0 %983 }
 0x189   : > { %1277 = vrot.lane.b32.xlu0 %v984_v23, %s3569_s0  ;;  %v1001_v35 = vcombine.low %v902_v14, %v990_v22  ;;  %v1002_v36 = vcombine.high %v902_v14, %v990_v22 }
 0x18b   : > { %v1009_v51 = vrot.slane %v1001_v35, %v3826_v34  ;;  %v1016_v52 = vrot.slane %v1002_v36, %v3826_v34 }
 0x18c   : > { %v992_v28 = vpop.permute.xlu1 %991  ;;  %v986_v29 = vpop.permute.xlu0 %985 }
 0x18d   : > { %1281 = vrot.lane.b32.xlu0 %v990_v22, %s3569_s0  ;;  %1279 = vrot.lane.b32.xlu1 %v986_v29, %s3569_s0  ;;  %v1069_v30 = vcombine.low %v905_v18, %v992_v28  ;;  %v1070_v31 = vcombine.high %v905_v18, %v992_v28 }
 0x18f   : > { %v1077_v43 = vrot.slane %v1069_v30, %v3826_v34  ;;  %v1084_v44 = vrot.slane %v1070_v31, %v3826_v34 }
 0x190   : > { %v998_v37 = vpop.permute.xlu1 %997  ;;  %v996_v38 = vpop.permute.xlu0 %995 }
 0x191   : > { %v1085_v39 = vcombine.low %v986_v29, %v998_v37  ;;  %v1086_v40 = vcombine.high %v986_v29, %v998_v37  ;;  %v1017_v41 = vcombine.low %v984_v23, %v996_v38  ;;  %v1018_v42 = vcombine.high %v984_v23, %v996_v38  ;;  %1283 = vrot.lane.b32.xlu1 %v992_v28, %s3569_s0 }
 0x192   : > { %1285 = vrot.lane.b32.xlu0 %v996_v38, %s3569_s0 }
 0x193   : > { %v1093_v47 = vrot.slane %v1085_v39, %v3826_v34  ;;  %v1100_v48 = vrot.slane %v1086_v40, %v3826_v34  ;;  %v1025_v49 = vrot.slane %v1017_v41, %v3826_v34  ;;  %v1032_v50 = vrot.slane %v1018_v42, %v3826_v34 }
 0x195   : > { %v1101_v54 = vcombine.low %v1077_v43, %v1093_v47  ;;  %v1102_v55 = vcombine.high %v1077_v43, %v1093_v47  ;;  %v1117_v56 = vcombine.low %v1084_v44, %v1100_v48  ;;  %v1118_v57 = vcombine.high %v1084_v44, %v1100_v48  ;;  %1287 = vrot.lane.b32.xlu1 %v998_v37, %s3569_s0 }
 0x196   : > { %v1033_v58 = vcombine.low %v1009_v51, %v1025_v49  ;;  %v1034_v59 = vcombine.high %v1009_v51, %v1025_v49  ;;  %v1049_v60 = vcombine.low %v1016_v52, %v1032_v50  ;;  %v1050_v61 = vcombine.high %v1016_v52, %v1032_v50 }
 0x197   : > { %v1109_v62 = vrot.slane %v1101_v54, %v3832_v45  ;;  %v1116_v63 = vrot.slane %v1102_v55, %v3832_v45  ;;  %v1125_v0 = vrot.slane %v1117_v56, %v3832_v45  ;;  %v1132_v1 = vrot.slane %v1118_v57, %v3832_v45  ;;  %v1274_v54 = vpop.permute.xlu0 %1273  ;;  %v1276_v55 = vpop.permute.xlu1 %1275 }
 0x198   : > { %v1041_v2 = vrot.slane %v1033_v58, %v3832_v45  ;;  %v1048_v4 = vrot.slane %v1034_v59, %v3832_v45  ;;  %v1057_v5 = vrot.slane %v1049_v60, %v3832_v45  ;;  %v1064_v6 = vrot.slane %v1050_v61, %v3832_v45 }
 0x199   : > { %v1205_v7 = vcombine.low %v1109_v62, %v1116_v63  ;;  %v3229_v8 = vcombine.high %v1109_v62, %v1116_v63  ;;  %v1221_v9 = vcombine.low %v1125_v0, %v1132_v1  ;;  %v3230_v10 = vcombine.high %v1125_v0, %v1132_v1 }
 0x19a   : > { %v1137_v11 = vcombine.low %v1041_v2, %v1048_v4  ;;  %v3227_v12 = vcombine.high %v1041_v2, %v1048_v4  ;;  %v1153_v13 = vcombine.low %v1057_v5, %v1064_v6  ;;  %v3228_v14 = vcombine.high %v1057_v5, %v1064_v6 }
 0x19b   : > { %v1212_v15 = vrot.slane %v1205_v7, %v3826_v34  ;;  %v1220_v16 = vrot.slane %v3229_v8, %v3826_v34  ;;  %v1228_v17 = vrot.slane %v1221_v9, %v3826_v34  ;;  %v1236_v18 = vrot.slane %v3230_v10, %v3826_v34 }
 0x19c   : > { %v1144_v19 = vrot.slane %v1137_v11, %v3826_v34  ;;  %v1152_v20 = vrot.slane %v3227_v12, %v3826_v34  ;;  %v1160_v21 = vrot.slane %v1153_v13, %v3826_v34  ;;  %v1168_v22 = vrot.slane %v3228_v14, %v3826_v34 }
 0x19d   : > { %v1238_v23 = vcombine.high %v1212_v15, %v1220_v16  ;;  %v1254_v24 = vcombine.high %v1228_v17, %v1236_v18  ;;  %v1237_v25 = vcombine.low %v1212_v15, %v1220_v16  ;;  %v1253_v32 = vcombine.low %v1228_v17, %v1236_v18 }
 0x19e   : > { %v1170_v26 = vcombine.high %v1144_v19, %v1152_v20  ;;  %v1186_v28 = vcombine.high %v1160_v21, %v1168_v22  ;;  %v1169_v29 = vcombine.low %v1144_v19, %v1152_v20  ;;  %v1185_v30 = vcombine.low %v1160_v21, %v1168_v22 }
 0x19f   : > { %v1245_v31 = vrot.slane %v1237_v25, %v3832_v45  ;;  %v1252_v33 = vrot.slane %v1238_v23, %v3832_v45  ;;  %v1268_v35 = vrot.slane %v1254_v24, %v3832_v45  ;;  %v1261_v40 = vrot.slane %v1253_v32, %v3832_v45 }
 0x1a0   : > { %v1177_v36 = vrot.slane %v1169_v29, %v3832_v45  ;;  %v1193_v37 = vrot.slane %v1185_v30, %v3832_v45  ;;  %v1184_v38 = vrot.slane %v1170_v26, %v3832_v45  ;;  %v1200_v39 = vrot.slane %v1186_v28, %v3832_v45 }
 0x1a1   : > { %v1271_v41 = vcombine.low %v1252_v33, %v1268_v35  ;;  %v1272_v42 = vcombine.high %v1252_v33, %v1268_v35  ;;  %v1269_v48 = vcombine.low %v1245_v31, %v1261_v40  ;;  %v1270_v49 = vcombine.high %v1245_v31, %v1261_v40 }
 0x1a2   : > { %v1201_v43 = vcombine.low %v1177_v36, %v1193_v37  ;;  %v1202_v44 = vcombine.high %v1177_v36, %v1193_v37  ;;  %v1203_v46 = vcombine.low %v1184_v38, %v1200_v39  ;;  %v1204_v47 = vcombine.high %v1184_v38, %v1200_v39 }
 0x1a4   : > { %v3874_v50 = vpack.c.bf16 %v1271_v41, %v1203_v46  ;;  %v3876_v51 = vpack.c.bf16 %v1272_v42, %v1204_v47  ;;  %v3878_v52 = vpack.c.bf16 %v1269_v48, %v1201_v43  ;;  %v3880_v53 = vpack.c.bf16 %v1270_v49, %v1202_v44 }
 0x1fb   : > { %v1278_v56 = vpop.permute.xlu0 %1277 }
 0x1ff   : > { %v1280_v57 = vpop.permute.xlu1 %1279  ;;  %v1282_v58 = vpop.permute.xlu0 %1281 }
 0x200   : > { %v1297_v59 = vcombine.low %v1274_v54, %v1282_v58  ;;  %v1298_v60 = vcombine.high %v1274_v54, %v1282_v58 }
 0x202   : > { %v1305_v4 = vrot.slane %v1297_v59, %v3826_v34  ;;  %v1312_v5 = vrot.slane %v1298_v60, %v3826_v34 }
 0x203   : > { %v1284_v61 = vpop.permute.xlu1 %1283 }
 0x204   : > { %v1286_v62 = vpop.permute.xlu0 %1285  ;;  %v1365_v1 = vcombine.low %v1276_v55, %v1284_v61  ;;  %v1366_v2 = vcombine.high %v1276_v55, %v1284_v61 }
 0x205   : > { %v1313_v63 = vcombine.low %v1278_v56, %v1286_v62  ;;  %v1314_v0 = vcombine.high %v1278_v56, %v1286_v62 }
 0x206   : > { %v1373_v15 = vrot.slane %v1365_v1, %v3826_v34  ;;  %v1380_v16 = vrot.slane %v1366_v2, %v3826_v34 }
 0x207   : > { %v1321_v6 = vrot.slane %v1313_v63, %v3826_v34  ;;  %v1328_v7 = vrot.slane %v1314_v0, %v3826_v34  ;;  %v1288_v8 = vpop.permute.xlu1 %1287 }
 0x208   : > { %v1381_v9 = vcombine.low %v1280_v57, %v1288_v8  ;;  %v1382_v10 = vcombine.high %v1280_v57, %v1288_v8 }
 0x209   : > { %v1329_v11 = vcombine.low %v1305_v4, %v1321_v6  ;;  %v1330_v12 = vcombine.high %v1305_v4, %v1321_v6  ;;  %v1345_v13 = vcombine.low %v1312_v5, %v1328_v7  ;;  %v1346_v14 = vcombine.high %v1312_v5, %v1328_v7 }
 0x20a   : > { %v1389_v17 = vrot.slane %v1381_v9, %v3826_v34  ;;  %v1396_v18 = vrot.slane %v1382_v10, %v3826_v34 }
 0x20b   : > { %v1337_v19 = vrot.slane %v1329_v11, %v3832_v45  ;;  %v1344_v20 = vrot.slane %v1330_v12, %v3832_v45  ;;  %v1353_v21 = vrot.slane %v1345_v13, %v3832_v45  ;;  %v1360_v22 = vrot.slane %v1346_v14, %v3832_v45 }
 0x20c   : > { %v1397_v23 = vcombine.low %v1373_v15, %v1389_v17  ;;  %v1398_v24 = vcombine.high %v1373_v15, %v1389_v17  ;;  %v1413_v25 = vcombine.low %v1380_v16, %v1396_v18  ;;  %v1414_v26 = vcombine.high %v1380_v16, %v1396_v18 }
 0x20d   : > { %v1433_v28 = vcombine.low %v1337_v19, %v1344_v20  ;;  %v3231_v29 = vcombine.high %v1337_v19, %v1344_v20  ;;  %v1449_v30 = vcombine.low %v1353_v21, %v1360_v22  ;;  %v3232_v31 = vcombine.high %v1353_v21, %v1360_v22 }
 0x20e   : > { %v1405_v32 = vrot.slane %v1397_v23, %v3832_v45  ;;  %v1412_v33 = vrot.slane %v1398_v24, %v3832_v45  ;;  %v1421_v35 = vrot.slane %v1413_v25, %v3832_v45  ;;  %v1428_v36 = vrot.slane %v1414_v26, %v3832_v45  ;;  %v835_v25 = vld [vmem:[%s4255_s19] sm:$0x1]  ;;  %s4263_s19 = scalar_lea.vmem %s4262_s14, %s3701_s30 }
 0x20f   : > { %v1440_v37 = vrot.slane %v1433_v28, %v3826_v34  ;;  %v1448_v38 = vrot.slane %v3231_v29, %v3826_v34  ;;  %v1456_v39 = vrot.slane %v1449_v30, %v3826_v34  ;;  %v1464_v40 = vrot.slane %v3232_v31, %v3826_v34 }
 0x210   : > { %v1501_v41 = vcombine.low %v1405_v32, %v1412_v33  ;;  %v3233_v42 = vcombine.high %v1405_v32, %v1412_v33  ;;  %v1517_v43 = vcombine.low %v1421_v35, %v1428_v36  ;;  %v3234_v44 = vcombine.high %v1421_v35, %v1428_v36 }
 0x211   : > { %v1465_v46 = vcombine.low %v1440_v37, %v1448_v38  ;;  %v1481_v47 = vcombine.low %v1456_v39, %v1464_v40  ;;  %v1466_v0 = vcombine.high %v1440_v37, %v1448_v38  ;;  %v1482_v1 = vcombine.high %v1456_v39, %v1464_v40 }
 0x212   : > { %v1508_v48 = vrot.slane %v1501_v41, %v3826_v34  ;;  %v1516_v49 = vrot.slane %v3233_v42, %v3826_v34  ;;  %v1524_v54 = vrot.slane %v1517_v43, %v3826_v34  ;;  %v1532_v55 = vrot.slane %v3234_v44, %v3826_v34 }
 0x213   : > { %v1473_v56 = vrot.slane %v1465_v46, %v3832_v45  ;;  %v1489_v57 = vrot.slane %v1481_v47, %v3832_v45  ;;  %v1480_v11 = vrot.slane %v1466_v0, %v3832_v45  ;;  %v1496_v12 = vrot.slane %v1482_v1, %v3832_v45 }
 0x214   : > { %v1533_v58 = vcombine.low %v1508_v48, %v1516_v49  ;;  %v1549_v59 = vcombine.low %v1524_v54, %v1532_v55  ;;  %v1534_v60 = vcombine.high %v1508_v48, %v1516_v49  ;;  %v1550_v61 = vcombine.high %v1524_v54, %v1532_v55 }
 0x215   : > { %v1497_v2 = vcombine.low %v1473_v56, %v1489_v57  ;;  %v1498_v4 = vcombine.high %v1473_v56, %v1489_v57  ;;  %v1499_v17 = vcombine.low %v1480_v11, %v1496_v12  ;;  %v1500_v18 = vcombine.high %v1480_v11, %v1496_v12 }
 0x216   : > { %v1541_v62 = vrot.slane %v1533_v58, %v3832_v45  ;;  %v1557_v63 = vrot.slane %v1549_v59, %v3832_v45  ;;  %v1548_v7 = vrot.slane %v1534_v60, %v3832_v45  ;;  %v1564_v8 = vrot.slane %v1550_v61, %v3832_v45 }
 0x217   : > { %v836_v26 = vmul.f32 -1e+09, %v835_v25 }
 0x218   : > { %v1565_v5 = vcombine.low %v1541_v62, %v1557_v63  ;;  %v1566_v6 = vcombine.high %v1541_v62, %v1557_v63  ;;  %v1567_v15 = vcombine.low %v1548_v7, %v1564_v8  ;;  %v1568_v16 = vcombine.high %v1548_v7, %v1564_v8 }
 0x21a   : > { %v1865_v9 = vpack.c.bf16 %v1565_v5, %v1497_v2  ;;  %v1866_v10 = vpack.c.bf16 %v1566_v6, %v1498_v4  ;;  %v1867_v19 = vpack.c.bf16 %v1567_v15, %v1499_v17  ;;  %v1868_v20 = vpack.c.bf16 %v1568_v16, %v1500_v18 }
 0x21c   : > { %v1878_v13 = vsel %vm1873_vm3, %v1865_v9, 0  ;;  %v1925_v14 = vsel %vm1873_vm3, %v1866_v10, 0  ;;  %v1972_v21 = vsel %vm1873_vm3, %v1867_v19, 0  ;;  %v2019_v22 = vsel %vm1873_vm3, %v1868_v20, 0  ;;  %v3223_v10 = vld [vmem:[%s4256_s23] ss:$0 sm:$0xff] }
 0x21d   : > { %3329 = vmatpush3.bf16.xpose.msra.mxu0 %v1878_v13  ;;  %3335 = vmatpush3.bf16.xpose.msra.mxu1 %v1925_v14 }
 0x21e   : > { %3340 = vmatprep.subr.bf16.mxu0 %v3564_v3  ;;  %3346 = vmatprep.subr.bf16.mxu1 %v3564_v3 }
 0x224   : > { %3331 = vmatmul.mubr.msk.bf16.vlgmr.msra.gmra.mrb[0].mxu0 %vm1873_vm3, %v3878_v52  ;;  %3337 = vmatmul.mubr.msk.bf16.vlgmr.msra.gmra.mrb[8].mxu1 %vm1873_vm3, %v3880_v53  ;;  %v969_v52 = vpop.f32.mrb[4].mxu1 }
 0x225   : > { %3341 = vmatpush3.bf16.xpose.msra.mxu0 %v1972_v21  ;;  %3347 = vmatpush3.bf16.xpose.msra.mxu1 %v2019_v22  ;;  %v3326_v53 = vpop.f32.mrb[5].mxu1  ;;  %v3960_v11 = vadd.f32 %v3223_v10, %v969_v52 }
 0x226   : > { %3342 = vmatprep.mubr.msk.bf16.mxu0 %vm3565_vm1, %v3564_v3  ;;  %3348 = vmatprep.mubr.msk.bf16.mxu1 %vm3565_vm1, %v3564_v3  ;;  %v972_v23 = vpop.f32.mrb[6].mxu1 }
 0x227   : > { %3352 = vmatprep.subr.bf16.mxu0 %v3564_v3  ;;  %3358 = vmatprep.subr.bf16.mxu1 %v3564_v3  ;;  %v3327_v24 = vpop.f32.mrb[7].mxu1  ;;  %v3966_v12 = vadd.f32 %v3223_v10, %v972_v23 }
 0x22c   : > { %3343 = vmatmul.mubr.msk.bf16.vlgmr.msra.gmra.mrb[4].mxu0 %vm1873_vm3, %v3874_v50  ;;  %3349 = vmatmul.mubr.msk.bf16.vlgmr.msra.gmra.mrb[12].mxu1 %vm1873_vm3, %v3876_v51  ;;  %v2073_v50 = vsub.s32 0, %v3820_v27 }
 0x22d   : > { %3354 = vmatprep.mubr.msk.bf16.mxu0 %vm3565_vm1, %v3564_v3  ;;  %3360 = vmatprep.mubr.msk.bf16.mxu1 %vm3565_vm1, %v3564_v3 }
 0x22e   : > { %v2074_v28 = vrot.slane %v836_v26, %v2073_v50 }
 0x2f7   : > { %v1914_v51 = vpop.f32.mrb[0].mxu0  ;;  %v1961_v29 = vpop.f32.mrb[8].mxu1 }
 0x2f8   : > { %v2062_v30 = vmul.f32 0.35355338, %v1914_v51  ;;  %v2064_v31 = vmul.f32 0.35355338, %v1961_v29  ;;  %v3332_v32 = vpop.f32.mrb[1].mxu0  ;;  %v3338_v33 = vpop.f32.mrb[9].mxu1 }
 0x2f9   : > { %v1917_v35 = vpop.f32.mrb[2].mxu0  ;;  %v1964_v36 = vpop.f32.mrb[10].mxu1 }
 0x2fa   : > { %v2063_v37 = vmul.f32 0.35355338, %v1917_v35  ;;  %v3333_v38 = vpop.f32.mrb[3].mxu0  ;;  %v3339_v39 = vpop.f32.mrb[11].mxu1  ;;  %v2076_v40 = vadd.f32 %v2074_v28, %v2062_v30  ;;  %v2065_v41 = vmul.f32 0.35355338, %v1964_v36  ;;  %v2078_v42 = vadd.f32 %v2074_v28, %v2064_v31 }
 0x2fc   : > { %v2085_v43 = vsel %vm2084_vm4, %v2076_v40, -inf  ;;  %v2077_v44 = vadd.f32 %v2074_v28, %v2063_v37  ;;  %v2091_v48 = vsel %vm2084_vm4, %v2078_v42, -inf  ;;  %v2079_v49 = vadd.f32 %v2074_v28, %v2065_v41 }
 0x2fd   : > { %2086 = vmax.xlane.f32.xlu0 %v2085_v43 }
 0x2fe   : > { %v2088_v27 = vsel %vm2084_vm4, %v2077_v44, -inf  ;;  %v2094_v0 = vsel %vm2084_vm4, %v2079_v49, -inf }
 0x2ff   : > { %2089 = vmax.xlane.f32.xlu1 %v2088_v27  ;;  %v2008_v46 = vpop.f32.mrb[4].mxu0  ;;  %v2055_v47 = vpop.f32.mrb[12].mxu1 }
 0x300   : > { %v2066_v54 = vmul.f32 0.35355338, %v2008_v46  ;;  %v2068_v55 = vmul.f32 0.35355338, %v2055_v47  ;;  %v3344_v56 = vpop.f32.mrb[5].mxu0  ;;  %v3350_v57 = vpop.f32.mrb[13].mxu1 }
 0x301   : > { %v2011_v58 = vpop.f32.mrb[6].mxu0  ;;  %2092 = vmax.xlane.f32.xlu0 %v2091_v48  ;;  %v2058_v59 = vpop.f32.mrb[14].mxu1 }
 0x302   : > { %v2067_v60 = vmul.f32 0.35355338, %v2011_v58  ;;  %v3345_v61 = vpop.f32.mrb[7].mxu0  ;;  %v3351_v62 = vpop.f32.mrb[15].mxu1  ;;  %v2080_v63 = vadd.f32 %v2074_v28, %v2066_v54  ;;  %v2069_v1 = vmul.f32 0.35355338, %v2058_v59  ;;  %v2082_v5 = vadd.f32 %v2074_v28, %v2068_v55 }
 0x304   : > { %v2097_v2 = vsel %vm2084_vm4, %v2080_v63, -inf  ;;  %v3949_v4 = vadd.f32 %v2074_v28, %v2067_v60  ;;  %v2103_v7 = vsel %vm2084_vm4, %v2082_v5, -inf  ;;  %v2083_v8 = vadd.f32 %v2074_v28, %v2069_v1 }
 0x305   : > { %2098 = vmax.xlane.f32.xlu1 %v2097_v2  ;;  %2095 = vmax.xlane.f32.xlu0 %v2094_v0 }
 0x306   : > { %v2100_v6 = vsel %vm2084_vm4, %v3949_v4, -inf  ;;  %v2106_v9 = vsel %vm2084_vm4, %v2083_v8, -inf }
 0x309   : > { %2101 = vmax.xlane.f32.xlu0 %v2100_v6  ;;  %2104 = vmax.xlane.f32.xlu1 %v2103_v7 }
 0x30d   : > { %2107 = vmax.xlane.f32.xlu0 %v2106_v9 }
 0x31a   : > { %1571 = vrot.lane.b32.xlu1 %v3960_v11, %s3567_s11 }
 0x31e   : > { %1577 = vrot.lane.b32.xlu1 %v3960_v11, %s3566_s10 }
 0x322   : > { %1579 = vrot.lane.b32.xlu1 %v3966_v12, %s3566_s10  ;;  %s4258_s10 = sld [smem:[#allocation16_spill]] }
 0x323   : > { %1573 = vrot.lane.b32.xlu0 %v3966_v12, %s3567_s11 }
 0x327   : > { %1583 = vrot.lane.b32.xlu0 %v3960_v11, %s3568_s28 }
 0x328   : > { %s4259_s11 = scalar_lea.vmem %s4258_s10, %s3701_s30 }
 0x38a   : > { %v2087_v13 = vpop.xlane.xlu0 %2086 }
 0x38b   : > { %v2109_v14 = vsub.f32 %v2076_v40, %v2087_v13 }
 0x38c   : > { %v2090_v15 = vpop.xlane.xlu1 %2089 }
 0x38d   : > { %v2117_v16 = vmul.f32 1.442695, %v2109_v14  ;;  %v2110_v17 = vsub.f32 %v2077_v44, %v2090_v15 }
 0x38e   : > { %v2093_v18 = vpop.xlane.xlu0 %2092 }
 0x38f   : > { %3482 = vpow2.f32 %v2117_v16  ;;  %v2119_v19 = vmul.f32 1.442695, %v2110_v17  ;;  %v2111_v20 = vsub.f32 %v2078_v42, %v2093_v18 }
 0x391   : > { %3484 = vpow2.f32 %v2119_v19  ;;  %v2121_v21 = vmul.f32 1.442695, %v2111_v20 }
 0x392   : > { %v2099_v22 = vpop.xlane.xlu1 %2098  ;;  %v2096_v52 = vpop.xlane.xlu0 %2095 }
 0x393   : > { %3486 = vpow2.f32 %v2121_v21  ;;  %v2113_v53 = vsub.f32 %v2080_v63, %v2099_v22  ;;  %v2112_v23 = vsub.f32 %v2079_v49, %v2096_v52 }
 0x395   : > { %v2123_v24 = vmul.f32 1.442695, %v2112_v23  ;;  %v2125_v50 = vmul.f32 1.442695, %v2113_v53 }
 0x396   : > { %v2102_v25 = vpop.xlane.xlu0 %2101  ;;  %v2105_v26 = vpop.xlane.xlu1 %2104 }
 0x397   : > { %v2115_v28 = vsub.f32 %v2082_v5, %v2105_v26  ;;  %3488 = vpow2.f32 %v2123_v24  ;;  %v2114_v47 = vsub.f32 %v3949_v4, %v2102_v25 }
 0x398   : > { %3490 = vpow2.f32 %v2125_v50 }
 0x399   : > { %v3974_v51 = vpop.eup %3482  ;;  %v2129_v32 = vmul.f32 1.442695, %v2115_v28  ;;  %v2127_v48 = vmul.f32 1.442695, %v2114_v47 }
 0x39a   : > { %v2108_v29 = vpop.xlane.xlu0 %2107  ;;  %v2133_v30 = vsel %vm2084_vm4, %v3974_v51, 0.0  ;;  %v1572_v56 = vpop.permute.xlu1 %1571 }
 0x39b   : > { %v3978_v31 = vpop.eup %3484  ;;  %v2116_v33 = vsub.f32 %v2083_v8, %v2108_v29  ;;  %2134 = vadd.xlane.f32.xlu1 %v2133_v30  ;;  %3492 = vpow2.f32 %v2129_v32 }
 0x39c   : > { %v2136_v35 = vsel %vm2084_vm4, %v3978_v31, 0.0 }
 0x39d   : > { %v3982_v36 = vpop.eup %3486  ;;  %2137 = vadd.xlane.f32.xlu0 %v2136_v35  ;;  %v2131_v38 = vmul.f32 1.442695, %v2116_v33 }
 0x39e   : > { %v2139_v37 = vsel %vm2084_vm4, %v3982_v36, 0.0  ;;  %v1574_v55 = vpop.permute.xlu0 %1573  ;;  %v1578_v58 = vpop.permute.xlu1 %1577 }
 0x39f   : > { %2140 = vadd.xlane.f32.xlu1 %v2139_v37  ;;  %3494 = vpow2.f32 %v2131_v38  ;;  %v1589_v61 = vcombine.low %v3960_v11, %v1578_v58  ;;  %v1590_v62 = vcombine.high %v3960_v11, %v1578_v58 }
 0x3a0   : > { %3496 = vpow2.f32 %v2127_v48 }
 0x3a1   : > { %v3986_v39 = vpop.eup %3488  ;;  %v1597_v2 = vrot.slane %v1589_v61, %v3826_v34  ;;  %v1604_v4 = vrot.slane %v1590_v62, %v3826_v34 }
 0x3a2   : > { %v2142_v40 = vsel %vm2084_vm4, %v3986_v39, 0.0  ;;  %v3990_v41 = vpop.eup %3490  ;;  %v1584_v57 = vpop.permute.xlu0 %1583 }
 0x3a3   : > { %2143 = vadd.xlane.f32.xlu0 %v2142_v40  ;;  %v2145_v42 = vsel %vm2084_vm4, %v3990_v41, 0.0  ;;  %v1605_v59 = vcombine.low %v1572_v56, %v1584_v57  ;;  %v1606_v60 = vcombine.high %v1572_v56, %v1584_v57  ;;  %v1580_v0 = vpop.permute.xlu1 %1579 }
 0x3a4   : > { %v1657_v16 = vcombine.low %v3966_v12, %v1580_v0  ;;  %v1658_v17 = vcombine.high %v3966_v12, %v1580_v0 }
 0x3a5   : > { %v3994_v43 = vpop.eup %3492  ;;  %v1613_v63 = vrot.slane %v1605_v59, %v3826_v34  ;;  %v1620_v1 = vrot.slane %v1606_v60, %v3826_v34 }
 0x3a6   : > { %v2151_v44 = vsel %vm2084_vm4, %v3994_v43, 0.0  ;;  %v1665_v24 = vrot.slane %v1657_v16, %v3826_v34  ;;  %v1672_v25 = vrot.slane %v1658_v17, %v3826_v34 }
 0x3a7   : > { %2146 = vadd.xlane.f32.xlu0 %v2145_v42  ;;  %v1621_v5 = vcombine.low %v1597_v2, %v1613_v63  ;;  %v1622_v6 = vcombine.high %v1597_v2, %v1613_v63  ;;  %v1637_v7 = vcombine.low %v1604_v4, %v1620_v1  ;;  %v1638_v8 = vcombine.high %v1604_v4, %v1620_v1 }
 0x3a9   : > { %v3998_v27 = vpop.eup %3494  ;;  %v1629_v10 = vrot.slane %v1621_v5, %v3832_v45  ;;  %v1636_v13 = vrot.slane %v1622_v6, %v3832_v45  ;;  %v1645_v11 = vrot.slane %v1637_v7, %v3832_v45  ;;  %v1652_v14 = vrot.slane %v1638_v8, %v3832_v45 }
 0x3aa   : > { %v2154_v46 = vsel %vm2084_vm4, %v3998_v27, 0.0  ;;  %v4005_v49 = vpop.eup %3496 }
 0x3ab   : > { %2152 = vadd.xlane.f32.xlu0 %v2151_v44  ;;  %v2148_v54 = vsel %vm2084_vm4, %v4005_v49, 0.0  ;;  %v1725_v19 = vcombine.low %v1629_v10, %v1636_v13  ;;  %v3235_v20 = vcombine.high %v1629_v10, %v1636_v13  ;;  %v1741_v21 = vcombine.low %v1645_v11, %v1652_v14 }
 0x3ac   : > { %v3236_v22 = vcombine.high %v1645_v11, %v1652_v14 }
 0x3ad   : > { %v1732_v50 = vrot.slane %v1725_v19, %v3826_v34  ;;  %v1740_v29 = vrot.slane %v3235_v20, %v3826_v34  ;;  %v1748_v30 = vrot.slane %v1741_v21, %v3826_v34 }
 0x3ae   : > { %v1756_v32 = vrot.slane %v3236_v22, %v3826_v34 }
 0x3af   : > { %2155 = vadd.xlane.f32.xlu0 %v2154_v46  ;;  %v1757_v48 = vcombine.low %v1732_v50, %v1740_v29  ;;  %v1758_v4 = vcombine.high %v1732_v50, %v1740_v29 }
 0x3b0   : > { %1585 = vrot.lane.b32.xlu1 %v3966_v12, %s3568_s28  ;;  %v1774_v5 = vcombine.high %v1748_v30, %v1756_v32 }
 0x3b1   : > { %v1765_v1 = vrot.slane %v1757_v48, %v3832_v45 }
 0x3b2   : > { %v1788_v19 = vrot.slane %v1774_v5, %v3832_v45 }
 0x3d4   : > { %2149 = vadd.xlane.f32.xlu1 %v2148_v54  ;;  %v1773_v54 = vcombine.low %v1748_v30, %v1756_v32 }
 0x3d6   : > { %v1781_v2 = vrot.slane %v1773_v54, %v3832_v45 }
 0x3d8   : > { %v1789_v21 = vcombine.low %v1765_v1, %v1781_v2 }
 0x428   : > { %v2135_v9 = vpop.xlane.xlu1 %2134 }
 0x429   : > { %3498 = vrcp.f32 %v2135_v9 }
 0x42a   : > { %v2138_v18 = vpop.xlane.xlu0 %2137 }
 0x42b   : > { %3500 = vrcp.f32 %v2138_v18  ;;  %v1772_v18 = vrot.slane %v1758_v4, %v3832_v45 }
 0x42c   : > { %v2141_v15 = vpop.xlane.xlu1 %2140 }
 0x42d   : > { %v1791_v30 = vcombine.low %v1772_v18, %v1788_v19  ;;  %v1792_v32 = vcombine.high %v1772_v18, %v1788_v19 }
 0x430   : > { %v1586_v52 = vpop.permute.xlu1 %1585  ;;  %v2144_v26 = vpop.xlane.xlu0 %2143 }
 0x431   : > { %v1673_v53 = vcombine.low %v1574_v55, %v1586_v52  ;;  %v1674_v23 = vcombine.high %v1574_v55, %v1586_v52  ;;  %3502 = vrcp.f32 %v2144_v26  ;;  %v1790_v52 = vcombine.high %v1765_v1, %v1781_v2 }
 0x432   : > { %3504 = vrcp.f32 %v2141_v15 }
 0x433   : > { %v1681_v28 = vrot.slane %v1673_v53, %v3826_v34  ;;  %v1688_v12 = vrot.slane %v1674_v23, %v3826_v34  ;;  %v3499_v0 = vpop.eup %3498 }
 0x434   : > { %v4029_v40 = vpop.xlane.xlu0 %2146 }
 0x435   : > { %v1689_v33 = vcombine.low %v1665_v24, %v1681_v28  ;;  %v1690_v35 = vcombine.high %v1665_v24, %v1681_v28  ;;  %v1705_v37 = vcombine.low %v1672_v25, %v1688_v12  ;;  %v1706_v38 = vcombine.high %v1672_v25, %v1688_v12  ;;  %v3501_v6 = vpop.eup %3500 }
 0x436   : > { %v2166_v23 = vmul.f32 %v3501_v6, %v3978_v31  ;;  %v2165_v12 = vmul.f32 %v3499_v0, %v3974_v51 }
 0x437   : > { %v1697_v42 = vrot.slane %v1689_v33, %v3832_v45  ;;  %v1704_v44 = vrot.slane %v1690_v35, %v3832_v45  ;;  %v1713_v46 = vrot.slane %v1705_v37, %v3832_v45  ;;  %v1720_v47 = vrot.slane %v1706_v38, %v3832_v45 }
 0x438   : > { %v2153_v59 = vpop.xlane.xlu0 %2152  ;;  %v2173_v33 = vpack.c.bf16 %v2166_v23, %v2165_v12 }
 0x439   : > { %v1793_v55 = vcombine.low %v1697_v42, %v1704_v44  ;;  %v3237_v56 = vcombine.high %v1697_v42, %v1704_v44  ;;  %v1809_v57 = vcombine.low %v1713_v46, %v1720_v47  ;;  %v3238_v58 = vcombine.high %v1713_v46, %v1720_v47 }
 0x43a   : > { %3506 = vrcp.f32 %v2153_v59 }
 0x43b   : > { %v1800_v60 = vrot.slane %v1793_v55, %v3826_v34  ;;  %v1808_v61 = vrot.slane %v3237_v56, %v3826_v34  ;;  %v1816_v62 = vrot.slane %v1809_v57, %v3826_v34  ;;  %v1824_v63 = vrot.slane %v3238_v58, %v3826_v34  ;;  %v3503_v13 = vpop.eup %3502 }
 0x43c   : > { %v2156_v11 = vpop.xlane.xlu0 %2155  ;;  %v3505_v17 = vpop.eup %3504  ;;  %v2168_v24 = vmul.f32 %v3503_v13, %v3986_v39 }
 0x43d   : > { %v1825_v7 = vcombine.low %v1800_v60, %v1808_v61  ;;  %v1841_v8 = vcombine.low %v1816_v62, %v1824_v63  ;;  %v1826_v9 = vcombine.high %v1800_v60, %v1808_v61  ;;  %v1842_v10 = vcombine.high %v1816_v62, %v1824_v63 }
 0x43e   : > { %3508 = vrcp.f32 %v2156_v11  ;;  %v2167_v29 = vmul.f32 %v3505_v17, %v3982_v36 }
 0x43f   : > { %v1833_v14 = vrot.slane %v1825_v7, %v3832_v45  ;;  %v1849_v15 = vrot.slane %v1841_v8, %v3832_v45  ;;  %v1840_v16 = vrot.slane %v1826_v9, %v3832_v45  ;;  %v1856_v20 = vrot.slane %v1842_v10, %v3832_v45 }
 0x440   : > { %v2174_v35 = vpack.c.bf16 %v2168_v24, %v2167_v29  ;;  %3510 = vrcp.f32 %v4029_v40 }
 0x441   : > { %v1857_v22 = vcombine.low %v1833_v14, %v1849_v15  ;;  %v1858_v53 = vcombine.high %v1833_v14, %v1849_v15  ;;  %v1859_v50 = vcombine.low %v1840_v16, %v1856_v20  ;;  %v1860_v28 = vcombine.high %v1840_v16, %v1856_v20 }
 0x443   : > { %v1869_v25 = vpack.c.bf16 %v1857_v22, %v1789_v21  ;;  %v1870_v26 = vpack.c.bf16 %v1858_v53, %v1790_v52  ;;  %v1871_v31 = vpack.c.bf16 %v1859_v50, %v1791_v30  ;;  %v1872_v39 = vpack.c.bf16 %v1860_v28, %v1792_v32 }
 0x444   : > { %v3507_v37 = vpop.eup %3506 }
 0x445   : > { %3353 = vmatpush3.bf16.msra.mxu0 %v1869_v25  ;;  %3359 = vmatpush3.bf16.msra.mxu1 %v1870_v26  ;;  %v2171_v38 = vmul.f32 %v3507_v37, %v3994_v43 }
 0x446   : > { %3364 = vmatprep.subr.bf16.mxu0 %v3564_v3  ;;  %3370 = vmatprep.subr.bf16.mxu1 %v3564_v3 }
 0x448   : > { %3355 = vmatmul.mubr.msk.bf16.vlgmr.msra.gmra.mrb[8].mxu0 %vm2084_vm4, %v2173_v33  ;;  %3361 = vmatmul.mubr.msk.bf16.vlgmr.msra.gmra.mrb[16].mxu1 %vm2084_vm4, %v2174_v35  ;;  %v3509_v51 = vpop.eup %3508 }
 0x449   : > { %3365 = vmatpush3.bf16.msra.mxu0 %v1871_v31  ;;  %3371 = vmatpush3.bf16.msra.mxu1 %v1872_v39  ;;  %v2172_v36 = vmul.f32 %v3509_v51, %v3998_v27 }
 0x44a   : > { %3372 = vmatprep.mubr.msk.bf16.mxu1 %vm3565_vm1, %v3564_v3  ;;  %3366 = vmatprep.mubr.msk.bf16.mxu0 %vm3565_vm1, %v3564_v3  ;;  %v3511_v44 = vpop.eup %3510 }
 0x44b   : > { %3376 = vmatprep.subr.bf16.mxu0 %v3564_v3  ;;  %3384 = vmatprep.subr.bf16.mxu1 %v3564_v3  ;;  %v2176_v42 = vpack.c.bf16 %v2172_v36, %v2171_v38  ;;  %v2169_v47 = vmul.f32 %v3511_v44, %v3990_v41 }
 0x450   : > { %3373 = vmatmul.mubr.msk.bf16.vlgmr.msra.gmra.mrb[20].mxu1 %vm2084_vm4, %v2176_v42 }
 0x451   : > { %3388 = vmatprep.mubr.msk.bf16.mxu1 %vm3565_vm1, %v3564_v3 }
 0x461   : > { %v2150_v27 = vpop.xlane.xlu1 %2149 }
 0x462   : > { %3512 = vrcp.f32 %v2150_v27 }
 0x46c   : > { %v3513_v46 = vpop.eup %3512 }
 0x46d   : > { %v2170_v48 = vmul.f32 %v3513_v46, %v4005_v49 }
 0x46f   : > { %v2175_v54 = vpack.c.bf16 %v2170_v48, %v2169_v47 }
 0x471   : > { %3367 = vmatmul.mubr.msk.bf16.vlgmr.msra.gmra.mrb[12].mxu0 %vm2084_vm4, %v2175_v54 }
 0x472   : > { %3380 = vmatprep.mubr.msk.bf16.mxu0 %vm3565_vm1, %v3564_v3 }
 0x51b   : > { %v2214_v43 = vpop.f32.mrb[8].mxu0  ;;  %v2258_v55 = vpop.f32.mrb[16].mxu1 }
 0x51c   : > { %v3356_v56 = vpop.f32.mrb[9].mxu0  ;;  %v3362_v57 = vpop.f32.mrb[17].mxu1 }
 0x51d   : > { %v2217_v58 = vpop.f32.mrb[10].mxu0  ;;  %v2261_v40 = vpop.f32.mrb[18].mxu1  ;;  %v3474_v57 = vld [vmem:[%s3736_s25] sm:$0xff]  }
 0x51e   : > { %v3357_v59 = vpop.f32.mrb[11].mxu0  ;;  %v3363_v60 = vpop.f32.mrb[19].mxu1  ;;  %3377 = vmatpush3.bf16.msra.mxu0 %v3474_v57 }
 0x51f   : > { %3378 = vmatprep.subr.bf16.mxu0 %v3564_v3 }
 0x523   : > { %v2346_v61 = vpop.f32.mrb[20].mxu1 }
 0x524   : > { %v2369_v62 = vcombine.low %v2258_v55, %v2346_v61  ;;  %v2370_v63 = vcombine.high %v2258_v55, %v2346_v61  ;;  %v3374_v41 = vpop.f32.mrb[21].mxu1 }
 0x525   : > { %v2349_v0 = vpop.f32.mrb[22].mxu1 }
 0x526   : > { %v2437_v49 = vcombine.low %v2261_v40, %v2349_v0  ;;  %v2438_v1 = vcombine.high %v2261_v40, %v2349_v0  ;;  %v3375_v2 = vpop.f32.mrb[23].mxu1  ;;  %v2377_v8 = vrot.slane %v2369_v62, %v3826_v34  ;;  %v2384_v9 = vrot.slane %v2370_v63, %v3826_v34 }
 0x528   : > { %v2445_v21 = vrot.slane %v2437_v49, %v3826_v34  ;;  %v2452_v22 = vrot.slane %v2438_v1, %v3826_v34 }
 0x544   : > { %v2302_v4 = vpop.f32.mrb[12].mxu0 }
 0x545   : > { %v2353_v5 = vcombine.low %v2214_v43, %v2302_v4  ;;  %v2354_v6 = vcombine.high %v2214_v43, %v2302_v4  ;;  %v3368_v7 = vpop.f32.mrb[13].mxu0 }
 0x546   : > { %v2305_v10 = vpop.f32.mrb[14].mxu0 }
 0x547   : > { %v2361_v13 = vrot.slane %v2353_v5, %v3826_v34  ;;  %v2368_v11 = vrot.slane %v2354_v6, %v3826_v34  ;;  %v2421_v14 = vcombine.low %v2217_v58, %v2305_v10  ;;  %v2422_v15 = vcombine.high %v2217_v58, %v2305_v10  ;;  %v3369_v16 = vpop.f32.mrb[15].mxu0 }
 0x549   : > { %v2385_v17 = vcombine.low %v2361_v13, %v2377_v8  ;;  %v2386_v18 = vcombine.high %v2361_v13, %v2377_v8  ;;  %v2401_v19 = vcombine.low %v2368_v11, %v2384_v9  ;;  %v2402_v20 = vcombine.high %v2368_v11, %v2384_v9 }
 0x54a   : > { %v2429_v52 = vrot.slane %v2421_v14, %v3826_v34  ;;  %v2436_v53 = vrot.slane %v2422_v15, %v3826_v34 }
 0x54b   : > { %v2393_v23 = vrot.slane %v2385_v17, %v3832_v45  ;;  %v2400_v24 = vrot.slane %v2386_v18, %v3832_v45  ;;  %v2409_v25 = vrot.slane %v2401_v19, %v3832_v45  ;;  %v2416_v26 = vrot.slane %v2402_v20, %v3832_v45 }
 0x54c   : > { %v2453_v50 = vcombine.low %v2429_v52, %v2445_v21  ;;  %v2454_v28 = vcombine.high %v2429_v52, %v2445_v21  ;;  %v2469_v12 = vcombine.low %v2436_v53, %v2452_v22  ;;  %v2470_v29 = vcombine.high %v2436_v53, %v2452_v22 }
 0x54d   : > { %v2489_v30 = vcombine.low %v2393_v23, %v2400_v24  ;;  %v3247_v32 = vcombine.high %v2393_v23, %v2400_v24  ;;  %v2505_v33 = vcombine.low %v2409_v25, %v2416_v26  ;;  %v3248_v35 = vcombine.high %v2409_v25, %v2416_v26 }
 0x54e   : > { %v2461_v31 = vrot.slane %v2453_v50, %v3832_v45  ;;  %v2468_v39 = vrot.slane %v2454_v28, %v3832_v45  ;;  %v2477_v37 = vrot.slane %v2469_v12, %v3832_v45  ;;  %v2484_v51 = vrot.slane %v2470_v29, %v3832_v45 }
 0x54f   : > { %v2496_v36 = vrot.slane %v2489_v30, %v3826_v34  ;;  %v2504_v38 = vrot.slane %v3247_v32, %v3826_v34  ;;  %v2512_v42 = vrot.slane %v2505_v33, %v3826_v34  ;;  %v2520_v27 = vrot.slane %v3248_v35, %v3826_v34  ;;  %v3251_v33 = vld [vmem:[%s4257_s5] ss:$0 sm:$0xff] }
 0x550   : > { %v2557_v44 = vcombine.low %v2461_v31, %v2468_v39  ;;  %v3249_v46 = vcombine.high %v2461_v31, %v2468_v39  ;;  %v2573_v47 = vcombine.low %v2477_v37, %v2484_v51  ;;  %v3250_v48 = vcombine.high %v2477_v37, %v2484_v51 }
 0x551   : > { %v2522_v54 = vcombine.high %v2496_v36, %v2504_v38  ;;  %v2538_v43 = vcombine.high %v2512_v42, %v2520_v27  ;;  %v2521_v55 = vcombine.low %v2496_v36, %v2504_v38  ;;  %v2537_v56 = vcombine.low %v2512_v42, %v2520_v27  ;;  %v3522_v38 = vld [vmem:[%s3780_s12] sm:$0xff] }
 0x552   : > { %v2564_v58 = vrot.slane %v2557_v44, %v3826_v34  ;;  %v2572_v40 = vrot.slane %v3249_v46, %v3826_v34  ;;  %v2580_v59 = vrot.slane %v2573_v47, %v3826_v34  ;;  %v2588_v60 = vrot.slane %v3250_v48, %v3826_v34  ;;  %v3475_v34 = vld [vmem:[%s3736_s25 + $0x8] sm:$0xff]   ;;  %s3573_s25 = smov 8  }
 0x553   : > { %v2536_v61 = vrot.slane %v2522_v54, %v3832_v45  ;;  %v2552_v62 = vrot.slane %v2538_v43, %v3832_v45  ;;  %v2529_v63 = vrot.slane %v2521_v55, %v3832_v45  ;;  %v2545_v41 = vrot.slane %v2537_v56, %v3832_v45  ;;  %3379 = vmatpush3.bf16.msra.mxu0 %v3475_v34  ;;  %v3523_v44 = vld [vmem:[%s3780_s12 + $0x8] sm:$0xff] }
 0x554   : > { %v2590_v0 = vcombine.high %v2564_v58, %v2572_v40  ;;  %v2606_v49 = vcombine.high %v2580_v59, %v2588_v60  ;;  %v2589_v1 = vcombine.low %v2564_v58, %v2572_v40  ;;  %v2605_v2 = vcombine.low %v2580_v59, %v2588_v60  ;;  %3392 = vmatprep.subr.bf16.mxu0 %v3564_v3 }
 0x555   : > { %v2555_v4 = vcombine.low %v2536_v61, %v2552_v62  ;;  %v2553_v5 = vcombine.low %v2529_v63, %v2545_v41  ;;  %v2554_v6 = vcombine.high %v2529_v63, %v2545_v41  ;;  %v2556_v7 = vcombine.high %v2536_v61, %v2552_v62  ;;  %v3476_v61 = vld [vmem:[%s3753_s27] sm:$0xff]   ;;  %v3477_v62 = vld [vmem:[%s3753_s27 + $0x8] sm:$0xff]  }
 0x556   : > { %v2604_v8 = vrot.slane %v2590_v0, %v3832_v45  ;;  %v2620_v9 = vrot.slane %v2606_v49, %v3832_v45  ;;  %v2597_v10 = vrot.slane %v2589_v1, %v3832_v45  ;;  %v2613_v13 = vrot.slane %v2605_v2, %v3832_v45  ;;  %3385 = vmatpush3.bf16.msra.mxu1 %v3476_v61  ;;  %v3478_v63 = vld [vmem:[%s3763_s15] sm:$0xff]   ;;  %v3479_v41 = vld [vmem:[%s3763_s15 + $0x8] sm:$0xff]  }
 0x557   : > { %3386 = vmatprep.subr.bf16.mxu1 %v3564_v3  ;;  %v3268_v61 = vld [vmem:[%s815_s9] ss:$0 sm:$0xff] }
 0x558   : > { %v2623_v11 = vcombine.low %v2604_v8, %v2620_v9  ;;  %v2622_v14 = vcombine.high %v2597_v10, %v2613_v13  ;;  %v2621_v15 = vcombine.low %v2597_v10, %v2613_v13  ;;  %v2624_v16 = vcombine.high %v2604_v8, %v2620_v9  ;;  %v3256_v13 = vld [vmem:[%s4261_s1] ss:$0 sm:$0xff] }
 0x55a   : > { %v3460_v17 = vpack.i.bf16 %v2623_v11, %v2555_v4  ;;  %v3455_v18 = vpack.i.bf16 %v2622_v14, %v2554_v6  ;;  %v3465_v19 = vpack.i.bf16 %v2624_v16, %v2556_v7  ;;  %3387 = vmatpush3.bf16.msra.mxu1 %v3477_v62  ;;  %v3255_v7 = vld [vmem:[%s4259_s11] ss:$0 sm:$0xff] }
 0x55c   : > { %3461 = vrot.lane.b32.xlu0 %v3460_v17, %s3572_s2  ;;  %3456 = vrot.lane.b32.xlu1 %v3455_v18, %s3573_s25  ;;  %v3480_v17 = vld [vmem:[%s3763_s15 + $0x10] sm:$0xff]   ;;  %v3481_v18 = vld [vmem:[%s3763_s15 + $0x18] sm:$0xff]  }
 0x560   : > { %3466 = vrot.lane.b32.xlu1 %v3465_v19, %s3574_s29  ;;  %v3257_v19 = vld [vmem:[%s4263_s19] ss:$0 sm:$0xff] }
 0x5ce   : > { %v3462_v20 = vpop.permute.xlu0 %3461  ;;  %v3457_v21 = vpop.permute.xlu1 %3456 }
 0x5cf   : > { %v3459_v22 = vunpack.i.h.bf16 %v3457_v21  ;;  %v3458_v45 = vunpack.i.l.bf16 %v3457_v21  ;;  %v3464_v52 = vunpack.i.h.bf16 %v3462_v20  ;;  %v3463_v53 = vunpack.i.l.bf16 %v3462_v20 }
 0x5d1   : > { %v2649_v23 = vsel %vm1873_vm3, %v2553_v5, %v3458_v45  ;;  %v2650_v24 = vsel %vm1873_vm3, %v2621_v15, %v3459_v22 }
 0x5d2   : > { %v3467_v25 = vpop.permute.xlu1 %3466  ;;  %v2651_v28 = vsel %vm2084_vm4, %v2649_v23, %v3463_v53  ;;  %v2652_v12 = vsel %vm2084_vm4, %v2650_v24, %v3464_v52 }
 0x5d3   : > { %v3469_v26 = vunpack.i.h.bf16 %v3467_v25  ;;  %v3468_v50 = vunpack.i.l.bf16 %v3467_v25 }
 0x5d5   : > { %v2654_v29 = vsel %vm2653_vm5, %v2651_v28, %v3468_v50  ;;  %v2655_v30 = vsel %vm2653_vm5, %v2652_v12, %v3469_v26 }
 0x5d6   : > { %v2656_v32 = vpack.c.bf16 %v2655_v30, %v2654_v29 }
 0x5d8   : > { %3381 = vmatmul.mubr.msk.bf16.vlgmr.msra.gmra.mrb[16].mxu0 %vm863_vm2, %v2656_v32 }
 0x5d9   : > { %3400 = vmatprep.mubr.msk.bf16.mxu0 %vm3565_vm1, %v3564_v3  ;;  %3393 = vmatpush3.bf16.msra.mxu0 %v3478_v63 }
 0x5da   : > { %3394 = vmatprep.subr.bf16.mxu0 %v3564_v3 }
 0x5dd   : > { %3395 = vmatpush3.bf16.msra.mxu0 %v3479_v41 }
 0x5de   : > { %3396 = vmatprep.subr.bf16.mxu0 %v3564_v3 }
 0x5e1   : > { %3397 = vmatpush3.bf16.msra.mxu0 %v3480_v17 }
 0x5e2   : > { %3398 = vmatprep.subr.bf16.mxu0 %v3564_v3  ;;  %v3261_v3 = vld [vmem:[%s809_s20] ss:$0 sm:$0xff] }
 0x5e5   : > { %3399 = vmatpush3.bf16.msra.mxu0 %v3481_v18 }
 0x6ab   : > { %v2712_v35 = vpop.f32.mrb[16].mxu0 }
 0x6ac   : > { %v2713_v31 = vadd.f32 %v3251_v33, %v2712_v35  ;;  %v3382_v39 = vpop.f32.mrb[17].mxu0 }
 0x6ad   : > { %v2715_v37 = vpop.f32.mrb[18].mxu0 }
 0x6ae   : > { %v2716_v51 = vadd.f32 %v3251_v33, %v2715_v37  ;;  %v3383_v36 = vpop.f32.mrb[19].mxu0  ;;  %v2719_v42 = vadd.f32 %v3522_v38, %v2713_v31 }
 0x6b0   : > { %v2723_v27 = vsel %vm863_vm2, %v2719_v42, 0.0  ;;  %v2720_v46 = vadd.f32 %v3523_v44, %v2716_v51 }
 0x6b1   : > { %2724 = vadd.xlane.f32.xlu1 %v2723_v27 }
 0x6b2   : > { %v2726_v47 = vsel %vm863_vm2, %v2720_v46, 0.0 }
 0x6b3   : > { %2727 = vadd.xlane.f32.xlu0 %v2726_v47 }
 0x73e   : > { %v2725_v48 = vpop.xlane.xlu1 %2724 }
 0x73f   : > { %v2730_v54 = vmul.f32 0.03125, %v2725_v48 }
 0x740   : > { %v2728_v43 = vpop.xlane.xlu0 %2727 }
 0x741   : > { %v2732_v55 = vsub.f32 %v2719_v42, %v2730_v54  ;;  %v2731_v56 = vmul.f32 0.03125, %v2728_v43 }
 0x743   : > { %v2733_v57 = vsub.f32 %v2720_v46, %v2731_v56  ;;  %v2734_v58 = vmul.f32 %v2732_v55, %v2732_v55 }
 0x745   : > { %v2736_v40 = vsel %vm863_vm2, %v2734_v58, 0.0  ;;  %v2735_v59 = vmul.f32 %v2733_v57, %v2733_v57 }
 0x746   : > { %2737 = vadd.xlane.f32.xlu0 %v2736_v40  ;;  %v3267_v40 = vld [vmem:[%s812_s22] ss:$0 sm:$0xff] }
 0x747   : > { %v2739_v60 = vsel %vm863_vm2, %v2735_v59, 0.0 }
 0x748   : > { %2740 = vadd.xlane.f32.xlu1 %v2739_v60 }
 0x7d3   : > { %v2738_v0 = vpop.xlane.xlu0 %2737 }
 0x7d4   : > { %v2742_v49 = vmul.f32 0.03125, %v2738_v0 }
 0x7d5   : > { %v2741_v1 = vpop.xlane.xlu1 %2740 }
 0x7d6   : > { %v2744_v2 = vadd.f32 1e-05, %v2742_v49  ;;  %v2743_v4 = vmul.f32 0.03125, %v2741_v1 }
 0x7d8   : > { %3514 = vrsqrt.f32 %v2744_v2  ;;  %v2745_v5 = vadd.f32 1e-05, %v2743_v4 }
 0x7da   : > { %3516 = vrsqrt.f32 %v2745_v5 }
 0x7e2   : > { %v3515_v6 = vpop.eup %3514 }
 0x7e3   : > { %v2748_v34 = vmul.f32 %v3515_v6, %v2732_v55 }
 0x7e4   : > { %v3517_v8 = vpop.eup %3516 }
 0x7e5   : > { %v2756_v9 = vmul.f32 %v3255_v7, %v2748_v34  ;;  %v2749_v10 = vmul.f32 %v3517_v8, %v2733_v57 }
 0x7e7   : > { %v2757_v11 = vmul.f32 %v3255_v7, %v2749_v10  ;;  %v2764_v14 = vadd.f32 %v3256_v13, %v2756_v9 }
 0x7e9   : > { %v2765_v15 = vadd.f32 %v3256_v13, %v2757_v11 }
 0x7eb   : > { %v2766_v16 = vpack.c.bf16 %v2765_v15, %v2764_v14 }
 0x7ed   : > { %3389 = vmatmul.mubr.msk.bf16.vlgmr.msra.gmra.mrb[24].mxu1 %vm863_vm2, %v2766_v16 }
 0x8c0   : > { %v2827_v20 = vpop.f32.mrb[24].mxu1 }
 0x8c1   : > { %v2828_v21 = vadd.f32 %v3257_v19, %v2827_v20  ;;  %v3390_v22 = vpop.f32.mrb[25].mxu1 }
 0x8c2   : > { %v2830_v45 = vpop.f32.mrb[26].mxu1 }
 0x8c3   : > { %v2831_v52 = vadd.f32 %v3257_v19, %v2830_v45  ;;  %v3391_v53 = vpop.f32.mrb[27].mxu1  ;;  %v2834_v23 = vmax.f32 %v2828_v21, 0.0 }
 0x8c5   : > { %v2835_v24 = vmax.f32 %v2831_v52, 0.0 }
 0x8c7   : > { %v2836_v25 = vpack.c.bf16 %v2835_v24, %v2834_v23 }
 0x8c9   : > { %3401 = vmatmul.mubr.msk.bf16.vlgmr.msra.gmra.mrb[20].mxu0 %vm2876_vm6, %v2836_v25 }
 0x99c   : > { %v2914_v26 = vpop.f32.mrb[20].mxu0 }
 0x99d   : > { %v2915_v50 = vadd.f32 %v3261_v3, %v2914_v26  ;;  %v3402_v28 = vpop.f32.mrb[21].mxu0 }
 0x99e   : > { %v2917_v12 = vpop.f32.mrb[22].mxu0 }
 0x99f   : > { %v2918_v29 = vadd.f32 %v3261_v3, %v2917_v12  ;;  %v3403_v30 = vpop.f32.mrb[23].mxu0  ;;  %v2921_v32 = vadd.f32 %v2915_v50, %v2764_v14 }
 0x9a1   : > { %v2925_v33 = vsel %vm863_vm2, %v2921_v32, 0.0  ;;  %v2922_v35 = vadd.f32 %v2918_v29, %v2765_v15 }
 0x9a2   : > { %2926 = vadd.xlane.f32.xlu0 %v2925_v33 }
 0x9a3   : > { %v2928_v31 = vsel %vm863_vm2, %v2922_v35, 0.0 }
 0x9a4   : > { %2929 = vadd.xlane.f32.xlu1 %v2928_v31 }
 0xa2f   : > { %v2927_v39 = vpop.xlane.xlu0 %2926 }
 0xa30   : > { %v2931_v37 = vmul.f32 0.03125, %v2927_v39 }
 0xa31   : > { %v2930_v51 = vpop.xlane.xlu1 %2929 }
 0xa32   : > { %v2933_v36 = vsub.f32 %v2921_v32, %v2931_v37  ;;  %v2932_v38 = vmul.f32 0.03125, %v2930_v51 }
 0xa34   : > { %v2934_v42 = vsub.f32 %v2922_v35, %v2932_v38  ;;  %v2935_v27 = vmul.f32 %v2933_v36, %v2933_v36 }
 0xa36   : > { %v2937_v44 = vsel %vm863_vm2, %v2935_v27, 0.0  ;;  %v2936_v46 = vmul.f32 %v2934_v42, %v2934_v42 }
 0xa37   : > { %2938 = vadd.xlane.f32.xlu0 %v2937_v44 }
 0xa38   : > { %v2940_v47 = vsel %vm863_vm2, %v2936_v46, 0.0 }
 0xa39   : > { %2941 = vadd.xlane.f32.xlu1 %v2940_v47 }
 0xac4   : > { %v2939_v48 = vpop.xlane.xlu0 %2938 }
 0xac5   : > { %v2943_v54 = vmul.f32 0.03125, %v2939_v48 }
 0xac6   : > { %v2942_v43 = vpop.xlane.xlu1 %2941 }
 0xac7   : > { %v2945_v55 = vadd.f32 1e-05, %v2943_v54  ;;  %v2944_v56 = vmul.f32 0.03125, %v2942_v43 }
 0xac9   : > { %3518 = vrsqrt.f32 %v2945_v55  ;;  %v2946_v57 = vadd.f32 1e-05, %v2944_v56 }
 0xacb   : > { %3520 = vrsqrt.f32 %v2946_v57 }
 0xad3   : > { %v3519_v58 = vpop.eup %3518 }
 0xad4   : > { %v2949_v59 = vmul.f32 %v3519_v58, %v2933_v36 }
 0xad5   : > { %v3521_v60 = vpop.eup %3520 }
 0xad6   : > { %v2957_v62 = vmul.f32 %v3267_v40, %v2949_v59  ;;  %v2950_v63 = vmul.f32 %v3521_v60, %v2934_v42 }
 0xad8   : > { %v2965_v41 = vadd.f32 %v3268_v61, %v2957_v62  ;;  %v2958_v0 = vmul.f32 %v3267_v40, %v2950_v63 }
 0xada   : > { %2967 = vst.msk [vmem:[%s3780_s12] sm:$0xff] %vm863_vm2, %v2965_v41  ;;  %v2966_v49 = vadd.f32 %v3268_v61, %v2958_v0 }
 0xadc   : > { %2968 = vst.msk [vmem:[%s3780_s12 + $0x8] sm:$0xff] %vm863_vm2, %v2966_v49 }
 0xadd PF: > { %s4267_s3 = sld [smem:[#allocation5_spill]]  ;;  %s4268_s24 = sld [smem:[#allocation3_spill]] }
 0xade   : > { %s4269_s25 = sld [smem:[#allocation4_spill]]  ;;  %s4270_s26 = sld [smem:[#allocation6_spill]] }
 0xadf   : > { %s4271_s27 = sld [smem:[#allocation7_spill]] }
 0xae3   : > { %s27_s28 = sadd.s32 1, %s4267_s3  }
 0xae4   : > { %p24_p8 = scmp.ge.s32.totalorder %s27_s28, 6  }
 0xae6   :  { %26 = sbr.rel (!%p24_p8) target bundleno = 15 (0xf), region = 170 }

// kernel: svanet_forward.6
= control target key start
LH: loop header
LB: loop body
LE: loop exit
PB: predicated region body
PF: predicated region fallthrough
CT: control target
= control target key end

     0   :  { %s5455_s6 = smov 1   ;;  %s5456_s10 = smov 2   ;;  %s6461_s0 = inlined_call_operand.smem [shape: u32[31], index: -1, kind: input, shape index: {}] }
   0x1   :  { %s5511_s5 = sld [smem:[%s6461_s0]]   ;;  %s5457_s14 = smov 3  }
   0x2   :  { %s5516_s9 = sld [smem:[%s6461_s0 + %s5455_s6]]   ;;  %s5458_s18 = smov 4  }
   0x3   :  { %s5521_s13 = sld [smem:[%s6461_s0 + %s5456_s10]]   ;;  %s5459_s22 = smov 5  }
   0x4   :  { %s5526_s17 = sld [smem:[%s6461_s0 + %s5457_s14]]   ;;  %s5460_s26 = smov 6  }
   0x5   :  { %s5531_s21 = sld [smem:[%s6461_s0 + %s5458_s18]]   ;;  %s5461_s30 = smov 7  }
   0x6   :  { %s5536_s25 = sld [smem:[%s6461_s0 + %s5459_s22]]   ;;  %s5462_s4 = smov 8  }
   0x7   :  { %6496 = sst [smem:[#allocation15_spill]] %s5511_s5  ;;  %s5463_s10 = smov 9  }
   0x8   :  { %6497 = sst [smem:[#allocation16_spill]] %s5516_s9  ;;  %s5464_s15 = smov 10  }
   0x9   :  { %6498 = sst [smem:[#allocation17_spill]] %s5521_s13  ;;  %s5465_s20 = smov 11  }
   0xa   :  { %6499 = sst [smem:[#allocation18_spill]] %s5526_s17  ;;  %s5467_s1 = smov 13  }
   0xb   :  { %6500 = sst [smem:[#allocation19_spill]] %s5531_s21  ;;  %s5468_s7 = smov 14  }
   0xc   :  { %6501 = sst [smem:[#allocation20_spill]] %s5536_s25  ;;  %s5470_s22 = smov 16  }
   0xd   :  { %s5541_s29 = sld [smem:[%s6461_s0 + %s5460_s26]]   ;;  %s5466_s26 = smov 12  }
   0xe   :  { %s5546_s3 = sld [smem:[%s6461_s0 + %s5461_s30]]   ;;  %s5471_s28 = smov 17  }
   0xf   :  { %s5551_s8 = sld [smem:[%s6461_s0 + %s5462_s4]]  }
  0x10   :  { %s5556_s14 = sld [smem:[%s6461_s0 + %s5463_s10]]  }
  0x11   :  { %s5561_s19 = sld [smem:[%s6461_s0 + %s5464_s15]]   ;;  %s5469_s15 = smov 15  }
  0x12   :  { %s5566_s24 = sld [smem:[%s6461_s0 + %s5465_s20]]  }
  0x13   :  { %6502 = sst [smem:[#allocation21_spill]] %s5541_s29 }
  0x14   :  { %6503 = sst [smem:[#allocation22_spill]] %s5546_s3 }
  0x15   :  { %6504 = sst [smem:[#allocation23_spill]] %s5551_s8 }
  0x16   :  { %6505 = sst [smem:[#allocation24_spill]] %s5556_s14 }
  0x17   :  { %6506 = sst [smem:[#allocation25_spill]] %s5561_s19 }
  0x18   :  { %6507 = sst [smem:[#allocation26_spill]] %s5566_s24 }
  0x19   :  { %s5571_s30 = sld [smem:[%s6461_s0 + %s5466_s26]]  }
  0x1a   :  { %s5576_s6 = sld [smem:[%s6461_s0 + %s5467_s1]]  }
  0x1b   :  { %s5581_s12 = sld [smem:[%s6461_s0 + %s5468_s7]]   ;;  %s5472_s7 = smov 18  }
  0x1c   :  { %s5586_s20 = sld [smem:[%s6461_s0 + %s5469_s15]]   ;;  %s5473_s15 = smov 19  }
  0x1d   :  { %s5591_s27 = sld [smem:[%s6461_s0 + %s5470_s22]]   ;;  %s5474_s22 = smov 20  }
  0x1e   :  { %s5596_s4 = sld [smem:[%s6461_s0 + %s5471_s28]]   ;;  %s5475_s28 = smov 21  }
  0x1f   :  { %6508 = sst [smem:[#allocation27_spill]] %s5571_s30 }
  0x20   :  { %6509 = sst [smem:[#allocation28_spill]] %s5576_s6 }
  0x21   :  { %6510 = sst [smem:[#allocation29_spill]] %s5581_s12 }
  0x22   :  { %6511 = sst [smem:[#allocation30_spill]] %s5586_s20 }
  0x23   :  { %6512 = sst [smem:[#allocation31_spill]] %s5591_s27 }
  0x24   :  { %6513 = sst [smem:[#allocation32_spill]] %s5596_s4 }
  0x25   :  { %s5601_s12 = sld [smem:[%s6461_s0 + %s5472_s7]]   ;;  %s5476_s7 = smov 22  }
  0x26   :  { %s5606_s20 = sld [smem:[%s6461_s0 + %s5473_s15]]   ;;  %s5477_s15 = smov 23  }
  0x27   :  { %s5611_s27 = sld [smem:[%s6461_s0 + %s5474_s22]]   ;;  %s5478_s22 = smov 24  }
  0x28   :  { %s5616_s4 = sld [smem:[%s6461_s0 + %s5475_s28]]   ;;  %s5479_s28 = smov 25  }
  0x2b   :  { %6514 = sst [smem:[#allocation33_spill]] %s5601_s12 }
  0x2c   :  { %6515 = sst [smem:[#allocation34_spill]] %s5606_s20 }
  0x2d   :  { %6516 = sst [smem:[#allocation35_spill]] %s5611_s27 }
  0x2e   :  { %6517 = sst [smem:[#allocation36_spill]] %s5616_s4 }
  0x2f   :  { %s5621_s12 = sld [smem:[%s6461_s0 + %s5476_s7]]   ;;  %s5480_s7 = smov 26  }
  0x30   :  { %s5626_s20 = sld [smem:[%s6461_s0 + %s5477_s15]]   ;;  %s5481_s15 = smov 27  }
  0x31   :  { %s5631_s27 = sld [smem:[%s6461_s0 + %s5478_s22]]   ;;  %s5482_s22 = smov 28  }
  0x32   :  { %s5636_s4 = sld [smem:[%s6461_s0 + %s5479_s28]]   ;;  %s5483_s28 = smov 29  }
  0x33   :  { %s5656_s6 = sld [smem:[%s6461_s0 + %s5483_s28]]  }
  0x35   :  { %6518 = sst [smem:[#allocation37_spill]] %s5621_s12 }
  0x36   :  { %6519 = sst [smem:[#allocation38_spill]] %s5626_s20 }
  0x37   :  { %6520 = sst [smem:[#allocation39_spill]] %s5631_s27 }
  0x38   :  { %6521 = sst [smem:[#allocation40_spill]] %s5636_s4 }
  0x39   :  { %s5641_s12 = sld [smem:[%s6461_s0 + %s5480_s7]]   ;;  %s5484_s7 = smov 30  }
  0x3a   :  { %s5646_s20 = sld [smem:[%s6461_s0 + %s5481_s15]]  }
  0x3b   :  { %s5651_s27 = sld [smem:[%s6461_s0 + %s5482_s22]]  }
  0x3c   :  { %6525 = sst [smem:[#allocation44_spill]] %s5656_s6 }
  0x3f   :  { %6522 = sst [smem:[#allocation41_spill]] %s5641_s12 }
  0x40   :  { %6523 = sst [smem:[#allocation42_spill]] %s5646_s20 }
  0x41   :  { %6524 = sst [smem:[#allocation43_spill]] %s5651_s27 }
  0x42   :  { %s5661_s12 = sld [smem:[%s6461_s0 + %s5484_s7]]  }
  0x48   :  { %6526 = sst [smem:[#allocation45_spill]] %s5661_s12 }
  0x49   :  { %66 = vsyncpa [#allocation5], 0 }
  0x4a   :  { %67 = vsyncpa [#allocation7], 0  ;;  %s5663_s15 = smov 0   ;;  %s5665_s16 = smov 0  }
  0x4b   :  { %s5667_s18 = smov 0   ;;  %s5669_s22 = smov 0  }
  0x4c   :  { %s5671_s23 = smov 0   ;;  %s5673_s26 = smov 0  }
  0x4d   :  { %s5675_s28 = smov 0   ;;  %s5677_s1 = smov 0  }
  0x4e LB: > { %s6527_s27 = sld [smem:[#allocation43_spill]]  ;;  %s6528_s25 = sld [smem:[#allocation20_spill]]  ;;  %s5445_s26 = sphi %s5673_s26, %s6630_s26   ;;  %s5441_s23 = sphi %s5671_s23, %s6629_s23   ;;  %s5437_s22 = sphi %s5669_s22, %s6628_s22   ;;  %s5433_s18 = sphi %s5667_s18, %s6627_s18   ;;  %s5429_s16 = sphi %s5665_s16, %s6626_s16   ;;  %s5425_s15 = sphi %s5663_s15, %s6625_s15   ;;  %s5453_s1 = sphi %s5677_s1, %s73_s1   ;;  %s5449_s28 = sphi %s5675_s28, %s6631_s28  }
  0x4f   : > { %s6529_s20 = sld [smem:[#allocation42_spill]]  ;;  %s6530_s6 = sld [smem:[#allocation44_spill]] }
  0x50   : > { %s6531_s4 = sld [smem:[#allocation40_spill]]  ;;  %s6532_s21 = sld [smem:[#allocation19_spill]] }
  0x51   : > { %6533 = sst [smem:[#allocation46_spill]] %s5429_s16  ;;  %s6462_s0 = sadd.s32 4294967295, %s5453_s1  }
  0x52   : > { %6534 = sst [smem:[#allocation47_spill]] %s5433_s18  ;;  %p745_p1 = scmp.ne.s32.totalorder %s5429_s16, %s5425_s15 }
  0x53   : > { %6535 = sst [smem:[#allocation48_spill]] %s5437_s22  ;;  %p5708_p2 = scmp.eq.s32.totalorder %s6462_s0, 0 }
  0x54   : > { %6536 = sst [smem:[#allocation49_spill]] %s5445_s26  ;;  %p4635_p3 = scmp.ge.s32.totalorder %s5453_s1, 1 }
  0x55   : > { %6537 = sst [smem:[#allocation50_spill]] %s5449_s28  ;;  %p888_p4 = scmp.lt.s32.totalorder %s5453_s1, 5 }
  0x56   : > { %6538 = sst [smem:[#allocation51_spill]] %s5453_s1  ;;  %p5716_p5 = por %p5708_p2, %p745_p1 }
  0x57   : > { %s6539_s7 = scalar_select %p5708_p2, 1, 0 }
  0x58   : > { %s6540_s10 = scalar_select %p5716_p5, 1, 0 }
  0x59   : > { %p5720_p6 = pnand %p4635_p3, %p888_p4  ;;  %s5485_s15 = smov [#allocation4]  }
  0x5a   : > { %s901_s0 = sshll.u32 %s5485_s15, 4  ;;  %s82_s12 = sadd.s32 1, %s5445_s26  ;;  %s902_s0 = int_to_ptr.vmem [resolvable:$true] %s901_s0 }
  0x5b   : > { %s6541_s11 = scalar_select %p5720_p6, 1, 0 }
  0x5c   : > { %p5010_p7 = pneg %p5720_p6  ;;  %s85_s30 = sadd.s32 1, %s5449_s28 }
  0x5d   : > { %p5734_p9 = scmp.ge.s32.totalorder %s82_s12, 2  ;;  %s5203_s19 = scalar_lea.hbm %s6532_s21, 16 }
  0x5e   : > { %p5728_p8 = pnand %p5010_p7, %p5708_p2  ;;  %p5204_p10 = scmp.ne.s32.totalorder %s6532_s21, %s5203_s19 }
  0x5f   : > { %s6543_s24 = scalar_select %p5734_p9, 1, 0 }
  0x60   : > { %s6542_s2 = scalar_select %p5728_p8, 1, 0 }
  0x61   : > { %p6473_p11 = pneg %p5728_p8  ;;  %p5210_p1 = scmp.lt.u32.totalorder %s5203_s19, %s6532_s21 }
  0x63   : > { %p5206_p12 = pnand %p6473_p11, %p5204_p10 }
  0x65   : > { %p5207_p13 = pneg %p5206_p12 }
  0x67   : > { %p5212_p3 = pnand %p5210_p1, %p5207_p13 }
  0x69   : > { %5215 = shalt.err (!%p5212_p3)
}
  0x6a   : > { %s5216_s15 = scalar_lea.vmem %s902_s0, 16  ;;  %s5223_s14 = scalar_lea.vmem %s902_s0, 32 }
  0x6b   : > { %p5217_p4 = scmp.ne.s32.totalorder %s902_s0, %s5216_s15  ;;  %p5224_p5 = scmp.lt.s32.totalorder %s902_s0, %s902_s0 }
  0x6c   : > { %p5225_p2 = scmp.lt.s32.totalorder %s5223_s14, %s5216_s15 }
  0x6d   : > { %p5219_p7 = pnand %p5217_p4, %p6473_p11 }
  0x6e   : > { %p5226_p6 = por %p5225_p2, %p5224_p5 }
  0x6f   : > { %p5220_p0 = pneg %p5219_p7 }
  0x71   : > { %p5227_p9 = pnand %p5226_p6, %p5220_p0 }
  0x73   : > { %5230 = shalt.err (!%p5227_p9)
}
  0x74   : > { %5013 = dma.hbm_to_vmem [thread:$0]  (!%p5728_p8), %s6532_s21, 16, %s902_s0, [#allocation5]  }
  0x75   : > { %p6544_p2 = scmp.ne.s32.totalorder %s6543_s24, 0  ;;  %p740_p0 = scmp.eq.s32.totalorder %s5453_s1, 0 }
  0x76   : > { %p6546_p9 = scmp.ne.s32.totalorder %s5433_s18, %s5429_s16  ;;  %p5032_p12 = scmp.lt.s32.totalorder %s5453_s1, 4 }
  0x77   : > { %s6633_s12 = smov (%p6544_p2, %s82_s12), 0  ;;  %s6635_s30 = smov (!%p6544_p2, %s85_s30), %s5449_s28 }
  0x78   : > { %6545 = sst [smem:[#allocation52_spill]] %s6633_s12  ;;  %s729_s14 = ssub.s32 %s5445_s26, %s6633_s12 }
  0x79   : > { %p87_p5 = scmp.ge.s32.totalorder %s6635_s30, 2  ;;  %p730_p6 = scmp.eq.s32.totalorder %s729_s14, 0 }
  0x7a   : > { %p741_p10 = por %p740_p0, %p6546_p9  ;;  %s6548_s19 = sadd.s32 1, %s5433_s18 }
  0x7b   : > { %s6637_s30 = smov (%p87_p5, %s6635_s30), 0  ;;  %s1082_s0 = sand.u32 1, %s5453_s1  }
  0x7c   : > { %6547 = sst [smem:[#allocation53_spill]] %s6637_s30  ;;  %s5775_s21 = sand.u32 1, %s5433_s18  }
  0x7d   : > { %s5771_s15 = scalar_select %p730_p6, %s5433_s18, %s6548_s19  }
  0x7e   : > { %s5778_s24 = sshll.u32 %s5445_s26, 4  ;;  %s1085_s12 = scalar_lea.vmem [#allocation8], %s5775_s21 }
  0x7f   : > { %6549 = sst [smem:[#allocation54_spill]] %s5771_s15  ;;  %s1092_s14 = sshll.u32 %s1085_s12, 4  ;;  %s5785_s14 = int_to_ptr.vmem [resolvable:$true] %s1092_s14 }
  0x80   : > { %s5783_s28 = scalar_lea.hbm %s6531_s4, %s5778_s24  ;;  %p5787_p13 = pnand %p5032_p12, %p741_p10 }
  0x81   : > { %s5793_s30 = scalar_lea.hbm %s6529_s20, %s5778_s24  ;;  %s1110_s26 = scalar_lea.vmem [#allocation9], %s5775_s21 }
  0x82   : > { %s6550_s19 = scalar_select %p5787_p13, 1, 0 }
  0x83   : > { %s1117_s15 = sshll.u32 %s1110_s26, 4  ;;  %s5798_s12 = scalar_lea.sflag [#allocation5], %s1082_s0  ;;  %s5796_s15 = int_to_ptr.vmem [resolvable:$true] %s1117_s15 }
  0x84   : > { %s5231_s18 = scalar_lea.hbm %s5783_s28, 16  ;;  %p5804_p3 = pneg %p5787_p13 }
  0x85   : > { %p5232_p1 = scmp.ne.s32.totalorder %s5783_s28, %s5231_s18  ;;  %s5236_s29 = scalar_lea.hbm %s6531_s4, 32 }
  0x86   : > { %s6551_s8 = scalar_select %p5804_p3, 1, 0 }
  0x87   : > { %p5234_p4 = pnand %p5804_p3, %p5232_p1  ;;  %p5237_p2 = scmp.lt.u32.totalorder %s5783_s28, %s6531_s4 }
  0x88   : > { %p5238_p0 = scmp.lt.u32.totalorder %s5236_s29, %s5231_s18  ;;  %p5240_p6 = scmp.lt.u32.totalorder %s5231_s18, %s5783_s28 }
  0x89   : > { %p5235_p7 = pneg %p5234_p4 }
  0x8a   : > { %p5239_p5 = por %p5238_p0, %p5237_p2 }
  0x8c   : > { %p5241_p9 = por %p5240_p6, %p5239_p5 }
  0x8e   : > { %p5242_p10 = pnand %p5241_p9, %p5235_p7 }
  0x90   : > { %5245 = shalt.err (!%p5242_p10)
}
  0x91   : > { %s5246_s26 = scalar_lea.vmem %s5785_s14, 16  ;;  %s5486_s0 = smov [#allocation8]  }
  0x92   : > { %p5247_p12 = scmp.ne.s32.totalorder %s5785_s14, %s5246_s26  ;;  %s5251_s3 = sshll.u32 %s5486_s0, 4  ;;  %s5252_s3 = int_to_ptr.vmem [resolvable:$false] %s5251_s3 }
  0x93   : > { %s5253_s17 = scalar_lea.vmem %s5252_s3, 32  ;;  %p5254_p1 = scmp.lt.s32.totalorder %s5785_s14, %s5252_s3 }
  0x94   : > { %p5249_p11 = pnand %p5247_p12, %p5804_p3  ;;  %p5255_p4 = scmp.lt.s32.totalorder %s5253_s17, %s5246_s26 }
  0x96   : > { %p5250_p8 = pneg %p5249_p11  ;;  %p5256_p2 = por %p5255_p4, %p5254_p1 }
  0x98   : > { %p5257_p0 = pnand %p5256_p2, %p5250_p8 }
  0x9a   : > { %5260 = shalt.err (!%p5257_p0)
}
  0x9b   : > { %5020 = dma.hbm_to_vmem [thread:$0]  (!%p5787_p13), %s5783_s28, 16, %s5785_s14, %s5798_s12  }
  0x9c   : > { %s5261_s29 = scalar_lea.hbm %s5793_s30, 16  ;;  %s5266_s17 = scalar_lea.hbm %s6529_s20, 32 }
  0x9d   : > { %p5262_p11 = scmp.ne.s32.totalorder %s5793_s30, %s5261_s29  ;;  %p5267_p8 = scmp.lt.u32.totalorder %s5793_s30, %s6529_s20 }
  0x9e   : > { %p5268_p6 = scmp.lt.u32.totalorder %s5266_s17, %s5261_s29  ;;  %p5270_p10 = scmp.lt.u32.totalorder %s5261_s29, %s5793_s30 }
  0x9f   : > { %p5264_p7 = pnand %p5262_p11, %p5804_p3 }
  0xa0   : > { %p5269_p9 = por %p5268_p6, %p5267_p8 }
  0xa1   : > { %p5265_p5 = pneg %p5264_p7 }
  0xa2   : > { %p5271_p12 = por %p5270_p10, %p5269_p9 }
  0xa4   : > { %p5272_p1 = pnand %p5271_p12, %p5265_p5 }
  0xa6   : > { %5275 = shalt.err (!%p5272_p1)
}
  0xa7   : > { %s5276_s3 = scalar_lea.vmem %s5796_s15, 16  ;;  %s5487_s18 = smov [#allocation9]  }
  0xa8   : > { %p5277_p4 = scmp.ne.s32.totalorder %s5796_s15, %s5276_s3  ;;  %s5281_s28 = sshll.u32 %s5487_s18, 4  ;;  %s5282_s28 = int_to_ptr.vmem [resolvable:$false] %s5281_s28 }
  0xa9   : > { %s5283_s14 = scalar_lea.vmem %s5282_s28, 32  ;;  %p5284_p11 = scmp.lt.s32.totalorder %s5796_s15, %s5282_s28 }
  0xaa   : > { %p5279_p2 = pnand %p5277_p4, %p5804_p3  ;;  %p5285_p7 = scmp.lt.s32.totalorder %s5283_s14, %s5276_s3 }
  0xac   : > { %p5280_p0 = pneg %p5279_p2  ;;  %p5286_p8 = por %p5285_p7, %p5284_p11 }
  0xae   : > { %p5287_p6 = pnand %p5286_p8, %p5280_p0 }
  0xb0   : > { %5290 = shalt.err (!%p5287_p6)
}
  0xb1   : > { %5023 = dma.hbm_to_vmem [thread:$0]  (!%p5787_p13), %s5793_s30, 16, %s5796_s15, %s5798_s12  }
  0xb2   : > { %s5844_s26 = scalar_lea.hbm %s6527_s27, %s5778_s24  ;;  %s1127_s0 = scalar_lea.vmem [#allocation10], %s5775_s21 }
  0xb3   : > { %s1134_s29 = sshll.u32 %s1127_s0, 4  ;;  %s5488_s17 = smov [#allocation6]   ;;  %s5847_s29 = int_to_ptr.vmem [resolvable:$true] %s1134_s29 }
  0xb4   : > { %s912_s3 = sshll.u32 %s5488_s17, 4  ;;  %s5291_s18 = scalar_lea.hbm %s5844_s26, 16  ;;  %s913_s3 = int_to_ptr.vmem [resolvable:$true] %s912_s3 }
  0xb5   : > { %p5292_p5 = scmp.ne.s32.totalorder %s5844_s26, %s5291_s18  ;;  %s5296_s28 = scalar_lea.hbm %s6527_s27, 32 }
  0xb6   : > { %p5297_p12 = scmp.lt.u32.totalorder %s5844_s26, %s6527_s27  ;;  %p5298_p1 = scmp.lt.u32.totalorder %s5296_s28, %s5291_s18 }
  0xb7   : > { %p5294_p9 = pnand %p5292_p5, %p5804_p3  ;;  %p5300_p2 = scmp.lt.u32.totalorder %s5291_s18, %s5844_s26 }
  0xb8   : > { %p5299_p4 = por %p5298_p1, %p5297_p12 }
  0xb9   : > { %p5295_p10 = pneg %p5294_p9 }
  0xba   : > { %p5301_p0 = por %p5300_p2, %p5299_p4 }
  0xbc   : > { %p5302_p11 = pnand %p5301_p0, %p5295_p10 }
  0xbe   : > { %5305 = shalt.err (!%p5302_p11)
}
  0xbf   : > { %s5306_s30 = scalar_lea.vmem %s5847_s29, 16  ;;  %s5489_s15 = smov [#allocation10]  }
  0xc0   : > { %p5307_p7 = scmp.ne.s32.totalorder %s5847_s29, %s5306_s30  ;;  %s5311_s14 = sshll.u32 %s5489_s15, 4  ;;  %s5312_s14 = int_to_ptr.vmem [resolvable:$false] %s5311_s14 }
  0xc1   : > { %s5313_s0 = scalar_lea.vmem %s5312_s14, 32  ;;  %p5314_p5 = scmp.lt.s32.totalorder %s5847_s29, %s5312_s14 }
  0xc2   : > { %p5309_p8 = pnand %p5307_p7, %p5804_p3  ;;  %p5315_p9 = scmp.lt.s32.totalorder %s5313_s0, %s5306_s30 }
  0xc4   : > { %p5310_p6 = pneg %p5309_p8  ;;  %p5316_p12 = por %p5315_p9, %p5314_p5 }
  0xc6   : > { %p5317_p1 = pnand %p5316_p12, %p5310_p6 }
  0xc8   : > { %5320 = shalt.err (!%p5317_p1)
}
  0xc9   : > { %5026 = dma.hbm_to_vmem [thread:$0]  (!%p5787_p13), %s5844_s26, 16, %s5847_s29, %s5798_s12  }
  0xca   : > { %s5321_s17 = scalar_lea.hbm %s6528_s25, 16  ;;  %p6552_p4 = scmp.ne.s32.totalorder %s6542_s2, 0 }
  0xcb   : > { %p5322_p10 = scmp.ne.s32.totalorder %s6528_s25, %s5321_s17  ;;  %p5328_p7 = scmp.lt.u32.totalorder %s5321_s17, %s6528_s25 }
  0xcc   : > { %p6553_p2 = pneg %p6552_p4 }
  0xce   : > { %p5324_p0 = pnand %p5322_p10, %p6553_p2 }
  0xd0   : > { %p5325_p11 = pneg %p5324_p0 }
  0xd2   : > { %p5330_p8 = pnand %p5328_p7, %p5325_p11 }
  0xd4   : > { %5333 = shalt.err (!%p5330_p8)
}
  0xd5   : > { %s5334_s18 = scalar_lea.vmem %s913_s3, 16  ;;  %p6554_p5 = pmov %p6553_p2 }
  0xd6   : > { %p5335_p6 = scmp.ne.s32.totalorder %s913_s3, %s5334_s18  ;;  %s5341_s28 = scalar_lea.vmem %s913_s3, 32 }
  0xd7   : > { %p5342_p1 = scmp.lt.s32.totalorder %s913_s3, %s913_s3  ;;  %p5343_p13 = scmp.lt.s32.totalorder %s5341_s28, %s5334_s18 }
  0xd8   : > { %p5337_p9 = pnand %p5335_p6, %p6554_p5 }
  0xd9   : > { %p5344_p3 = por %p5343_p13, %p5342_p1 }
  0xda   : > { %p5338_p12 = pneg %p5337_p9 }
  0xdc   : > { %p5345_p2 = pnand %p5344_p3, %p5338_p12 }
  0xde   : > { %5348 = shalt.err (!%p5345_p2)
}
  0xdf   : > { %5016 = dma.hbm_to_vmem [thread:$0]  (!%p6552_p4), %s6528_s25, 16, %s913_s3, [#allocation7]  }
  0xe0   : > { %s5881_s26 = scalar_lea.hbm %s6530_s6, %s5778_s24  ;;  %s1144_s29 = scalar_lea.vmem [#allocation11], %s5775_s21 }
  0xe1   : > { %s1151_s30 = sshll.u32 %s1144_s29, 4  ;;  %s5349_s15 = scalar_lea.hbm %s5881_s26, 16  ;;  %s1152_s30 = int_to_ptr.vmem [resolvable:$true] %s1151_s30 }
  0xe2   : > { %p5350_p13 = scmp.ne.s32.totalorder %s5881_s26, %s5349_s15  ;;  %p6555_p3 = scmp.ne.s32.totalorder %s6551_s8, 0 }
  0xe3   : > { %s5354_s2 = scalar_lea.hbm %s6530_s6, 32  ;;  %p5355_p11 = scmp.lt.u32.totalorder %s5881_s26, %s6530_s6 }
  0xe4   : > { %p5352_p10 = pnand %p5350_p13, %p6555_p3  ;;  %p5356_p7 = scmp.lt.u32.totalorder %s5354_s2, %s5349_s15 }
  0xe5   : > { %p5358_p6 = scmp.lt.u32.totalorder %s5349_s15, %s5881_s26 }
  0xe6   : > { %p5353_p0 = pneg %p5352_p10  ;;  %p5357_p8 = por %p5356_p7, %p5355_p11 }
  0xe8   : > { %p5359_p4 = por %p5358_p6, %p5357_p8 }
  0xea   : > { %p5360_p5 = pnand %p5359_p4, %p5353_p0 }
  0xec   : > { %5363 = shalt.err (!%p5360_p5)
}
  0xed   : > { %s5364_s24 = scalar_lea.vmem %s1152_s30, 16  ;;  %s5490_s21 = smov [#allocation11]  }
  0xee   : > { %p5365_p9 = scmp.ne.s32.totalorder %s1152_s30, %s5364_s24  ;;  %s5369_s3 = sshll.u32 %s5490_s21, 4  ;;  %s5370_s3 = int_to_ptr.vmem [resolvable:$false] %s5369_s3 }
  0xef   : > { %s5371_s14 = scalar_lea.vmem %s5370_s3, 32  ;;  %p5372_p2 = scmp.lt.s32.totalorder %s1152_s30, %s5370_s3 }
  0xf0   : > { %p5367_p12 = pnand %p5365_p9, %p6555_p3  ;;  %p5373_p13 = scmp.lt.s32.totalorder %s5371_s14, %s5364_s24 }
  0xf2   : > { %p5368_p1 = pneg %p5367_p12  ;;  %p5374_p10 = por %p5373_p13, %p5372_p2 }
  0xf4   : > { %p5375_p7 = pnand %p5374_p10, %p5368_p1 }
  0xf6   : > { %5378 = shalt.err (!%p5375_p7)
}
  0xf7   : > { %p6556_p11 = scmp.ne.s32.totalorder %s6550_s19, 0  ;;  %p6557_p0 = scmp.ne.s32.totalorder %s6541_s11, 0 }
  0xf9   : > { %5029 = dma.hbm_to_vmem [thread:$0]  (!%p6556_p11), %s5881_s26, 16, %s1152_s30, %s5798_s12  }
  0xfa   : > { %1160 = sbr.rel (%p6557_p0) target bundleno = 5153 (0x1421), region = 140 }
 0x101   : > { %p6558_p3 = scmp.ne.s32.totalorder %s6539_s7, 0 }
 0x103   : > { %5412 = dma.done.wait (%p6558_p3), [#allocation5], 16  }
 0x104   : > { %5414 = vsyncadd (%p6558_p3), [#allocation5], 4294967280 }
 0x105   : > { %5416 = dma.done.wait (%p6558_p3), [#allocation7], 16  }
 0x106   : > { %5418 = vsyncadd (%p6558_p3), [#allocation7], 4294967280  ;;  %s6559_s8 = sadd.s32 4294967295, %s5453_s1   ;;  %s5911_s12 = sand.u32 1, %s5429_s16  }
 0x107   : > { %s1170_s19 = sand.u32 1, %s6559_s8   ;;  %6560 = sst [smem:[#allocation55_spill]] %s5911_s12 }
 0x108   : > { %s1171_s11 = scalar_lea.sflag [#allocation5], %s1170_s19  ;;  %p6561_p8 = scmp.ne.s32.totalorder %s6540_s10, 0 }
 0x10a   : > { %5420 = dma.done.wait (%p6561_p8), %s1171_s11, 64  }
 0x10b   : > { %5422 = vsyncadd (%p6561_p8), %s1171_s11, 4294967232  ;;  %s6562_s5 = sld [smem:[#allocation15_spill]]  ;;  %s6563_s9 = sld [smem:[#allocation16_spill]] }
 0x10c   : > { %s6564_s13 = sld [smem:[#allocation17_spill]]  ;;  %s6567_s18 = sld [smem:[#allocation21_spill]] }
 0x10d   : > { %s6568_s28 = sld [smem:[#allocation23_spill]]  ;;  %s6570_s29 = sld [smem:[#allocation25_spill]] }
 0x10e   : > { %p1383_p6 = scmp.lt.s32.totalorder %s5441_s23, 1  ;;  %p1400_p4 = scmp.lt.s32.totalorder %s5437_s22, 1 }
 0x10f   : > { %s6574_s24 = sld [smem:[#allocation29_spill]]  ;;  %s6576_s8 = sld [smem:[#allocation31_spill]] }
 0x110   : > { %s6639_s23 = smov (!%p1383_p6, %s5441_s23), 1  ;;  %s6580_s4 = sld [smem:[#allocation33_spill]] }
 0x111   : > { %s5924_s2 = scalar_select %p1400_p4, %s5437_s22, 1 }
 0x112   : > { %s4750_s21 = sshll.u32 %s6639_s23, 4  ;;  %s4650_s14 = sshll.u32 %s6639_s23, 2 }
 0x113   : > { %s5929_s19 = scalar_lea.vmem %s6562_s5, %s4750_s21  ;;  %s5932_s0 = scalar_lea.vmem %s6563_s9, %s4750_s21 }
 0x114   : > { %6577 = sst [smem:[#allocation56_spill]] %s5929_s19  ;;  %s5935_s6 = scalar_lea.vmem %s6564_s13, %s4650_s14 }
 0x115   : > { %6579 = sst [smem:[#allocation57_spill]] %s5932_s0  ;;  %s6582_s20 = sld [smem:[#allocation34_spill]] }
 0x116   : > { %6581 = sst [smem:[#allocation58_spill]] %s5935_s6  ;;  %s6583_s27 = sld [smem:[#allocation35_spill]] }
 0x117   : > { %s4752_s16 = sshll.u32 %s5924_s2, 4  ;;  %s6584_s1 = sld [smem:[#allocation36_spill]] }
 0x118   : > { %s6585_s12 = sld [smem:[#allocation37_spill]]  ;;  %s5943_s5 = scalar_lea.vmem %s6567_s18, %s4752_s16 }
 0x119   : > { %6586 = sst [smem:[#allocation59_spill]] %s5943_s5  ;;  %s6587_s19 = sld [smem:[#allocation38_spill]] }
 0x11a   : > { %s5946_s9 = scalar_lea.vmem %s6568_s28, %s4752_s16  ;;  %s6589_s21 = sld [smem:[#allocation39_spill]] }
 0x11b   : > { %6588 = sst [smem:[#allocation60_spill]] %s5946_s9  ;;  %s5951_s14 = scalar_lea.vmem %s6570_s29, %s4752_s16 }
 0x11c   : > { %s6590_s25 = sld [smem:[#allocation41_spill]]  ;;  %s5960_s17 = scalar_lea.vmem %s6574_s24, %s4752_s16 }
 0x11d   : > { %s6591_s22 = sld [smem:[#allocation45_spill]]  ;;  %s6592_s5 = sld [smem:[#allocation55_spill]] }
 0x11e   : > { %s5965_s28 = scalar_lea.vmem %s6576_s8, %s4752_s16  ;;  %s5970_s26 = scalar_lea.vmem %s6580_s4, %s4752_s16 }
 0x11f   : > { %6593 = sst [smem:[#allocation61_spill]] %s5970_s26  ;;  %s1453_s29 = scalar_lea.vmem %s6582_s20, %s5924_s2 }
 0x120   : > { %s5975_s0 = scalar_lea.vmem %s6583_s27, %s4752_s16  ;;  %s1461_s30 = scalar_lea.vmem %s6584_s1, %s5924_s2 }
 0x121   : > { %s1464_s7 = scalar_lea.vmem %s6585_s12, %s5924_s2  ;;  %s1467_s15 = scalar_lea.vmem %s6587_s19, %s5924_s2 }
 0x122   : > { %s5984_s13 = scalar_lea.vmem %s6589_s21, %s4752_s16  ;;  %s4760_s10 = sshll.u32 %s5924_s2, 5 }
 0x123   : > { %s4669_s24 = sshll.u32 %s5924_s2, 1  ;;  %s5989_s6 = scalar_lea.vmem %s6590_s25, %s4760_s10 }
 0x124   : > { %s1483_s3 = sadd.s32 %s4669_s24, %s6639_s23  ;;  %s1181_s11 = scalar_lea.vmem [#allocation9], %s6592_s5 }
 0x125   : > { %s4670_s8 = sshll.u32 %s1483_s3, 2  ;;  %s1189_s9 = scalar_lea.vmem [#allocation10], %s6592_s5 }
 0x126   : > { %s5993_s18 = scalar_lea.vmem %s6591_s22, %s4670_s8  ;;  %s1197_s4 = scalar_lea.vmem [#allocation11], %s6592_s5 }
 0x127   : > { %s6594_s26 = sld [smem:[#allocation48_spill]] }
 0x12d   : > { %p4671_p5 = scmp.ne.s32.totalorder %s6594_s26, 0 }
 0x12e   : > { %vm1491_vm0 = vcmask (!%p4671_p5), 257024   ;;  %s6595_s20 = sld [smem:[#allocation56_spill]] (!%p4671_p5)  ;;  %s6596_s27 = sld [smem:[#allocation57_spill]] (!%p4671_p5)  ;;  %vm1499_vm1 = vcmask (!%p4671_p5), 261120   ;;  %v5491_v3 = vmov (!%p4671_p5), 0.0  }
 0x12f   : > { %1490 = sbr.rel (%p4671_p5) target bundleno = 313 (0x139), region = 168  ;;  %1492 = vst.msk [vmem:[#allocation2] sm:$0xf] (!%p4671_p5), %vm1491_vm0, %v5491_v3 }
 0x134   : > { %v1493_v0 = vld [vmem:[%s6595_s20] sm:$0xff] (!%p4671_p5)  ;;  %v1494_v2 = vld [vmem:[%s6595_s20 + $0x8] sm:$0xff] (!%p4671_p5) }
 0x135   : > { %v1495_v1 = vld [vmem:[%s6596_s27] sm:$0xff] (!%p4671_p5)  ;;  %v1496_v5 = vld [vmem:[%s6596_s27 + $0x8] sm:$0xff] (!%p4671_p5) }
 0x136   : > { %v1497_v4 = vadd.f32 %v1495_v1, %v1493_v0  ;;  %v1498_v6 = vadd.f32 %v1496_v5, %v1494_v2 }
 0x138   : > { %1500 = vst.msk [vmem:[#allocation3] sm:$0xff] %vm1499_vm1, %v1497_v4  ;;  %1501 = vst.msk [vmem:[#allocation3 + $0x8] sm:$0xff] %vm1499_vm1, %v1498_v6 }
 0x139 PF: > { %s6597_s5 = sld [smem:[#allocation59_spill]]  ;;  %s6598_s25 = sld [smem:[#allocation58_spill]]  ;;  %v5492_v8 = vmov 0.0   ;;  %vm5493_vm2 = vmmov 0   ;;  %v6009_v10 = vld [vmem:[#allocation2] sm:$0xf]  ;;  %v1661_v29 = vlaneseq }
 0x13a   : > { %4822 = vmatprep.subr.bf16.mxu1 %v5492_v8  ;;  %4838 = vmatprep.subr.bf16.mxu0 %v5492_v8  ;;  %s6599_s16 = sld [smem:[#allocation22_spill]]  ;;  %vm1531_vm3 = vcmask 261120   ;;  %s6600_s22 = sld [smem:[#allocation60_spill]]  ;;  %v1575_v25 = vpack.c.bf16 %v6009_v10, %v6009_v10  ;;  %v5498_v27 = vmov 1983009808   ;;  %vm1895_vm4 = vcmask 64512  }
 0x13b   : > { %4826 = vmatprep.mubr.msk.bf16.mxu1 %vm5493_vm2, %v5492_v8  ;;  %4840 = vmatprep.mubr.msk.bf16.mxu0 %vm5493_vm2, %v5492_v8  ;;  %s5494_s12 = smov 104   ;;  %s5495_s19 = smov 120   ;;  %v1659_v28 = vunpack.c.l.s4 %v5498_v27  ;;  %v6038_v31 = vshrl.u32 %v1661_v29, 7  ;;  %v5499_v32 = vmov 1934713408   ;;  %vm2084_vm5 = vcmask 27648  }
 0x13c   : > { %s5496_s21 = smov 96   ;;  %s5497_s26 = smov 112   ;;  %v1676_v33 = vunpack.c.l.s4 %v5499_v32  ;;  %vm2137_vm6 = vcmask 1041408   ;;  %vm2133_vm7 = vcmask 31744   ;;  %vm2400_vm8 = vcmask 130048  }
 0x13d   : > { %v1660_v30 = vunpack.c.0.s8 %v1659_v28  ;;  %s6602_s10 = sld [smem:[#allocation24_spill]]  ;;  %s5500_s3 = smov 16   ;;  %vm2402_vm9 = vcmask 195584   ;;  %vm2469_vm10 = vcmask 257024   ;;  %vm3583_vm11 = vcmask 125952  }
 0x13e   : > { %v1677_v36 = vunpack.c.0.s8 %v1676_v33  ;;  %s6604_s8 = sld [smem:[#allocation26_spill]]  ;;  %s5502_s20 = smov 24   ;;  %vm4087_vm12 = vcmask 523264  }
 0x13f   : > { %v5143_v7 = vld [vmem:[%s6597_s5] sm:$0xff]   ;;  %v5144_v9 = vld [vmem:[%s6597_s5 + $0x8] sm:$0xff]   ;;  %v6041_v35 = vsub.s32 %v1660_v30, %v6038_v31  ;;  %s6606_s5 = sld [smem:[#allocation32_spill]] }
 0x140   : > { %4823 = vmatpush3.bf16.msra.mxu1 %v5143_v7  ;;  %v6012_v11 = vld [vmem:[%s6598_s25] sm:$0xf]  ;;  %s6601_s1 = scalar_lea.vmem %s6599_s16, %s5924_s2  ;;  %v5146_v23 = vld [vmem:[%s6600_s22 + $0x8] sm:$0xff]   ;;  %v6046_v41 = vsub.s32 %v1677_v36, %v6038_v31  ;;  %s6608_s25 = sld [smem:[#allocation27_spill]] }
 0x141   : > { %4824 = vmatprep.subr.bf16.mxu1 %v5492_v8  ;;  %v1506_v12 = vadd.f32 %v6012_v11, %v6009_v10  ;;  %v4672_v14 = vld [vmem:[%s6601_s1] ss:$0 sm:$0xff]  ;;  %s6609_s16 = sld [smem:[#allocation28_spill]] }
 0x142   : > { %v5145_v20 = vld [vmem:[%s6600_s22] sm:$0xff]  }
 0x143   : > { %v1507_v13 = vpack.c.bf16 %v1506_v12, %v1506_v12  ;;  %s6603_s24 = scalar_lea.vmem %s6602_s10, %s5924_s2  ;;  %s6614_s10 = sld [smem:[#allocation30_spill]] }
 0x144   : > { %4825 = vmatpush3.bf16.msra.mxu1 %v5144_v9  ;;  %s6605_s27 = scalar_lea.vmem %s6604_s8, %s5924_s2 }
 0x145   : > { %4830 = vmatprep.subr.bf16.mxu1 %v5492_v8 }
 0x146   : > { %s6611_s22 = scalar_lea.vmem %s6608_s25, %s5924_s2 }
 0x147   : > { %4827 = vmatmul.mubr.msk.bf16.vlgmr.msra.gmra.mrb[0].mxu1 %vm1531_vm3, %v1507_v13  ;;  %s6612_s1 = scalar_lea.vmem %s6609_s16, %s5924_s2 }
 0x148   : > { %4834 = vmatprep.mubr.msk.bf16.mxu1 %vm5493_vm2, %v5492_v8  ;;  %4831 = vmatpush3.bf16.msra.mxu1 %v5145_v20 }
 0x149   : > { %4832 = vmatprep.subr.bf16.mxu1 %v5492_v8  ;;  %s6616_s8 = scalar_lea.vmem %s6614_s10, %s5924_s2 }
 0x14c   : > { %4833 = vmatpush3.bf16.msra.mxu1 %v5146_v23 }
 0x14d   : > { %4844 = vmatprep.subr.bf16.mxu1 %v5492_v8 }
 0x14f   : > { %4835 = vmatmul.mubr.msk.bf16.vlgmr.msra.gmra.mrb[4].mxu1 %vm1531_vm3, %v1575_v25 }
 0x150   : > { %4846 = vmatprep.mubr.msk.bf16.mxu1 %vm5493_vm2, %v5492_v8 }
 0x21a   : > { %v1569_v15 = vpop.f32.mrb[0].mxu1 }
 0x21b   : > { %v1570_v16 = vadd.f32 %v4672_v14, %v1569_v15  ;;  %v4828_v17 = vpop.f32.mrb[1].mxu1 }
 0x21c   : > { %v1572_v18 = vpop.f32.mrb[2].mxu1 }
 0x21d   : > { %1654 = vrot.lane.b32.xlu1 %v1570_v16, %s5494_s12  ;;  %1648 = vrot.lane.b32.xlu0 %v1570_v16, %s5495_s19  ;;  %v4829_v19 = vpop.f32.mrb[3].mxu1 }
 0x221   : > { %1725 = vrot.lane.b32.xlu1 %v1570_v16, %s5496_s21  ;;  %1651 = vrot.lane.b32.xlu0 %v1570_v16, %s5497_s26 }
 0x222   : > { %v1636_v27 = vpop.f32.mrb[4].mxu1 }
 0x223   : > { %v4836_v28 = vpop.f32.mrb[5].mxu1 }
 0x224   : > { %v1639_v29 = vpop.f32.mrb[6].mxu1 }
 0x225   : > { %v4837_v30 = vpop.f32.mrb[7].mxu1 }
 0x28f   : > { %v1655_v21 = vpop.permute.xlu1 %1654  ;;  %v1649_v22 = vpop.permute.xlu0 %1648 }
 0x290   : > { %v1665_v24 = vcombine.low %v1649_v22, %v1655_v21  ;;  %1727 = vrot.lane.b32.xlu0 %v1649_v22, %s5496_s21 }
 0x292   : > { %v1672_v40 = vrot.slane %v1665_v24, %v6041_v35 }
 0x293   : > { %v1652_v26 = vpop.permute.xlu0 %1651  ;;  %v1726_v38 = vpop.permute.xlu1 %1725 }
 0x294   : > { %1731 = vrot.lane.b32.xlu0 %v1655_v21, %s5496_s21  ;;  %1729 = vrot.lane.b32.xlu1 %v1652_v26, %s5496_s21  ;;  %v1657_v34 = vcombine.low %v1570_v16, %v1652_v26  ;;  %s6613_s21 = sld [smem:[#allocation56_spill]] }
 0x296   : > { %v1664_v37 = vrot.slane %v1657_v34, %v6041_v35 }
 0x298   : > { %v1673_v42 = vcombine.low %v1664_v37, %v1672_v40  ;;  %v1674_v43 = vcombine.high %v1664_v37, %v1672_v40 }
 0x29a   : > { %v1681_v48 = vrot.slane %v1673_v42, %v6046_v41  ;;  %v1688_v49 = vrot.slane %v1674_v43, %v6046_v41 }
 0x29c   : > { %v1691_v54 = vcombine.low %v1681_v48, %v1688_v49  ;;  %v4680_v55 = vcombine.high %v1681_v48, %v1688_v49 }
 0x29e   : > { %v1698_v60 = vrot.slane %v1691_v54, %v6041_v35  ;;  %v1706_v61 = vrot.slane %v4680_v55, %v6041_v35 }
 0x2a0   : > { %v1707_v3 = vcombine.low %v1698_v60, %v1706_v61  ;;  %v1708_v15 = vcombine.high %v1698_v60, %v1706_v61 }
 0x2a2   : > { %v1715_v12 = vrot.slane %v1707_v3, %v6046_v41  ;;  %v1722_v22 = vrot.slane %v1708_v15, %v6046_v41 }
 0x2a4   : > { %v1723_v16 = vcombine.high %v1715_v12, %v5492_v8  ;;  %v1883_v18 = vpack.c.bf16 %v1715_v12, %v1715_v12  ;;  %v1724_v24 = vcombine.high %v1722_v22, %v5492_v8  ;;  %v1885_v25 = vpack.c.bf16 %v1722_v22, %v1722_v22 }
 0x2a6   : > { %v1884_v21 = vpack.c.bf16 %v1723_v16, %v1723_v16  ;;  %v1886_v26 = vpack.c.bf16 %v1724_v24, %v1724_v24 }
 0x302   : > { %v1728_v39 = vpop.permute.xlu0 %1727 }
 0x306   : > { %v1730_v44 = vpop.permute.xlu1 %1729  ;;  %v1732_v45 = vpop.permute.xlu0 %1731 }
 0x307   : > { %v1737_v46 = vcombine.low %v1726_v38, %v1730_v44  ;;  %v1745_v47 = vcombine.low %v1728_v39, %v1732_v45 }
 0x309   : > { %v1744_v50 = vrot.slane %v1737_v46, %v6041_v35  ;;  %v1752_v51 = vrot.slane %v1745_v47, %v6041_v35 }
 0x30b   : > { %v1753_v52 = vcombine.low %v1744_v50, %v1752_v51  ;;  %v1754_v53 = vcombine.high %v1744_v50, %v1752_v51 }
 0x30d   : > { %v1761_v56 = vrot.slane %v1753_v52, %v6046_v41  ;;  %v1768_v57 = vrot.slane %v1754_v53, %v6046_v41 }
 0x30f   : > { %v1771_v58 = vcombine.low %v1761_v56, %v1768_v57  ;;  %v4681_v59 = vcombine.high %v1761_v56, %v1768_v57 }
 0x311   : > { %v1778_v62 = vrot.slane %v1771_v58, %v6041_v35  ;;  %v1786_v63 = vrot.slane %v4681_v59, %v6041_v35  ;;  %v4676_v58 = vld [vmem:[%s6603_s24] ss:$0 sm:$0xff] }
 0x312   : > { %v1637_v59 = vadd.f32 %v4676_v58, %v1636_v27 }
 0x313   : > { %v1787_v0 = vcombine.low %v1778_v62, %v1786_v63  ;;  %v1788_v1 = vcombine.high %v1778_v62, %v1786_v63 }
 0x315   : > { %v1795_v2 = vrot.slane %v1787_v0, %v6046_v41  ;;  %v1802_v6 = vrot.slane %v1788_v1, %v6046_v41 }
 0x317   : > { %v1887_v4 = vpack.c.bf16 %v1795_v2, %v1795_v2  ;;  %v1803_v5 = vcombine.high %v1795_v2, %v5492_v8  ;;  %v1804_v14 = vcombine.high %v1802_v6, %v5492_v8  ;;  %v1889_v17 = vpack.c.bf16 %v1802_v6, %v1802_v6 }
 0x319   : > { %v1900_v7 = vsel %vm1895_vm4, %v1887_v4, 0  ;;  %v1888_v9 = vpack.c.bf16 %v1803_v5, %v1803_v5  ;;  %v1890_v19 = vpack.c.bf16 %v1804_v14, %v1804_v14  ;;  %v1992_v20 = vsel %vm1895_vm4, %v1889_v17, 0 }
 0x31a   : > { %4839 = vmatpush3.bf16.xpose.msra.mxu0 %v1900_v7 }
 0x31b   : > { %v1946_v13 = vsel %vm1895_vm4, %v1888_v9, 0  ;;  %4850 = vmatprep.subr.bf16.mxu0 %v5492_v8  ;;  %v2038_v23 = vsel %vm1895_vm4, %v1890_v19, 0 }
 0x31c   : > { %4845 = vmatpush3.bf16.xpose.msra.mxu1 %v1946_v13 }
 0x31d   : > { %4856 = vmatprep.subr.bf16.mxu1 %v5492_v8 }
 0x321   : > { %4841 = vmatmul.mubr.msk.bf16.vlgmr.msra.gmra.mrb[0].mxu0 %vm1895_vm4, %v1883_v18 }
 0x322   : > { %4851 = vmatpush3.bf16.xpose.msra.mxu0 %v1992_v20  ;;  %4852 = vmatprep.mubr.msk.bf16.mxu0 %vm5493_vm2, %v5492_v8 }
 0x323   : > { %4847 = vmatmul.mubr.msk.bf16.vlgmr.msra.gmra.mrb[8].mxu1 %vm1895_vm4, %v1884_v21  ;;  %4862 = vmatprep.subr.bf16.mxu0 %v5492_v8 }
 0x324   : > { %4857 = vmatpush3.bf16.xpose.msra.mxu1 %v2038_v23  ;;  %4858 = vmatprep.mubr.msk.bf16.mxu1 %vm5493_vm2, %v5492_v8 }
 0x325   : > { %4868 = vmatprep.subr.bf16.mxu1 %v5492_v8 }
 0x329   : > { %4853 = vmatmul.mubr.msk.bf16.vlgmr.msra.gmra.mrb[4].mxu0 %vm1895_vm4, %v1885_v25 }
 0x32a   : > { %4864 = vmatprep.mubr.msk.bf16.mxu0 %vm5493_vm2, %v5492_v8 }
 0x32b   : > { %4859 = vmatmul.mubr.msk.bf16.vlgmr.msra.gmra.mrb[12].mxu1 %vm1895_vm4, %v1886_v26 }
 0x32c   : > { %4870 = vmatprep.mubr.msk.bf16.mxu1 %vm5493_vm2, %v5492_v8 }
 0x3f4   : > { %v1936_v32 = vpop.f32.mrb[0].mxu0 }
 0x3f5   : > { %v2080_v33 = vmul.f32 0.35355338, %v1936_v32  ;;  %v4842_v34 = vpop.f32.mrb[1].mxu0 }
 0x3f6   : > { %v1939_v36 = vpop.f32.mrb[2].mxu0  ;;  %v1982_v37 = vpop.f32.mrb[8].mxu1 }
 0x3f7   : > { %v2081_v38 = vmul.f32 0.35355338, %v1982_v37  ;;  %v4843_v39 = vpop.f32.mrb[3].mxu0  ;;  %v4848_v40 = vpop.f32.mrb[9].mxu1  ;;  %v2085_v42 = vsel %vm2084_vm5, %v2080_v33, -inf }
 0x3f8   : > { %2086 = vmax.xlane.f32.xlu1 %v2085_v42  ;;  %v1985_v43 = vpop.f32.mrb[10].mxu1 }
 0x3f9   : > { %v4849_v44 = vpop.f32.mrb[11].mxu1  ;;  %v2088_v45 = vsel %vm2084_vm5, %v2081_v38, -inf }
 0x3fa   : > { %2089 = vmax.xlane.f32.xlu0 %v2088_v45 }
 0x3fc   : > { %v2028_v46 = vpop.f32.mrb[4].mxu0 }
 0x3fd   : > { %v2082_v47 = vmul.f32 0.35355338, %v2028_v46  ;;  %v4854_v48 = vpop.f32.mrb[5].mxu0 }
 0x3fe   : > { %v2031_v49 = vpop.f32.mrb[6].mxu0  ;;  %v2074_v50 = vpop.f32.mrb[12].mxu1 }
 0x3ff   : > { %v2083_v51 = vmul.f32 0.35355338, %v2074_v50  ;;  %v4855_v52 = vpop.f32.mrb[7].mxu0  ;;  %v4860_v53 = vpop.f32.mrb[13].mxu1  ;;  %v2091_v54 = vsel %vm2084_vm5, %v2082_v47, -inf }
 0x400   : > { %2092 = vmax.xlane.f32.xlu0 %v2091_v54  ;;  %v2077_v55 = vpop.f32.mrb[14].mxu1 }
 0x401   : > { %v4861_v56 = vpop.f32.mrb[15].mxu1  ;;  %v2094_v57 = vsel %vm2084_vm5, %v2083_v51, -inf }
 0x402   : > { %2095 = vmax.xlane.f32.xlu1 %v2094_v57 }
 0x413   : > { %1809 = vrot.lane.b32.xlu1 %v1637_v59, %s5497_s26 }
 0x485   : > { %v2087_v60 = vpop.xlane.xlu1 %2086 }
 0x486   : > { %v2097_v61 = vsub.f32 %v2080_v33, %v2087_v60 }
 0x487   : > { %v2090_v62 = vpop.xlane.xlu0 %2089 }
 0x488   : > { %v2101_v63 = vmul.f32 1.442695, %v2097_v61  ;;  %v2098_v0 = vsub.f32 %v2081_v38, %v2090_v62 }
 0x48a   : > { %5163 = vpow2.f32 %v2101_v63  ;;  %v2103_v1 = vmul.f32 1.442695, %v2098_v0 }
 0x48c   : > { %5165 = vpow2.f32 %v2103_v1 }
 0x48d   : > { %v2093_v6 = vpop.xlane.xlu0 %2092 }
 0x48e   : > { %v2099_v9 = vsub.f32 %v2082_v47, %v2093_v6 }
 0x48f   : > { %v2096_v7 = vpop.xlane.xlu1 %2095 }
 0x490   : > { %v2100_v12 = vsub.f32 %v2083_v51, %v2096_v7  ;;  %v2105_v13 = vmul.f32 1.442695, %v2099_v9 }
 0x492   : > { %v2107_v14 = vmul.f32 1.442695, %v2100_v12  ;;  %5167 = vpow2.f32 %v2105_v13 }
 0x493   : > { %v1810_v19 = vpop.permute.xlu1 %1809 }
 0x494   : > { %v5164_v2 = vpop.eup %5163  ;;  %5169 = vpow2.f32 %v2107_v14  ;;  %v1815_v22 = vcombine.low %v1637_v59, %v1810_v19 }
 0x495   : > { %v2109_v3 = vsel %vm2084_vm5, %v5164_v2, 0.0 }
 0x496   : > { %v5166_v4 = vpop.eup %5165  ;;  %2110 = vadd.xlane.f32.xlu0 %v2109_v3  ;;  %v1822_v26 = vrot.slane %v1815_v22, %v6041_v35 }
 0x497   : > { %v2112_v5 = vsel %vm2084_vm5, %v5166_v4, 0.0 }
 0x498   : > { %2113 = vadd.xlane.f32.xlu1 %v2112_v5 }
 0x49c   : > { %v6098_v15 = vpop.eup %5167 }
 0x49d   : > { %v2115_v17 = vsel %vm2084_vm5, %v6098_v15, 0.0 }
 0x49e   : > { %v6100_v16 = vpop.eup %5169 }
 0x49f   : > { %v2118_v18 = vsel %vm2084_vm5, %v6100_v16, 0.0 }
 0x4a9   : > { %1812 = vrot.lane.b32.xlu1 %v1637_v59, %s5494_s12 }
 0x4ac   : > { %1806 = vrot.lane.b32.xlu0 %v1637_v59, %s5495_s19 }
 0x4cb   : > { %2116 = vadd.xlane.f32.xlu0 %v2115_v17 }
 0x4cd   : > { %2119 = vadd.xlane.f32.xlu1 %v2118_v18 }
 0x523   : > { %v2111_v20 = vpop.xlane.xlu0 %2110 }
 0x524   : > { %5171 = vrcp.f32 %v2111_v20 }
 0x525   : > { %v2114_v21 = vpop.xlane.xlu1 %2113 }
 0x526   : > { %5173 = vrcp.f32 %v2114_v21 }
 0x527   : > { %v1807_v23 = vpop.permute.xlu0 %1806 }
 0x529   : > { %v1813_v24 = vpop.permute.xlu1 %1812 }
 0x52a   : > { %v1823_v25 = vcombine.low %v1807_v23, %v1813_v24 }
 0x52c   : > { %v1830_v27 = vrot.slane %v1823_v25, %v6041_v35 }
 0x52e   : > { %v1831_v28 = vcombine.low %v1822_v26, %v1830_v27  ;;  %v1832_v29 = vcombine.high %v1822_v26, %v1830_v27  ;;  %v5172_v40 = vpop.eup %5171  ;;  %v5147_v26 = vld [vmem:[%s5951_s14] sm:$0xff]  }
 0x52f   : > { %v2125_v45 = vmul.f32 %v5172_v40, %v5164_v2 }
 0x530   : > { %v1839_v30 = vrot.slane %v1831_v28, %v6046_v41  ;;  %v1846_v32 = vrot.slane %v1832_v29, %v6046_v41  ;;  %v5174_v44 = vpop.eup %5173 }
 0x531   : > { %v2126_v49 = vmul.f32 %v5174_v44, %v5166_v4  ;;  %v2129_v54 = vpack.c.bf16 %v2125_v45, %v2125_v45 }
 0x532   : > { %v1849_v33 = vcombine.low %v1839_v30, %v1846_v32  ;;  %v4682_v34 = vcombine.high %v1839_v30, %v1846_v32  ;;  %v5148_v32 = vld [vmem:[%s5951_s14 + $0x8] sm:$0xff]   ;;  %s5501_s14 = smov 8  }
 0x533   : > { %v2130_v57 = vpack.c.bf16 %v2126_v49, %v2126_v49 }
 0x534   : > { %v1856_v36 = vrot.slane %v1849_v33, %v6041_v35  ;;  %v1864_v37 = vrot.slane %v4682_v34, %v6041_v35 }
 0x536   : > { %v1865_v38 = vcombine.low %v1856_v36, %v1864_v37  ;;  %v1866_v39 = vcombine.high %v1856_v36, %v1864_v37 }
 0x538   : > { %v1873_v42 = vrot.slane %v1865_v38, %v6046_v41  ;;  %v1880_v43 = vrot.slane %v1866_v39, %v6046_v41 }
 0x53a   : > { %v1891_v46 = vpack.c.bf16 %v1873_v42, %v1873_v42  ;;  %v1881_v47 = vcombine.high %v1873_v42, %v5492_v8  ;;  %v1882_v48 = vcombine.high %v1880_v43, %v5492_v8  ;;  %v1893_v52 = vpack.c.bf16 %v1880_v43, %v1880_v43 }
 0x53c   : > { %v2139_v50 = vsel %vm2137_vm6, %v1891_v46, 0  ;;  %v1892_v51 = vpack.c.bf16 %v1881_v47, %v1881_v47  ;;  %v1894_v55 = vpack.c.bf16 %v1882_v48, %v1882_v48  ;;  %v2231_v56 = vsel %vm2137_vm6, %v1893_v52, 0  ;;  %v4692_v52 = vld [vmem:[%s6605_s27] ss:$0 sm:$0xff] }
 0x53d   : > { %4863 = vmatpush3.bf16.msra.mxu0 %v2139_v50 }
 0x53e   : > { %v2185_v53 = vsel %vm2137_vm6, %v1892_v51, 0  ;;  %4874 = vmatprep.subr.bf16.mxu0 %v5492_v8  ;;  %v2277_v58 = vsel %vm2137_vm6, %v1894_v55, 0 }
 0x53f   : > { %4869 = vmatpush3.bf16.msra.mxu1 %v2185_v53 }
 0x540   : > { %4865 = vmatmul.mubr.msk.bf16.vlgmr.msra.gmra.mrb[8].mxu0 %vm2133_vm7, %v2129_v54  ;;  %4880 = vmatprep.subr.bf16.mxu1 %v5492_v8 }
 0x541   : > { %4875 = vmatpush3.bf16.msra.mxu0 %v2231_v56  ;;  %4876 = vmatprep.mubr.msk.bf16.mxu0 %vm5493_vm2, %v5492_v8 }
 0x542   : > { %4871 = vmatmul.mubr.msk.bf16.vlgmr.msra.gmra.mrb[16].mxu1 %vm2133_vm7, %v2130_v57  ;;  %4886 = vmatprep.subr.bf16.mxu0 %v5492_v8 }
 0x543   : > { %4881 = vmatpush3.bf16.msra.mxu1 %v2277_v58  ;;  %4882 = vmatprep.mubr.msk.bf16.mxu1 %vm5493_vm2, %v5492_v8 }
 0x544   : > { %4894 = vmatprep.subr.bf16.mxu1 %v5492_v8 }
 0x558   : > { %v2117_v59 = vpop.xlane.xlu0 %2116 }
 0x559   : > { %5175 = vrcp.f32 %v2117_v59 }
 0x55a   : > { %v2120_v60 = vpop.xlane.xlu1 %2119 }
 0x55b   : > { %5177 = vrcp.f32 %v2120_v60  ;;  %v5149_v60 = vld [vmem:[%s5965_s28] sm:$0xff]  }
 0x563   : > { %v5176_v61 = vpop.eup %5175 }
 0x564   : > { %v2127_v62 = vmul.f32 %v5176_v61, %v6098_v15  ;;  %v5150_v61 = vld [vmem:[%s5965_s28 + $0x8] sm:$0xff]   ;;  %s6607_s28 = scalar_lea.vmem %s6606_s5, %s5924_s2 }
 0x565   : > { %v5178_v63 = vpop.eup %5177 }
 0x566   : > { %v2128_v0 = vmul.f32 %v5178_v63, %v6100_v16  ;;  %v2131_v1 = vpack.c.bf16 %v2127_v62, %v2127_v62  ;;  %v2566_v62 = vld [vmem:[#allocation3] sm:$0xff]  ;;  %v2567_v63 = vld [vmem:[#allocation3 + $0x8] sm:$0xff] }
 0x568   : > { %4877 = vmatmul.mubr.msk.bf16.vlgmr.msra.gmra.mrb[12].mxu0 %vm2133_vm7, %v2131_v1  ;;  %v2132_v2 = vpack.c.bf16 %v2128_v0, %v2128_v0  ;;  %v2568_v0 = vpack.c.bf16 %v2567_v63, %v2566_v62 }
 0x569   : > { %4890 = vmatprep.mubr.msk.bf16.mxu0 %vm5493_vm2, %v5492_v8  ;;  %4887 = vmatpush3.bf16.msra.mxu0 %v5147_v26 }
 0x56a   : > { %4883 = vmatmul.mubr.msk.bf16.vlgmr.msra.gmra.mrb[20].mxu1 %vm2133_vm7, %v2132_v2  ;;  %4888 = vmatprep.subr.bf16.mxu0 %v5492_v8 }
 0x56b   : > { %4898 = vmatprep.mubr.msk.bf16.mxu1 %vm5493_vm2, %v5492_v8 }
 0x56d   : > { %4889 = vmatpush3.bf16.msra.mxu0 %v5148_v32 }
 0x56e   : > { %4902 = vmatprep.subr.bf16.mxu0 %v5492_v8 }
 0x613   : > { %v2175_v3 = vpop.f32.mrb[8].mxu0 }
 0x614   : > { %v4866_v4 = vpop.f32.mrb[9].mxu0 }
 0x615   : > { %v2178_v5 = vpop.f32.mrb[10].mxu0  ;;  %v2221_v6 = vpop.f32.mrb[16].mxu1 }
 0x616   : > { %v4867_v7 = vpop.f32.mrb[11].mxu0  ;;  %v4872_v9 = vpop.f32.mrb[17].mxu1  ;;  %v5151_v5 = vld [vmem:[%s5960_s17] sm:$0xff]  }
 0x617   : > { %v2224_v12 = vpop.f32.mrb[18].mxu1  ;;  %4895 = vmatpush3.bf16.msra.mxu1 %v5151_v5  ;;  %v4702_v7 = vld [vmem:[%s6607_s28] ss:$0 sm:$0xff] }
 0x618   : > { %v4873_v13 = vpop.f32.mrb[19].mxu1  ;;  %4896 = vmatprep.subr.bf16.mxu1 %v5492_v8 }
 0x63b   : > { %v2267_v14 = vpop.f32.mrb[12].mxu0 }
 0x63c   : > { %v2319_v15 = vcombine.low %v2175_v3, %v2267_v14  ;;  %v4878_v16 = vpop.f32.mrb[13].mxu0 }
 0x63d   : > { %v2270_v17 = vpop.f32.mrb[14].mxu0  ;;  %v2313_v18 = vpop.f32.mrb[20].mxu1 }
 0x63e   : > { %v2327_v19 = vcombine.low %v2221_v6, %v2313_v18  ;;  %v4879_v20 = vpop.f32.mrb[15].mxu0  ;;  %v4884_v21 = vpop.f32.mrb[21].mxu1  ;;  %v2326_v23 = vrot.slane %v2319_v15, %v6041_v35  ;;  %v5152_v6 = vld [vmem:[%s5960_s17 + $0x8] sm:$0xff]   ;;  %s6610_s17 = sld [smem:[#allocation61_spill]] }
 0x63f   : > { %v2316_v22 = vpop.f32.mrb[22].mxu1  ;;  %4897 = vmatpush3.bf16.msra.mxu1 %v5152_v6  ;;  %v4696_v21 = vld [vmem:[%s6611_s22] ss:$0 sm:$0xff] }
 0x640   : > { %v2334_v24 = vrot.slane %v2327_v19, %v6041_v35  ;;  %v4885_v25 = vpop.f32.mrb[23].mxu1  ;;  %4910 = vmatprep.subr.bf16.mxu1 %v5492_v8 }
 0x642   : > { %v2335_v27 = vcombine.low %v2326_v23, %v2334_v24  ;;  %v2336_v28 = vcombine.high %v2326_v23, %v2334_v24  ;;  %v4697_v23 = vld [vmem:[%s6612_s1] ss:$0 sm:$0xff] }
 0x644   : > { %v2343_v29 = vrot.slane %v2335_v27, %v6046_v41  ;;  %v2350_v30 = vrot.slane %v2336_v28, %v6046_v41  ;;  %v5153_v27 = vld [vmem:[%s6610_s17] sm:$0xff]  }
 0x646   : > { %v2353_v33 = vcombine.low %v2343_v29, %v2350_v30  ;;  %v4691_v34 = vcombine.high %v2343_v29, %v2350_v30 }
 0x648   : > { %v2360_v36 = vrot.slane %v2353_v33, %v6041_v35  ;;  %v2368_v37 = vrot.slane %v4691_v34, %v6041_v35 }
 0x64a   : > { %v2370_v38 = vcombine.high %v2360_v36, %v2368_v37  ;;  %v2369_v39 = vcombine.low %v2360_v36, %v2368_v37 }
 0x64c   : > { %v2384_v40 = vrot.slane %v2370_v38, %v6046_v41  ;;  %v2377_v42 = vrot.slane %v2369_v39, %v6046_v41 }
 0x64e   : > { %2392 = vrot.lane.b32.xlu1 %v2384_v40, %s5500_s3  ;;  %v2385_v43 = vcombine.high %v2377_v42, %v5492_v8  ;;  %v2386_v44 = vcombine.high %v2384_v40, %v5492_v8 }
 0x650   : > { %2388 = vrot.lane.b32.xlu0 %v2385_v43, %s5501_s14 }
 0x654   : > { %2396 = vrot.lane.b32.xlu0 %v2386_v44, %s5502_s20 }
 0x6c0   : > { %v2393_v47 = vpop.permute.xlu1 %2392 }
 0x6c2   : > { %v2389_v45 = vpop.permute.xlu0 %2388 }
 0x6c3   : > { %v2399_v46 = vsel %vm1895_vm4, %v2377_v42, %v2389_v45 }
 0x6c4   : > { %v2401_v48 = vsel %vm2400_vm8, %v2399_v46, %v2393_v47 }
 0x6c6   : > { %v2397_v49 = vpop.permute.xlu0 %2396 }
 0x6c7   : > { %v2403_v50 = vsel %vm2402_vm9, %v2401_v48, %v2397_v49 }
 0x6c8   : > { %v2404_v51 = vpack.c.bf16 %v2403_v50, %v2403_v50 }
 0x6ca   : > { %4891 = vmatmul.mubr.msk.bf16.vlgmr.msra.gmra.mrb[16].mxu0 %vm1531_vm3, %v2404_v51 }
 0x6cb   : > { %4906 = vmatprep.mubr.msk.bf16.mxu0 %vm5493_vm2, %v5492_v8  ;;  %4903 = vmatpush3.bf16.msra.mxu0 %v5149_v60 }
 0x6cc   : > { %4904 = vmatprep.subr.bf16.mxu0 %v5492_v8 }
 0x6cf   : > { %4905 = vmatpush3.bf16.msra.mxu0 %v5150_v61 }
 0x6d0   : > { %4918 = vmatprep.subr.bf16.mxu0 %v5492_v8 }
 0x6d2   : > { %4907 = vmatmul.mubr.msk.bf16.vlgmr.msra.gmra.mrb[20].mxu0 %vm1531_vm3, %v2568_v0 }
 0x6d3   : > { %4920 = vmatprep.mubr.msk.bf16.mxu0 %vm5493_vm2, %v5492_v8 }
 0x79d   : > { %v2460_v53 = vpop.f32.mrb[16].mxu0 }
 0x79e   : > { %v2461_v54 = vadd.f32 %v4692_v52, %v2460_v53  ;;  %v4892_v55 = vpop.f32.mrb[17].mxu0 }
 0x79f   : > { %v2463_v56 = vpop.f32.mrb[18].mxu0 }
 0x7a0   : > { %v4893_v57 = vpop.f32.mrb[19].mxu0  ;;  %v2466_v58 = vadd.f32 %v2461_v54, %v6009_v10 }
 0x7a2   : > { %v2470_v59 = vsel %vm2469_vm10, %v2466_v58, 0.0 }
 0x7a3   : > { %2471 = vadd.xlane.f32.xlu1 %v2470_v59 }
 0x7a5   : > { %v2629_v9 = vpop.f32.mrb[20].mxu0 }
 0x7a6   : > { %v2630_v12 = vadd.f32 %v4702_v7, %v2629_v9  ;;  %v4908_v13 = vpop.f32.mrb[21].mxu0 }
 0x7a7   : > { %v2632_v14 = vpop.f32.mrb[22].mxu0 }
 0x7a8   : > { %v2633_v15 = vadd.f32 %v4702_v7, %v2632_v14  ;;  %v4909_v16 = vpop.f32.mrb[23].mxu0 }
 0x7b4   : > { %2793 = vrot.lane.b32.xlu1 %v2633_v15, %s5495_s19 }
 0x7b8   : > { %2797 = vrot.lane.b32.xlu1 %v2630_v12, %s5497_s26 }
 0x7bc   : > { %2803 = vrot.lane.b32.xlu1 %v2630_v12, %s5494_s12 }
 0x830   : > { %v2472_v10 = vpop.xlane.xlu1 %2471 }
 0x831   : > { %v2474_v1 = vmul.f32 0.03125, %v2472_v10 }
 0x833   : > { %v2475_v2 = vsub.f32 %v2466_v58, %v2474_v1 }
 0x834   : > { %v2794_v30 = vpop.permute.xlu1 %2793 }
 0x835   : > { %v2476_v3 = vmul.f32 %v2475_v2, %v2475_v2 }
 0x837   : > { %v2477_v4 = vsel %vm2469_vm10, %v2476_v3, 0.0 }
 0x838   : > { %2478 = vadd.xlane.f32.xlu0 %v2477_v4  ;;  %v2798_v33 = vpop.permute.xlu1 %2797 }
 0x839   : > { %v2809_v40 = vcombine.low %v2630_v12, %v2798_v33  ;;  %v2810_v42 = vcombine.high %v2630_v12, %v2798_v33 }
 0x83b   : > { %v2817_v49 = vrot.slane %v2809_v40, %v6041_v35  ;;  %v2824_v50 = vrot.slane %v2810_v42, %v6041_v35 }
 0x83c   : > { %v2804_v36 = vpop.permute.xlu1 %2803 }
 0x84e   : > { %2791 = vrot.lane.b32.xlu0 %v2630_v12, %s5495_s19 }
 0x852   : > { %2799 = vrot.lane.b32.xlu0 %v2633_v15, %s5497_s26 }
 0x856   : > { %2805 = vrot.lane.b32.xlu0 %v2633_v15, %s5494_s12 }
 0x8c5   : > { %v2479_v17 = vpop.xlane.xlu0 %2478 }
 0x8c6   : > { %v2480_v18 = vmul.f32 0.03125, %v2479_v17 }
 0x8c8   : > { %v2481_v19 = vadd.f32 1e-05, %v2480_v18 }
 0x8c9   : > { %v2792_v29 = vpop.permute.xlu0 %2791 }
 0x8ca   : > { %5179 = vrsqrt.f32 %v2481_v19  ;;  %v2825_v43 = vcombine.low %v2792_v29, %v2804_v36  ;;  %v2826_v44 = vcombine.high %v2792_v29, %v2804_v36 }
 0x8cc   : > { %v2833_v51 = vrot.slane %v2825_v43, %v6041_v35  ;;  %v2840_v52 = vrot.slane %v2826_v44, %v6041_v35 }
 0x8cd   : > { %v2800_v32 = vpop.permute.xlu0 %2799 }
 0x8ce   : > { %v2877_v37 = vcombine.low %v2633_v15, %v2800_v32  ;;  %v2878_v38 = vcombine.high %v2633_v15, %v2800_v32  ;;  %v2841_v57 = vcombine.low %v2817_v49, %v2833_v51  ;;  %v2842_v58 = vcombine.high %v2817_v49, %v2833_v51  ;;  %v2636_v51 = vld [vmem:[%s6613_s21] sm:$0xff] }
 0x8cf   : > { %v2857_v59 = vcombine.low %v2824_v50, %v2840_v52  ;;  %v2858_v60 = vcombine.high %v2824_v50, %v2840_v52  ;;  %v2637_v52 = vld [vmem:[%s6613_s21 + $0x8] sm:$0xff] }
 0x8d0   : > { %v2885_v45 = vrot.slane %v2877_v37, %v6041_v35  ;;  %v2892_v46 = vrot.slane %v2878_v38, %v6041_v35  ;;  %v2849_v10 = vrot.slane %v2841_v57, %v6046_v41  ;;  %v2856_v1 = vrot.slane %v2842_v58, %v6046_v41 }
 0x8d1   : > { %v2806_v34 = vpop.permute.xlu0 %2805  ;;  %v2872_v3 = vrot.slane %v2858_v60, %v6046_v41  ;;  %v4698_v60 = vld [vmem:[%s6616_s8] ss:$0 sm:$0xff] }
 0x8d2   : > { %v2893_v39 = vcombine.low %v2794_v30, %v2806_v34  ;;  %v2945_v9 = vcombine.low %v2849_v10, %v2856_v1  ;;  %v4711_v12 = vcombine.high %v2849_v10, %v2856_v1  ;;  %v4706_v1 = vld [vmem:[%s1453_s29] ss:$0 sm:$0xff]  ;;  %s6617_s29 = sld [smem:[#allocation18_spill]] }
 0x8d4   : > { %v5180_v20 = vpop.eup %5179  ;;  %v2901_v47 = vrot.slane %v2893_v39, %v6041_v35  ;;  %v2952_v19 = vrot.slane %v2945_v9, %v6041_v35 }
 0x8d5   : > { %v2483_v22 = vmul.f32 %v5180_v20, %v2475_v2  ;;  %v2865_v2 = vrot.slane %v2857_v59, %v6046_v41  ;;  %v2960_v20 = vrot.slane %v4711_v12, %v6041_v35 }
 0x8d6   : > { %v2909_v53 = vcombine.low %v2885_v45, %v2901_v47  ;;  %v2910_v54 = vcombine.high %v2885_v45, %v2901_v47 }
 0x8d7   : > { %v2490_v24 = vmul.f32 %v4696_v21, %v2483_v22  ;;  %v2961_v13 = vcombine.low %v2865_v2, %v2872_v3  ;;  %v4712_v14 = vcombine.high %v2865_v2, %v2872_v3  ;;  %v2978_v29 = vcombine.high %v2952_v19, %v2960_v20 }
 0x8d8   : > { %v2917_v61 = vrot.slane %v2909_v53, %v6046_v41  ;;  %v2924_v62 = vrot.slane %v2910_v54, %v6046_v41  ;;  %s6618_s27 = scalar_lea.vmem %s6617_s29, %s6639_s23 }
 0x8d9   : > { %v6193_v25 = vadd.f32 %v4697_v23, %v2490_v24  ;;  %v2968_v21 = vrot.slane %v2961_v13, %v6041_v35  ;;  %v2976_v22 = vrot.slane %v4712_v14, %v6041_v35  ;;  %v5154_v23 = vld [vmem:[%s6610_s17 + $0x8] sm:$0xff]   ;;  %v2977_v24 = vcombine.low %v2952_v19, %v2960_v20 }
 0x8da   : > { %v3013_v4 = vcombine.low %v2917_v61, %v2924_v62  ;;  %v4713_v5 = vcombine.high %v2917_v61, %v2924_v62  ;;  %v2992_v39 = vrot.slane %v2978_v29, %v6046_v41 }
 0x8db   : > { %v2498_v26 = vadd.f32 %v6193_v25, %v6012_v11  ;;  %v2894_v11 = vcombine.high %v2794_v30, %v2806_v34  ;;  %v2994_v30 = vcombine.high %v2968_v21, %v2976_v22  ;;  %v2985_v34 = vrot.slane %v2977_v24, %v6046_v41 }
 0x8dc   : > { %v3020_v15 = vrot.slane %v3013_v4, %v6041_v35  ;;  %v3028_v16 = vrot.slane %v4713_v5, %v6041_v35 }
 0x8dd   : > { %v2499_v28 = vpack.c.bf16 %v2498_v26, %v2498_v26  ;;  %v2908_v48 = vrot.slane %v2894_v11, %v6041_v35  ;;  %v2993_v26 = vcombine.low %v2968_v21, %v2976_v22  ;;  %v3008_v11 = vrot.slane %v2994_v30, %v6046_v41 }
 0x8de   : > { %v3046_v32 = vcombine.high %v3020_v15, %v3028_v16 }
 0x8df   : > { %4899 = vmatmul.mubr.msk.bf16.vlgmr.msra.gmra.mrb[24].mxu1 %vm1531_vm3, %v2499_v28  ;;  %v2925_v55 = vcombine.low %v2892_v46, %v2908_v48  ;;  %v2926_v56 = vcombine.high %v2892_v46, %v2908_v48  ;;  %v3001_v36 = vrot.slane %v2993_v26, %v6046_v41  ;;  %v3011_v47 = vcombine.low %v2992_v39, %v3008_v11 }
 0x8e0   : > { %4911 = vmatpush3.bf16.msra.mxu1 %v5153_v27  ;;  %4914 = vmatprep.mubr.msk.bf16.mxu1 %vm5493_vm2, %v5492_v8  ;;  %v3045_v27 = vcombine.low %v3020_v15, %v3028_v16  ;;  %v3060_v40 = vrot.slane %v3046_v32, %v6046_v41  ;;  %v3012_v49 = vcombine.high %v2992_v39, %v3008_v11 }
 0x8e1   : > { %4912 = vmatprep.subr.bf16.mxu1 %v5492_v8  ;;  %v2933_v63 = vrot.slane %v2925_v55, %v6046_v41  ;;  %v2940_v0 = vrot.slane %v2926_v56, %v6046_v41  ;;  %v3009_v43 = vcombine.low %v2985_v34, %v3001_v36  ;;  %v3010_v45 = vcombine.high %v2985_v34, %v3001_v36 }
 0x8e2   : > { %v3053_v37 = vrot.slane %v3045_v27, %v6046_v41  ;;  %v2638_v55 = vpack.c.bf16 %v2637_v52, %v2636_v51 }
 0x8e3   : > { %v3029_v6 = vcombine.low %v2933_v63, %v2940_v0  ;;  %v4714_v7 = vcombine.high %v2933_v63, %v2940_v0 }
 0x8e4   : > { %4913 = vmatpush3.bf16.msra.mxu1 %v5154_v23 }
 0x8e5   : > { %v3036_v17 = vrot.slane %v3029_v6, %v6041_v35  ;;  %v3044_v18 = vrot.slane %v4714_v7, %v6041_v35  ;;  %4924 = vmatprep.subr.bf16.mxu1 %v5492_v8 }
 0x8e7   : > { %v3061_v28 = vcombine.low %v3036_v17, %v3044_v18  ;;  %v3062_v33 = vcombine.high %v3036_v17, %v3044_v18  ;;  %4915 = vmatmul.mubr.msk.bf16.vlgmr.msra.gmra.mrb[28].mxu1 %vm1531_vm3, %v2638_v55 }
 0x8e8   : > { %4926 = vmatprep.mubr.msk.bf16.mxu1 %vm5493_vm2, %v5492_v8 }
 0x8e9   : > { %v3069_v38 = vrot.slane %v3061_v28, %v6046_v41  ;;  %v3076_v42 = vrot.slane %v3062_v33, %v6046_v41 }
 0x8eb   : > { %v3077_v44 = vcombine.low %v3053_v37, %v3069_v38  ;;  %v3078_v46 = vcombine.high %v3053_v37, %v3069_v38  ;;  %v3079_v48 = vcombine.low %v3060_v40, %v3076_v42  ;;  %v3080_v50 = vcombine.high %v3060_v40, %v3076_v42  ;;  %v1504_v40 = vld [vmem:[%s6618_s27] sm:$0x1] }
 0x8ec   : > { %v1505_v42 = vmul.f32 -1e+09, %v1504_v40 }
 0x8ed   : > { %v3377_v53 = vpack.c.bf16 %v3077_v44, %v3009_v43  ;;  %v3378_v54 = vpack.c.bf16 %v3078_v46, %v3010_v45  ;;  %v3379_v56 = vpack.c.bf16 %v3079_v48, %v3011_v47  ;;  %v3380_v57 = vpack.c.bf16 %v3080_v50, %v3012_v49 }
 0x8ee   : > { %v3576_v43 = vsub.s32 0, %v6038_v31 }
 0x8ef   : > { %v3389_v58 = vsel %vm1895_vm4, %v3377_v53, 0  ;;  %v3435_v59 = vsel %vm1895_vm4, %v3378_v54, 0  ;;  %v3481_v33 = vsel %vm1895_vm4, %v3379_v56, 0  ;;  %v3527_v37 = vsel %vm1895_vm4, %v3380_v57, 0 }
 0x8f0   : > { %4919 = vmatpush3.bf16.xpose.msra.mxu0 %v3389_v58  ;;  %4925 = vmatpush3.bf16.xpose.msra.mxu1 %v3435_v59  ;;  %v3577_v44 = vrot.slane %v1505_v42, %v3576_v43 }
 0x8f1   : > { %4930 = vmatprep.subr.bf16.mxu0 %v5492_v8  ;;  %4936 = vmatprep.subr.bf16.mxu1 %v5492_v8 }
 0x9b2   : > { %v2560_v61 = vpop.f32.mrb[24].mxu1 }
 0x9b3   : > { %v2561_v62 = vadd.f32 %v4698_v60, %v2560_v61  ;;  %v4900_v63 = vpop.f32.mrb[25].mxu1 }
 0x9b4   : > { %v2563_v0 = vpop.f32.mrb[26].mxu1 }
 0x9b5   : > { %2715 = vrot.lane.b32.xlu0 %v2561_v62, %s5497_s26  ;;  %2712 = vrot.lane.b32.xlu1 %v2561_v62, %s5495_s19  ;;  %v4901_v10 = vpop.f32.mrb[27].mxu1 }
 0x9b9   : > { %2718 = vrot.lane.b32.xlu1 %v2561_v62, %s5494_s12 }
 0x9ba   : > { %v2699_v2 = vpop.f32.mrb[28].mxu1 }
 0x9bb   : > { %v6254_v3 = vadd.f32 %v4706_v1, %v2699_v2  ;;  %v4916_v4 = vpop.f32.mrb[29].mxu1 }
 0x9bc   : > { %v2702_v5 = vpop.f32.mrb[30].mxu1 }
 0x9bd   : > { %v6256_v6 = vadd.f32 %v4706_v1, %v2702_v5  ;;  %v4917_v7 = vpop.f32.mrb[31].mxu1  ;;  %3083 = vrot.lane.b32.xlu1 %v6254_v3, %s5495_s19 }
 0xa27   : > { %v2716_v9 = vpop.permute.xlu0 %2715  ;;  %v2713_v12 = vpop.permute.xlu1 %2712 }
 0xa28   : > { %v2721_v13 = vcombine.low %v2561_v62, %v2716_v9 }
 0xa2a   : > { %v2728_v16 = vrot.slane %v2721_v13, %v6041_v35 }
 0xa2b   : > { %v2719_v14 = vpop.permute.xlu1 %2718 }
 0xa2c   : > { %v2729_v15 = vcombine.low %v2713_v12, %v2719_v14 }
 0xa2e   : > { %v2736_v17 = vrot.slane %v2729_v15, %v6041_v35 }
 0xa2f   : > { %v3084_v12 = vpop.permute.xlu1 %3083 }
 0xa30   : > { %v2737_v18 = vcombine.low %v2728_v16, %v2736_v17  ;;  %v2738_v19 = vcombine.high %v2728_v16, %v2736_v17 }
 0xa32   : > { %v2745_v20 = vrot.slane %v2737_v18, %v6046_v41  ;;  %v2752_v21 = vrot.slane %v2738_v19, %v6046_v41 }
 0xa34   : > { %v2755_v22 = vcombine.low %v2745_v20, %v2752_v21  ;;  %v4710_v23 = vcombine.high %v2745_v20, %v2752_v21 }
 0xa36   : > { %v2762_v24 = vrot.slane %v2755_v22, %v6041_v35  ;;  %v2770_v26 = vrot.slane %v4710_v23, %v6041_v35 }
 0xa38   : > { %v2771_v27 = vcombine.low %v2762_v24, %v2770_v26  ;;  %v2772_v28 = vcombine.high %v2762_v24, %v2770_v26 }
 0xa3a   : > { %v2779_v29 = vrot.slane %v2771_v27, %v6046_v41  ;;  %v2786_v36 = vrot.slane %v2772_v28, %v6046_v41 }
 0xa3c   : > { %v3373_v30 = vpack.c.bf16 %v2779_v29, %v2779_v29  ;;  %v2787_v32 = vcombine.high %v2779_v29, %v5492_v8  ;;  %v2788_v38 = vcombine.high %v2786_v36, %v5492_v8  ;;  %v3375_v39 = vpack.c.bf16 %v2786_v36, %v2786_v36 }
 0xa3e   : > { %4921 = vmatmul.mubr.msk.bf16.vlgmr.msra.gmra.mrb[24].mxu0 %vm1895_vm4, %v3373_v30  ;;  %v3374_v34 = vpack.c.bf16 %v2787_v32, %v2787_v32  ;;  %v3376_v11 = vpack.c.bf16 %v2788_v38, %v2788_v38 }
 0xa3f   : > { %4931 = vmatpush3.bf16.xpose.msra.mxu0 %v3481_v33  ;;  %4932 = vmatprep.mubr.msk.bf16.mxu0 %vm5493_vm2, %v5492_v8 }
 0xa40   : > { %4927 = vmatmul.mubr.msk.bf16.vlgmr.msra.gmra.mrb[32].mxu1 %vm1895_vm4, %v3374_v34  ;;  %4942 = vmatprep.subr.bf16.mxu0 %v5492_v8 }
 0xa41   : > { %4937 = vmatpush3.bf16.xpose.msra.mxu1 %v3527_v37  ;;  %4938 = vmatprep.mubr.msk.bf16.mxu1 %vm5493_vm2, %v5492_v8 }
 0xa42   : > { %4948 = vmatprep.subr.bf16.mxu1 %v5492_v8 }
 0xa46   : > { %4933 = vmatmul.mubr.msk.bf16.vlgmr.msra.gmra.mrb[28].mxu0 %vm1895_vm4, %v3375_v39 }
 0xa47   : > { %4944 = vmatprep.mubr.msk.bf16.mxu0 %vm5493_vm2, %v5492_v8 }
 0xa48   : > { %4939 = vmatmul.mubr.msk.bf16.vlgmr.msra.gmra.mrb[36].mxu1 %vm1895_vm4, %v3376_v11 }
 0xa49   : > { %4950 = vmatprep.mubr.msk.bf16.mxu1 %vm5493_vm2, %v5492_v8 }
 0xb11   : > { %v3425_v45 = vpop.f32.mrb[24].mxu0 }
 0xb12   : > { %v3569_v46 = vmul.f32 0.35355338, %v3425_v45  ;;  %v4922_v47 = vpop.f32.mrb[25].mxu0 }
 0xb13   : > { %v3428_v48 = vpop.f32.mrb[26].mxu0  ;;  %v3471_v49 = vpop.f32.mrb[32].mxu1 }
 0xb14   : > { %v3570_v50 = vmul.f32 0.35355338, %v3471_v49  ;;  %v4923_v51 = vpop.f32.mrb[27].mxu0  ;;  %v4928_v52 = vpop.f32.mrb[33].mxu1  ;;  %v3579_v53 = vadd.f32 %v3577_v44, %v3569_v46 }
 0xb15   : > { %v3474_v54 = vpop.f32.mrb[34].mxu1 }
 0xb16   : > { %v4929_v55 = vpop.f32.mrb[35].mxu1  ;;  %v3584_v56 = vsel %vm3583_vm11, %v3579_v53, -inf  ;;  %v3580_v57 = vadd.f32 %v3577_v44, %v3570_v50 }
 0xb17   : > { %3585 = vmax.xlane.f32.xlu0 %v3584_v56 }
 0xb18   : > { %v3587_v58 = vsel %vm3583_vm11, %v3580_v57, -inf }
 0xb19   : > { %v3517_v31 = vpop.f32.mrb[28].mxu0  ;;  %3588 = vmax.xlane.f32.xlu1 %v3587_v58 }
 0xb1a   : > { %v3571_v59 = vmul.f32 0.35355338, %v3517_v31  ;;  %v4934_v60 = vpop.f32.mrb[29].mxu0 }
 0xb1b   : > { %v3520_v61 = vpop.f32.mrb[30].mxu0  ;;  %v3563_v62 = vpop.f32.mrb[36].mxu1 }
 0xb1c   : > { %v3572_v63 = vmul.f32 0.35355338, %v3563_v62  ;;  %v4935_v0 = vpop.f32.mrb[31].mxu0  ;;  %v4940_v10 = vpop.f32.mrb[37].mxu1  ;;  %v3581_v1 = vadd.f32 %v3577_v44, %v3571_v59 }
 0xb1d   : > { %v3566_v2 = vpop.f32.mrb[38].mxu1 }
 0xb1e   : > { %v4941_v4 = vpop.f32.mrb[39].mxu1  ;;  %v3590_v5 = vsel %vm3583_vm11, %v3581_v1, -inf  ;;  %v3582_v7 = vadd.f32 %v3577_v44, %v3572_v63 }
 0xb1f   : > { %3591 = vmax.xlane.f32.xlu0 %v3590_v5 }
 0xb20   : > { %v3593_v9 = vsel %vm3583_vm11, %v3582_v7, -inf }
 0xb23   : > { %3594 = vmax.xlane.f32.xlu0 %v3593_v9 }
 0xb2a   : > { %3089 = vrot.lane.b32.xlu1 %v6254_v3, %s5497_s26 }
 0xb2e   : > { %3091 = vrot.lane.b32.xlu1 %v6256_v6, %s5497_s26 }
 0xb39   : > { %3085 = vrot.lane.b32.xlu0 %v6256_v6, %s5495_s19 }
 0xba4   : > { %v3586_v13 = vpop.xlane.xlu0 %3585 }
 0xba5   : > { %v3596_v14 = vsub.f32 %v3579_v53, %v3586_v13 }
 0xba6   : > { %v3589_v15 = vpop.xlane.xlu1 %3588 }
 0xba7   : > { %v3600_v16 = vmul.f32 1.442695, %v3596_v14  ;;  %v3597_v17 = vsub.f32 %v3580_v57, %v3589_v15 }
 0xba9   : > { %5181 = vpow2.f32 %v3600_v16  ;;  %v3602_v18 = vmul.f32 1.442695, %v3597_v17 }
 0xbaa   : > { %v3090_v36 = vpop.permute.xlu1 %3089 }
 0xbab   : > { %5183 = vpow2.f32 %v3602_v18  ;;  %v3101_v46 = vcombine.low %v6254_v3, %v3090_v36  ;;  %v3102_v47 = vcombine.high %v6254_v3, %v3090_v36 }
 0xbac   : > { %v3592_v23 = vpop.xlane.xlu0 %3591 }
 0xbad   : > { %v3598_v27 = vsub.f32 %v3581_v1, %v3592_v23  ;;  %v3109_v58 = vrot.slane %v3101_v46, %v6041_v35  ;;  %v3116_v31 = vrot.slane %v3102_v47, %v6041_v35 }
 0xbae   : > { %v3092_v37 = vpop.permute.xlu1 %3091 }
 0xbaf   : > { %v3604_v29 = vmul.f32 1.442695, %v3598_v27  ;;  %v3169_v11 = vcombine.low %v6256_v6, %v3092_v37  ;;  %v3170_v40 = vcombine.high %v6256_v6, %v3092_v37 }
 0xbb0   : > { %v3595_v24 = vpop.xlane.xlu0 %3594 }
 0xbb1   : > { %v3599_v26 = vsub.f32 %v3582_v7, %v3595_v24  ;;  %v3177_v48 = vrot.slane %v3169_v11, %v6041_v35  ;;  %v3184_v49 = vrot.slane %v3170_v40, %v6041_v35 }
 0xbb3   : > { %v6300_v19 = vpop.eup %5181  ;;  %v3606_v28 = vmul.f32 1.442695, %v3599_v26 }
 0xbb4   : > { %v3608_v20 = vsel %vm3583_vm11, %v6300_v19, 0.0  ;;  %v3086_v38 = vpop.permute.xlu0 %3085 }
 0xbb5   : > { %v6304_v21 = vpop.eup %5183  ;;  %3609 = vadd.xlane.f32.xlu1 %v3608_v20  ;;  %5185 = vpow2.f32 %v3606_v28 }
 0xbb6   : > { %v3611_v22 = vsel %vm3583_vm11, %v6304_v21, 0.0  ;;  %5187 = vpow2.f32 %v3604_v29 }
 0xbb7   : > { %3612 = vadd.xlane.f32.xlu0 %v3611_v22 }
 0xbbf   : > { %v6312_v30 = vpop.eup %5185 }
 0xbc0   : > { %v6314_v32 = vpop.eup %5187  ;;  %v3617_v33 = vsel %vm3583_vm11, %v6312_v30, 0.0 }
 0xbc1   : > { %v3614_v34 = vsel %vm3583_vm11, %v6314_v32, 0.0 }
 0xbc6   : > { %3097 = vrot.lane.b32.xlu1 %v6256_v6, %s5494_s12 }
 0xbcd   : > { %3095 = vrot.lane.b32.xlu0 %v6254_v3, %s5494_s12  ;;  %s6622_s12 = sld [smem:[#allocation55_spill]] }
 0xbea   : > { %3618 = vadd.xlane.f32.xlu1 %v3617_v33 }
 0xbec   : > { %3615 = vadd.xlane.f32.xlu0 %v3614_v34 }
 0xc42   : > { %v3610_v39 = vpop.xlane.xlu1 %3609 }
 0xc43   : > { %5189 = vrcp.f32 %v3610_v39 }
 0xc44   : > { %v3613_v42 = vpop.xlane.xlu0 %3612 }
 0xc45   : > { %5191 = vrcp.f32 %v3613_v42 }
 0xc46   : > { %v3098_v43 = vpop.permute.xlu1 %3097 }
 0xc47   : > { %v3185_v44 = vcombine.low %v3086_v38, %v3098_v43  ;;  %v3186_v45 = vcombine.high %v3086_v38, %v3098_v43 }
 0xc48   : > { %v3096_v50 = vpop.permute.xlu0 %3095 }
 0xc49   : > { %v3193_v51 = vrot.slane %v3185_v44, %v6041_v35  ;;  %v3200_v52 = vrot.slane %v3186_v45, %v6041_v35  ;;  %v3117_v53 = vcombine.low %v3084_v12, %v3096_v50  ;;  %v3118_v54 = vcombine.high %v3084_v12, %v3096_v50 }
 0xc4b   : > { %v3201_v6 = vcombine.low %v3177_v48, %v3193_v51  ;;  %v3202_v55 = vcombine.high %v3177_v48, %v3193_v51  ;;  %v3217_v56 = vcombine.low %v3184_v49, %v3200_v52  ;;  %v3218_v57 = vcombine.high %v3184_v49, %v3200_v52 }
 0xc4c   : > { %v3125_v3 = vrot.slane %v3117_v53, %v6041_v35  ;;  %v3132_v59 = vrot.slane %v3118_v54, %v6041_v35 }
 0xc4d   : > { %v3209_v60 = vrot.slane %v3201_v6, %v6046_v41  ;;  %v3216_v61 = vrot.slane %v3202_v55, %v6046_v41  ;;  %v3225_v62 = vrot.slane %v3217_v56, %v6046_v41  ;;  %v3232_v63 = vrot.slane %v3218_v57, %v6046_v41  ;;  %v5190_v42 = vpop.eup %5189 }
 0xc4e   : > { %v3133_v0 = vcombine.low %v3109_v58, %v3125_v3  ;;  %v3134_v10 = vcombine.high %v3109_v58, %v3125_v3  ;;  %v3149_v1 = vcombine.low %v3116_v31, %v3132_v59  ;;  %v3150_v13 = vcombine.high %v3116_v31, %v3132_v59 }
 0xc4f   : > { %v3305_v2 = vcombine.low %v3209_v60, %v3216_v61  ;;  %v4717_v4 = vcombine.high %v3209_v60, %v3216_v61  ;;  %v3321_v5 = vcombine.low %v3225_v62, %v3232_v63  ;;  %v4718_v7 = vcombine.high %v3225_v62, %v3232_v63  ;;  %v5192_v47 = vpop.eup %5191 }
 0xc50   : > { %v3141_v9 = vrot.slane %v3133_v0, %v6046_v41  ;;  %v3148_v12 = vrot.slane %v3134_v10, %v6046_v41  ;;  %v3157_v18 = vrot.slane %v3149_v1, %v6046_v41  ;;  %v3164_v20 = vrot.slane %v3150_v13, %v6046_v41 }
 0xc51   : > { %v3312_v14 = vrot.slane %v3305_v2, %v6041_v35  ;;  %v3320_v15 = vrot.slane %v4717_v4, %v6041_v35  ;;  %v3328_v16 = vrot.slane %v3321_v5, %v6041_v35  ;;  %v3336_v17 = vrot.slane %v4718_v7, %v6041_v35 }
 0xc52   : > { %v3237_v22 = vcombine.low %v3141_v9, %v3148_v12  ;;  %v4715_v23 = vcombine.high %v3141_v9, %v3148_v12  ;;  %v3253_v29 = vcombine.low %v3157_v18, %v3164_v20  ;;  %v4716_v33 = vcombine.high %v3157_v18, %v3164_v20 }
 0xc53   : > { %v3337_v24 = vcombine.low %v3312_v14, %v3320_v15  ;;  %v3353_v26 = vcombine.low %v3328_v16, %v3336_v17  ;;  %v3338_v40 = vcombine.high %v3312_v14, %v3320_v15  ;;  %v3354_v46 = vcombine.high %v3328_v16, %v3336_v17 }
 0xc54   : > { %v3244_v27 = vrot.slane %v3237_v22, %v6041_v35  ;;  %v3252_v28 = vrot.slane %v4715_v23, %v6041_v35  ;;  %v3260_v34 = vrot.slane %v3253_v29, %v6041_v35  ;;  %v3268_v36 = vrot.slane %v4716_v33, %v6041_v35 }
 0xc55   : > { %v3345_v39 = vrot.slane %v3337_v24, %v6046_v41  ;;  %v3361_v11 = vrot.slane %v3353_v26, %v6046_v41  ;;  %v3352_v6 = vrot.slane %v3338_v40, %v6046_v41  ;;  %v3368_v55 = vrot.slane %v3354_v46, %v6046_v41  ;;  %v5156_v46 = vld [vmem:[%s5975_s0 + $0x8] sm:$0xff]  }
 0xc56   : > { %v3269_v37 = vcombine.low %v3244_v27, %v3252_v28  ;;  %v3270_v38 = vcombine.high %v3244_v27, %v3252_v28  ;;  %v3285_v44 = vcombine.low %v3260_v34, %v3268_v36  ;;  %v3286_v45 = vcombine.high %v3260_v34, %v3268_v36 }
 0xc57   : > { %v3369_v51 = vcombine.low %v3345_v39, %v3361_v11  ;;  %v3370_v52 = vcombine.high %v3345_v39, %v3361_v11  ;;  %v3624_v56 = vmul.f32 %v5190_v42, %v6300_v19  ;;  %v3625_v57 = vmul.f32 %v5192_v47, %v6304_v21  ;;  %v5155_v39 = vld [vmem:[%s5975_s0] sm:$0xff]  }
 0xc58   : > { %v3277_v43 = vrot.slane %v3269_v37, %v6046_v41  ;;  %v3293_v48 = vrot.slane %v3285_v44, %v6046_v41  ;;  %v3284_v49 = vrot.slane %v3270_v38, %v6046_v41  ;;  %v3300_v50 = vrot.slane %v3286_v45, %v6046_v41 }
 0xc59   : > { %v3371_v60 = vcombine.low %v3352_v6, %v3368_v55  ;;  %v3372_v61 = vcombine.high %v3352_v6, %v3368_v55  ;;  %v3628_v62 = vpack.c.bf16 %v3624_v56, %v3624_v56  ;;  %v3629_v63 = vpack.c.bf16 %v3625_v57, %v3625_v57  ;;  %v4728_v57 = vld [vmem:[%s1461_s30] ss:$0 sm:$0xff] }
 0xc5a   : > { %v3301_v53 = vcombine.low %v3277_v43, %v3293_v48  ;;  %v3302_v54 = vcombine.high %v3277_v43, %v3293_v48  ;;  %v3303_v3 = vcombine.low %v3284_v49, %v3300_v50  ;;  %v3304_v59 = vcombine.high %v3284_v49, %v3300_v50 }
 0xc5c   : > { %v3381_v58 = vpack.c.bf16 %v3369_v51, %v3301_v53  ;;  %v3382_v31 = vpack.c.bf16 %v3370_v52, %v3302_v54  ;;  %v3383_v0 = vpack.c.bf16 %v3371_v60, %v3303_v3  ;;  %v3384_v10 = vpack.c.bf16 %v3372_v61, %v3304_v59 }
 0xc5e   : > { %4943 = vmatpush3.bf16.msra.mxu0 %v3381_v58  ;;  %4949 = vmatpush3.bf16.msra.mxu1 %v3382_v31 }
 0xc5f   : > { %4954 = vmatprep.subr.bf16.mxu0 %v5492_v8  ;;  %4960 = vmatprep.subr.bf16.mxu1 %v5492_v8 }
 0xc61   : > { %4945 = vmatmul.mubr.msk.bf16.vlgmr.msra.gmra.mrb[32].mxu0 %vm2400_vm8, %v3628_v62  ;;  %4951 = vmatmul.mubr.msk.bf16.vlgmr.msra.gmra.mrb[40].mxu1 %vm2400_vm8, %v3629_v63 }
 0xc62   : > { %4955 = vmatpush3.bf16.msra.mxu0 %v3383_v0  ;;  %4961 = vmatpush3.bf16.msra.mxu1 %v3384_v10 }
 0xc63   : > { %4962 = vmatprep.mubr.msk.bf16.mxu1 %vm5493_vm2, %v5492_v8  ;;  %4956 = vmatprep.mubr.msk.bf16.mxu0 %vm5493_vm2, %v5492_v8 }
 0xc64   : > { %4966 = vmatprep.subr.bf16.mxu0 %v5492_v8  ;;  %4974 = vmatprep.subr.bf16.mxu1 %v5492_v8 }
 0xc77   : > { %v3619_v19 = vpop.xlane.xlu1 %3618 }
 0xc78   : > { %5193 = vrcp.f32 %v3619_v19 }
 0xc79   : > { %v3616_v21 = vpop.xlane.xlu0 %3615 }
 0xc7a   : > { %5195 = vrcp.f32 %v3616_v21 }
 0xc82   : > { %v5194_v1 = vpop.eup %5193 }
 0xc83   : > { %v3627_v2 = vmul.f32 %v5194_v1, %v6312_v30  ;;  %v5157_v1 = vld [vmem:[%s5984_s13] sm:$0xff]  }
 0xc84   : > { %v5196_v4 = vpop.eup %5195 }
 0xc85   : > { %v3626_v5 = vmul.f32 %v5196_v4, %v6314_v32  ;;  %v3631_v7 = vpack.c.bf16 %v3627_v2, %v3627_v2  ;;  %v5158_v2 = vld [vmem:[%s5984_s13 + $0x8] sm:$0xff]   ;;  %s6623_s13 = scalar_lea.vmem [#allocation8], %s6622_s12 }
 0xc86   : > { %v5160_v4 = vld [vmem:[%s5989_s6 + $0x8] sm:$0xff]  }
 0xc87   : > { %4963 = vmatmul.mubr.msk.bf16.vlgmr.msra.gmra.mrb[44].mxu1 %vm2400_vm8, %v3631_v7  ;;  %v3630_v9 = vpack.c.bf16 %v3626_v5, %v3626_v5 }
 0xc88   : > { %4978 = vmatprep.mubr.msk.bf16.mxu1 %vm5493_vm2, %v5492_v8  ;;  %4975 = vmatpush3.bf16.msra.mxu1 %v5157_v1 }
 0xc89   : > { %4957 = vmatmul.mubr.msk.bf16.vlgmr.msra.gmra.mrb[36].mxu0 %vm2400_vm8, %v3630_v9  ;;  %4976 = vmatprep.subr.bf16.mxu1 %v5492_v8 }
 0xc8a   : > { %4970 = vmatprep.mubr.msk.bf16.mxu0 %vm5493_vm2, %v5492_v8  ;;  %4967 = vmatpush3.bf16.msra.mxu0 %v5155_v39 }
 0xc8b   : > { %4968 = vmatprep.subr.bf16.mxu0 %v5492_v8 }
 0xc8c   : > { %4977 = vmatpush3.bf16.msra.mxu1 %v5158_v2 }
 0xc8e   : > { %4969 = vmatpush3.bf16.msra.mxu0 %v5156_v46 }
 0xc8f   : > { %4982 = vmatprep.subr.bf16.mxu0 %v5492_v8 }
 0xd34   : > { %v3669_v12 = vpop.f32.mrb[32].mxu0  ;;  %v3712_v13 = vpop.f32.mrb[40].mxu1 }
 0xd35   : > { %v4946_v14 = vpop.f32.mrb[33].mxu0  ;;  %v4952_v15 = vpop.f32.mrb[41].mxu1 }
 0xd36   : > { %v3672_v30 = vpop.f32.mrb[34].mxu0  ;;  %v3715_v16 = vpop.f32.mrb[42].mxu1  ;;  %v4733_v15 = vld [vmem:[%s1467_s15] ss:$0 sm:$0xff] }
 0xd37   : > { %v4947_v17 = vpop.f32.mrb[35].mxu0  ;;  %v4953_v32 = vpop.f32.mrb[43].mxu1 }
 0xd38   : > { %v5161_v32 = vld [vmem:[%s5989_s6 + $0x10] sm:$0xff]  }
 0xd5a   : > { %v3798_v18 = vpop.f32.mrb[44].mxu1 }
 0xd5b   : > { %v3812_v20 = vcombine.low %v3712_v13, %v3798_v18  ;;  %v4964_v22 = vpop.f32.mrb[45].mxu1  ;;  %v4732_v13 = vld [vmem:[%s1464_s7] ss:$0 sm:$0xff]  ;;  %v5162_v18 = vld [vmem:[%s5989_s6 + $0x18] sm:$0xff]  }
 0xd5c   : > { %v3755_v23 = vpop.f32.mrb[36].mxu0  ;;  %v3801_v24 = vpop.f32.mrb[46].mxu1 }
 0xd5d   : > { %v3804_v26 = vcombine.low %v3669_v12, %v3755_v23  ;;  %v4958_v27 = vpop.f32.mrb[37].mxu0  ;;  %v4965_v28 = vpop.f32.mrb[47].mxu1  ;;  %v3819_v33 = vrot.slane %v3812_v20, %v6041_v35  ;;  %v4734_v20 = vld [vmem:[%s6623_s13] ss:$0 sm:$0xff] }
 0xd5e   : > { %v3758_v29 = vpop.f32.mrb[38].mxu0 }
 0xd5f   : > { %v3811_v34 = vrot.slane %v3804_v26, %v6041_v35  ;;  %v4959_v36 = vpop.f32.mrb[39].mxu0 }
 0xd61   : > { %v3820_v37 = vcombine.low %v3811_v34, %v3819_v33  ;;  %v3821_v38 = vcombine.high %v3811_v34, %v3819_v33  ;;  %v4738_v33 = vld [vmem:[%s1181_s11] ss:$0 sm:$0xff] }
 0xd63   : > { %v3828_v11 = vrot.slane %v3820_v37, %v6046_v41  ;;  %v3835_v40 = vrot.slane %v3821_v38, %v6046_v41 }
 0xd65   : > { %v3838_v42 = vcombine.low %v3828_v11, %v3835_v40  ;;  %v4727_v43 = vcombine.high %v3828_v11, %v3835_v40 }
 0xd67   : > { %v3845_v44 = vrot.slane %v3838_v42, %v6041_v35  ;;  %v3853_v45 = vrot.slane %v4727_v43, %v6041_v35 }
 0xd69   : > { %v3855_v47 = vcombine.high %v3845_v44, %v3853_v45  ;;  %v3854_v48 = vcombine.low %v3845_v44, %v3853_v45 }
 0xd6b   : > { %v3869_v49 = vrot.slane %v3855_v47, %v6046_v41  ;;  %v3862_v50 = vrot.slane %v3854_v48, %v6046_v41 }
 0xd6d   : > { %3877 = vrot.lane.b32.xlu1 %v3869_v49, %s5500_s3  ;;  %v3870_v51 = vcombine.high %v3862_v50, %v5492_v8  ;;  %v3871_v35 = vcombine.high %v3869_v49, %v5492_v8 }
 0xd6f   : > { %3873 = vrot.lane.b32.xlu0 %v3870_v51, %s5501_s14 }
 0xd73   : > { %3881 = vrot.lane.b32.xlu0 %v3871_v35, %s5502_s20  ;;  %v4745_v35 = vld [vmem:[%s1197_s4] ss:$0 sm:$0xff] }
 0xddf   : > { %v3878_v54 = vpop.permute.xlu1 %3877 }
 0xde1   : > { %v3874_v52 = vpop.permute.xlu0 %3873 }
 0xde2   : > { %v3884_v53 = vsel %vm1895_vm4, %v3862_v50, %v3874_v52  ;;  %v4744_v50 = vld [vmem:[%s1189_s9] ss:$0 sm:$0xff] }
 0xde3   : > { %v3885_v6 = vsel %vm2400_vm8, %v3884_v53, %v3878_v54 }
 0xde5   : > { %v3882_v55 = vpop.permute.xlu0 %3881 }
 0xde6   : > { %v3886_v56 = vsel %vm2402_vm9, %v3885_v6, %v3882_v55 }
 0xde7   : > { %v3887_v41 = vpack.c.bf16 %v3886_v56, %v3886_v56 }
 0xde9   : > { %4971 = vmatmul.mubr.msk.bf16.vlgmr.msra.gmra.mrb[40].mxu0 %vm1531_vm3, %v3887_v41 }
 0xdea   : > { %4990 = vmatprep.mubr.msk.bf16.mxu0 %vm5493_vm2, %v5492_v8 }
 0xebc   : > { %v3943_v58 = vpop.f32.mrb[40].mxu0 }
 0xebd   : > { %v3944_v31 = vadd.f32 %v4728_v57, %v3943_v58  ;;  %v4972_v3 = vpop.f32.mrb[41].mxu0 }
 0xebe   : > { %v3946_v59 = vpop.f32.mrb[42].mxu0 }
 0xebf   : > { %v4973_v60 = vpop.f32.mrb[43].mxu0  ;;  %v3949_v61 = vadd.f32 %v3944_v31, %v6193_v25  ;;  %v5159_v25 = vld [vmem:[%s5989_s6] sm:$0xff]  }
 0xec0   : > { %4983 = vmatpush3.bf16.msra.mxu0 %v5159_v25  ;;  %v4746_v60 = vld [vmem:[#allocation4] ss:$0 sm:$0xff] }
 0xec1   : > { %v3952_v62 = vsel %vm2469_vm10, %v3949_v61, 0.0  ;;  %4984 = vmatprep.subr.bf16.mxu0 %v5492_v8 }
 0xec2   : > { %3953 = vadd.xlane.f32.xlu1 %v3952_v62  ;;  %v4747_v62 = vld [vmem:[#allocation6] ss:$0 sm:$0xff] }
 0xec4   : > { %4985 = vmatpush3.bf16.msra.mxu0 %v5160_v4 }
 0xec5   : > { %4986 = vmatprep.subr.bf16.mxu0 %v5492_v8 }
 0xec8   : > { %4987 = vmatpush3.bf16.msra.mxu0 %v5161_v32 }
 0xec9   : > { %4988 = vmatprep.subr.bf16.mxu0 %v5492_v8 }
 0xecc   : > { %4989 = vmatpush3.bf16.msra.mxu0 %v5162_v18 }
 0xf4f   : > { %v3954_v63 = vpop.xlane.xlu1 %3953 }
 0xf50   : > { %v3955_v0 = vmul.f32 0.03125, %v3954_v63 }
 0xf52   : > { %v3956_v10 = vsub.f32 %v3949_v61, %v3955_v0 }
 0xf54   : > { %v3957_v19 = vmul.f32 %v3956_v10, %v3956_v10 }
 0xf56   : > { %v3958_v21 = vsel %vm2469_vm10, %v3957_v19, 0.0 }
 0xf57   : > { %3959 = vadd.xlane.f32.xlu0 %v3958_v21 }
 0xfe4   : > { %v3960_v5 = vpop.xlane.xlu0 %3959 }
 0xfe5   : > { %v3961_v7 = vmul.f32 0.03125, %v3960_v5 }
 0xfe7   : > { %v3962_v9 = vadd.f32 1e-05, %v3961_v7 }
 0xfe9   : > { %5197 = vrsqrt.f32 %v3962_v9 }
 0xff3   : > { %v5198_v12 = vpop.eup %5197 }
 0xff4   : > { %v3964_v14 = vmul.f32 %v5198_v12, %v3956_v10 }
 0xff6   : > { %v3971_v30 = vmul.f32 %v4732_v13, %v3964_v14 }
 0xff8   : > { %v3978_v16 = vadd.f32 %v4733_v15, %v3971_v30 }
 0xffa   : > { %v3979_v17 = vpack.c.bf16 %v3978_v16, %v3978_v16 }
 0xffc   : > { %4979 = vmatmul.mubr.msk.bf16.vlgmr.msra.gmra.mrb[48].mxu1 %vm1531_vm3, %v3979_v17 }
0x10cf   : > { %v4040_v22 = vpop.f32.mrb[48].mxu1 }
0x10d0   : > { %v4041_v23 = vadd.f32 %v4734_v20, %v4040_v22  ;;  %v4980_v24 = vpop.f32.mrb[49].mxu1 }
0x10d1   : > { %v4043_v26 = vpop.f32.mrb[50].mxu1 }
0x10d2   : > { %v4046_v27 = vmax.f32 %v4041_v23, 0.0  ;;  %v4981_v28 = vpop.f32.mrb[51].mxu1 }
0x10d4   : > { %v4047_v29 = vpack.c.bf16 %v4046_v27, %v4046_v27 }
0x10d6   : > { %4991 = vmatmul.mubr.msk.bf16.vlgmr.msra.gmra.mrb[44].mxu0 %vm4087_vm12, %v4047_v29 }
0x11a9   : > { %v4125_v34 = vpop.f32.mrb[44].mxu0 }
0x11aa   : > { %v4126_v36 = vadd.f32 %v4738_v33, %v4125_v34  ;;  %v4992_v37 = vpop.f32.mrb[45].mxu0 }
0x11ab   : > { %v4128_v38 = vpop.f32.mrb[46].mxu0 }
0x11ac   : > { %v4993_v8 = vpop.f32.mrb[47].mxu0  ;;  %v4131_v39 = vadd.f32 %v4126_v36, %v3978_v16 }
0x11ae   : > { %v4134_v11 = vsel %vm2469_vm10, %v4131_v39, 0.0 }
0x11af   : > { %4135 = vadd.xlane.f32.xlu0 %v4134_v11 }
0x123c   : > { %v4136_v40 = vpop.xlane.xlu0 %4135 }
0x123d   : > { %v4137_v42 = vmul.f32 0.03125, %v4136_v40 }
0x123f   : > { %v4138_v43 = vsub.f32 %v4131_v39, %v4137_v42 }
0x1241   : > { %v4139_v44 = vmul.f32 %v4138_v43, %v4138_v43 }
0x1243   : > { %v4140_v45 = vsel %vm2469_vm10, %v4139_v44, 0.0 }
0x1244   : > { %4141 = vadd.xlane.f32.xlu1 %v4140_v45 }
0x12d1   : > { %v4142_v46 = vpop.xlane.xlu1 %4141 }
0x12d2   : > { %v4143_v47 = vmul.f32 0.03125, %v4142_v46 }
0x12d4   : > { %v4144_v48 = vadd.f32 1e-05, %v4143_v47 }
0x12d6   : > { %5199 = vrsqrt.f32 %v4144_v48 }
0x12e0   : > { %v5200_v49 = vpop.eup %5199 }
0x12e1   : > { %v4146_v51 = vmul.f32 %v5200_v49, %v4138_v43 }
0x12e3   : > { %v4153_v52 = vmul.f32 %v4744_v50, %v4146_v51 }
0x12e5   : > { %v4160_v53 = vadd.f32 %v4745_v35, %v4153_v52 }
0x12e7   : > { %v4164_v54 = vsel %vm2469_vm10, %v4160_v53, 0.0  ;;  %4161 = vst.msk [vmem:[#allocation2] sm:$0xf] %vm2469_vm10, %v4160_v53 }
0x12e8   : > { %4165 = vadd.xlane.f32.xlu0 %v4164_v54 }
0x1375   : > { %v4166_v6 = vpop.xlane.xlu0 %4165 }
0x1376   : > { %v4167_v55 = vmul.f32 0.03125, %v4166_v6 }
0x1378   : > { %v4168_v56 = vsub.f32 %v4160_v53, %v4167_v55 }
0x137a   : > { %v4169_v41 = vmul.f32 %v4168_v56, %v4168_v56 }
0x137c   : > { %v4170_v57 = vsel %vm2469_vm10, %v4169_v41, 0.0 }
0x137d   : > { %4171 = vadd.xlane.f32.xlu1 %v4170_v57 }
0x140a   : > { %v4172_v58 = vpop.xlane.xlu1 %4171 }
0x140b   : > { %v4173_v31 = vmul.f32 0.03125, %v4172_v58 }
0x140d   : > { %v4174_v3 = vadd.f32 1e-05, %v4173_v31 }
0x140f   : > { %5201 = vrsqrt.f32 %v4174_v3 }
0x1419   : > { %v5202_v59 = vpop.eup %5201 }
0x141a   : > { %v4176_v61 = vmul.f32 %v5202_v59, %v4168_v56 }
0x141c   : > { %v4183_v63 = vmul.f32 %v4746_v60, %v4176_v61 }
0x141e   : > { %v4190_v0 = vadd.f32 %v4747_v62, %v4183_v63 }
0x1420   : > { %4191 = vst.msk [vmem:[%s5993_s18] sm:$0xf] %vm2469_vm10, %v4190_v0 }
0x1421 PF: > { %s6624_s9 = sld [smem:[#allocation51_spill]]  ;;  %s6625_s15 = sld [smem:[#allocation46_spill]] }
0x1422   : > { %s6626_s16 = sld [smem:[#allocation47_spill]]  ;;  %s6627_s18 = sld [smem:[#allocation54_spill]] }
0x1423   : > { %s6628_s22 = sld [smem:[#allocation49_spill]]  ;;  %s6629_s23 = sld [smem:[#allocation50_spill]] }
0x1424   : > { %s6630_s26 = sld [smem:[#allocation52_spill]]  ;;  %s6631_s28 = sld [smem:[#allocation53_spill]] }
0x1427   : > { %s73_s1 = sadd.s32 1, %s6624_s9  }
0x1428   : > { %p70_p9 = scmp.ge.s32.totalorder %s73_s1, 6  }
0x142a   :  { %72 = sbr.rel (!%p70_p9) target bundleno = 78 (0x4e), region = 326 }
0x1431   :  { %4219 = vsyncpa [#allocation5], 1 }
0x1432   :  { %4221 = vsyncpa [#allocation5 + $0x1], 1 }
0x1433   :  { %4222 = vsyncpa [#allocation7], 1 }

</bundles_post_ra>
